<compile_context>
chip_gen: v5e
topology: v5e:2x2
jax: 0.10.0
libtpu: 0.0.40
codegen_flags: <defaults>
</compile_context>

<pallas_src>
import jax
import jax.numpy as jnp
import numpy as np
from jax.experimental import pallas as pl
from jax.experimental.pallas import tpu as pltpu


def _subpixel_conv_kernel(xt_ref, w_ref, b_ref, o_ref):
    """Fused 2x-nearest-upsample + 3x3 'same' conv (sub-pixel formulation).

    xt_ref: (1, 1, TH+2, W+2, Cin)  low-res row tile with 1-px zero halo
    w_ref : (4, 4, Cin, Cout)       effective 2x2 weights; dim0 = output parity
                                    p = 2a+b, dim1 = tap q = 2u+v in the 2x2 window
    b_ref : (1, Cout)               bias (f32)
    o_ref : (1, 4, TH, W, Cout)     4 parity planes of the output tile
    """
    _, _, TH, W, _ = o_ref.shape
    xt = xt_ref[0, 0]                               # (TH+2, W+2, Cin)
    # Build the 3 column-shifted views once (the only sublane-misaligned slices),
    # shared across all parities / taps.
    xs = [xt[:, s:s + W, :] for s in range(3)]      # each (TH+2, W, Cin)
    bias_b = b_ref[0][None, None, :]                # (1, 1, Cout) f32, hoisted

    for a in range(2):              # output row parity
        for b in range(2):          # output col parity
            p = 2 * a + b
            acc = None
            for u in range(2):      # row offset in the 2x2 low-res window
                for v in range(2):  # col offset
                    patch = xs[b + v][a + u:a + u + TH]        # (TH, W, Cin)
                    contrib = jax.lax.dot_general(
                        patch, w_ref[p, 2 * u + v],
                        dimension_numbers=(((2,), (0,)), ((), ())),
                        preferred_element_type=jnp.float32)
                    acc = contrib if acc is None else acc + contrib
            o_ref[0, p] = (acc + bias_b).astype(o_ref.dtype)


def _choose_tile_h(H, W, C, in_itemsize, out_itemsize, budget_bytes):
    """Largest row-tile height whose double-buffered in/out blocks fit the budget."""
    per_row_in = (W + 2) * C * in_itemsize
    per_row_out = 4 * W * C * out_itemsize
    denom = 2 * (per_row_in + per_row_out)              # double-buffered, per TH row
    halo = 2 * 2 * per_row_in                            # 2 halo rows x 2 buffers
    th = (budget_bytes - halo) // max(denom, 1)
    return int(max(1, min(H, th)))


def upsample_forward(x_nchw, weight_oihw, bias, use_conv=True, *,
                     tile_h=None, compute_dtype=None,
                     vmem_budget_bytes=12 << 20):
    """Forward pass equivalent to Upsample(channels, use_conv, dims=2).

    x_nchw     : (N, C, H, W)    -- PyTorch layout
    weight_oihw: (C, C, 3, 3)    -- torch Conv2d weight layout
    bias       : (C,)
    returns    : (N, C, 2H, 2W)  -- PyTorch layout
    """
    N, C, H, W = x_nchw.shape
    x_nhwc = jnp.transpose(x_nchw, (0, 2, 3, 1))
    if not use_conv:
        # Pure nearest-neighbor upsample: data movement only, no Pallas kernel.
        up = jnp.repeat(jnp.repeat(x_nhwc, 2, axis=1), 2, axis=2)
        return jnp.transpose(up, (0, 3, 1, 2))

    out_dtype = x_nchw.dtype
    cdtype = out_dtype if compute_dtype is None else compute_dtype
    in_isz = jnp.dtype(cdtype).itemsize
    out_isz = jnp.dtype(out_dtype).itemsize

    if tile_h is None:
        TH = _choose_tile_h(H, W, C, in_isz, out_isz, vmem_budget_bytes)
    else:
        TH = max(1, min(tile_h, H))
    T = pl.cdiv(H, TH)
    Hp = T * TH

    # Low-res input with 1-px zero halo (== the conv's 'same' zero padding seen
    # through the 2x upsample), plus bottom pad so H tiles evenly.
    xh = jnp.pad(x_nhwc, ((0, 0), (1, 1 + Hp - H), (1, 1), (0, 0))).astype(cdtype)
    # Overlapping row tiles (each with its 2-row halo) via one gather on the
    # low-res input -> (N, T, TH+2, W+2, C); keeps BlockSpecs non-overlapping.
    row_idx = jnp.arange(T)[:, None] * TH + jnp.arange(TH + 2)[None, :]  # (T, TH+2)
    x_tiles = jnp.take(xh, row_idx, axis=1)

    # Effective 2x2 sub-pixel weights: conv3x3(up2x(x)) == interleave of 4 parity
    # outputs, each a 2x2 conv of x with summed 3x3 taps.
    w_hwio = jnp.transpose(weight_oihw, (2, 3, 1, 0)).astype(jnp.float32)  # (3,3,Ci,Co)
    R = jnp.array([[[1., 0., 0.], [0., 1., 1.]],      # parity 0: {w0}, {w1+w2}
                   [[1., 1., 0.], [0., 0., 1.]]],     # parity 1: {w0+w1}, {w2}
                  dtype=jnp.float32)                  # R[parity, tap, orig_tap]
    w_eff = jnp.einsum('auy,bvx,yxio->abuvio', R, R, w_hwio)  # (2,2,2,2,Ci,Co)
    w_eff = w_eff.reshape(4, 4, C, C).astype(cdtype)          # p=2a+b, q=2u+v
    b2 = bias.reshape(1, C).astype(jnp.float32)

    cost = pl.CostEstimate(
        flops=int(2 * N * Hp * W * 16 * C * C),
        transcendentals=0,
        bytes_accessed=int(x_tiles.size * in_isz + w_eff.size * in_isz
                           + b2.size * 4 + N * 4 * Hp * W * C * out_isz))

    out = pl.pallas_call(
        _subpixel_conv_kernel,
        out_shape=jax.ShapeDtypeStruct((N, 4, Hp, W, C), out_dtype),
        grid_spec=pltpu.PrefetchScalarGridSpec(
            num_scalar_prefetch=0,
            grid=(N, T),
            in_specs=[
                pl.BlockSpec((1, 1, TH + 2, W + 2, C), lambda n, t: (n, t, 0, 0, 0)),
                pl.BlockSpec((4, 4, C, C), lambda n, t: (0, 0, 0, 0)),
                pl.BlockSpec((1, C), lambda n, t: (0, 0)),
            ],
            out_specs=pl.BlockSpec((1, 4, TH, W, C), lambda n, t: (n, 0, t, 0, 0)),
        ),
        compiler_params=pltpu.CompilerParams(
            dimension_semantics=("parallel", "parallel")),
        cost_estimate=cost,
    )(x_tiles, w_eff, b2)

    out = out[:, :, :H]                               # drop tile-padding rows
    out = out.reshape(N, 2, 2, H, W, C)               # (n, a, b, i, j, c)
    y = jnp.transpose(out, (0, 5, 3, 1, 4, 2))        # (n, c, i, a, j, b)
    return y.reshape(N, C, 2 * H, 2 * W)


def reference_forward(x_nchw, weight_oihw, bias):
    """Pure-JAX reference (matches F.interpolate(nearest, 2x) + Conv2d(3x3, pad=1))."""
    N, C, H, W = x_nchw.shape
    x = jnp.transpose(x_nchw, (0, 2, 3, 1))
    up = jnp.repeat(jnp.repeat(x, 2, axis=1), 2, axis=2)
    w_hwio = jnp.transpose(weight_oihw, (2, 3, 1, 0))
    y = jax.lax.conv_general_dilated(
        up, w_hwio, window_strides=(1, 1), padding="SAME",
        dimension_numbers=("NHWC", "HWIO", "NHWC"),
    ) + bias[None, None, None, :]
    return jnp.transpose(y, (0, 3, 1, 2))


if __name__ == "__main__":
    # Small shapes consistent with the module: batch=2, channels=4, spatial=16.
    N, C, H, W = 2, 4, 16, 16
    key = jax.random.PRNGKey(0)
    kx, kw, kb = jax.random.split(key, 3)

    x = jax.random.normal(kx, (N, C, H, W), dtype=jnp.float32)
    fan_in = C * 3 * 3
    weight = jax.random.normal(kw, (C, C, 3, 3), dtype=jnp.float32) / np.sqrt(fan_in)
    bias = jax.random.normal(kb, (C,), dtype=jnp.float32) * 0.01

    # f32 path (auto tile): tight check against the lax.conv reference.
    y = jax.block_until_ready(upsample_forward(x, weight, bias, use_conv=True))
    y_ref = jax.block_until_ready(reference_forward(x, weight, bias))
    assert y.shape == (N, C, 2 * H, 2 * W)
    np.testing.assert_allclose(np.asarray(y), np.asarray(y_ref), rtol=1e-5, atol=1e-5)

    # Explicit small tile (exercises the multi-tile / halo path).
    y_t = jax.block_until_ready(
        upsample_forward(x, weight, bias, use_conv=True, tile_h=8))
    np.testing.assert_allclose(np.asarray(y_t), np.asarray(y_ref), rtol=1e-5, atol=1e-5)

    # bf16 compute path (f32 accumulation) -- looser tolerance.
    y_bf16 = jax.block_until_ready(
        upsample_forward(x, weight, bias, use_conv=True,
                         compute_dtype=jnp.bfloat16))
    np.testing.assert_allclose(np.asarray(y_bf16), np.asarray(y_ref),
                               rtol=5e-2, atol=5e-2)

    # use_conv=False path (pure nearest upsample).
    y_nc = jax.block_until_ready(upsample_forward(x, weight, bias, use_conv=False))
    assert y_nc.shape == (N, C, 2 * H, 2 * W)

    print("KERNEL_OK")
</pallas_src>

<mosaic_0001>
module attributes {stable_mosaic.version = 11 : i64} {
  func.func @_subpixel_conv_kernel(%arg0: i32, %arg1: i32, %arg2: memref<1x1x18x18x4xf32, #tpu.memory_space<vmem>>, %arg3: memref<4x4x4x4xf32, #tpu.memory_space<vmem>>, %arg4: memref<1x4xf32, #tpu.memory_space<vmem>>, %arg5: memref<1x4x16x16x4xf32, #tpu.memory_space<vmem>>) attributes {dimension_semantics = [#tpu.dimension_semantics<parallel>, #tpu.dimension_semantics<parallel>], iteration_bounds = array<i64: 2, 1>, scalar_prefetch = 0 : i64, scratch_operands = 0 : i64, tpu.core_type = #tpu.core_type<tc>, window_params = [{transform_indices = @transform_0, window_bounds = array<i64: 1, 1, 18, 18, 4>}, {pipeline_mode = #tpu.pipeline_mode<synchronous>, transform_indices = @transform_1, window_bounds = array<i64: 4, 4, 4, 4>}, {pipeline_mode = #tpu.pipeline_mode<synchronous>, transform_indices = @transform_2, window_bounds = array<i64: 1, 4>}, {transform_indices = @transform_3, window_bounds = array<i64: 1, 4, 16, 16, 4>}]} {
    %c0 = arith.constant 0 : index
    %c0_0 = arith.constant 0 : index
    %c0_1 = arith.constant 0 : index
    %c0_2 = arith.constant 0 : index
    %c0_3 = arith.constant 0 : index
    %0 = vector.load %arg2[%c0, %c0_0, %c0_1, %c0_2, %c0_3] : memref<1x1x18x18x4xf32, #tpu.memory_space<vmem>>, vector<1x1x18x18x4xf32>
    %1 = vector.shape_cast %0 : vector<1x1x18x18x4xf32> to vector<18x18x4xf32>
    %2 = vector.extract_strided_slice %1 {offsets = [0, 0, 0], sizes = [18, 16, 4], strides = [1, 1, 1]} : vector<18x18x4xf32> to vector<18x16x4xf32>
    %3 = vector.extract_strided_slice %1 {offsets = [0, 1, 0], sizes = [18, 16, 4], strides = [1, 1, 1]} : vector<18x18x4xf32> to vector<18x16x4xf32>
    %4 = vector.extract_strided_slice %1 {offsets = [0, 2, 0], sizes = [18, 16, 4], strides = [1, 1, 1]} : vector<18x18x4xf32> to vector<18x16x4xf32>
    %c0_4 = arith.constant 0 : index
    %c0_5 = arith.constant 0 : index
    %5 = vector.load %arg4[%c0_4, %c0_5] : memref<1x4xf32, #tpu.memory_space<vmem>>, vector<1x4xf32>
    %6 = vector.shape_cast %5 : vector<1x4xf32> to vector<4xf32>
    %7 = vector.shape_cast %6 : vector<4xf32> to vector<1x1x4xf32>
    %8 = vector.extract_strided_slice %2 {offsets = [0, 0, 0], sizes = [16, 16, 4], strides = [1, 1, 1]} : vector<18x16x4xf32> to vector<16x16x4xf32>
    %c0_6 = arith.constant 0 : index
    %c0_7 = arith.constant 0 : index
    %c0_8 = arith.constant 0 : index
    %c0_9 = arith.constant 0 : index
    %9 = vector.load %arg3[%c0_6, %c0_7, %c0_8, %c0_9] : memref<4x4x4x4xf32, #tpu.memory_space<vmem>>, vector<1x1x4x4xf32>
    %10 = vector.shape_cast %9 : vector<1x1x4x4xf32> to vector<4x4xf32>
    %cst = arith.constant dense<0.000000e+00> : vector<16x16x4xf32>
    %11 = tpu.matmul %8, %10, %cst {dimension_numbers = #tpu.dot_dimension_numbers<[2], [0], [0, 1], [1], [0, 0, 0, 1, 1, 1], [], []>} : vector<16x16x4xf32>, vector<4x4xf32>, vector<16x16x4xf32> -> vector<16x16x4xf32>
    %12 = vector.extract_strided_slice %3 {offsets = [0, 0, 0], sizes = [16, 16, 4], strides = [1, 1, 1]} : vector<18x16x4xf32> to vector<16x16x4xf32>
    %c0_10 = arith.constant 0 : index
    %c1 = arith.constant 1 : index
    %c0_11 = arith.constant 0 : index
    %c0_12 = arith.constant 0 : index
    %13 = vector.load %arg3[%c0_10, %c1, %c0_11, %c0_12] : memref<4x4x4x4xf32, #tpu.memory_space<vmem>>, vector<1x1x4x4xf32>
    %14 = vector.shape_cast %13 : vector<1x1x4x4xf32> to vector<4x4xf32>
    %cst_13 = arith.constant dense<0.000000e+00> : vector<16x16x4xf32>
    %15 = tpu.matmul %12, %14, %cst_13 {dimension_numbers = #tpu.dot_dimension_numbers<[2], [0], [0, 1], [1], [0, 0, 0, 1, 1, 1], [], []>} : vector<16x16x4xf32>, vector<4x4xf32>, vector<16x16x4xf32> -> vector<16x16x4xf32>
    %16 = arith.addf %11, %15 : vector<16x16x4xf32>
    %17 = vector.extract_strided_slice %2 {offsets = [1, 0, 0], sizes = [16, 16, 4], strides = [1, 1, 1]} : vector<18x16x4xf32> to vector<16x16x4xf32>
    %c0_14 = arith.constant 0 : index
    %c2 = arith.constant 2 : index
    %c0_15 = arith.constant 0 : index
    %c0_16 = arith.constant 0 : index
    %18 = vector.load %arg3[%c0_14, %c2, %c0_15, %c0_16] : memref<4x4x4x4xf32, #tpu.memory_space<vmem>>, vector<1x1x4x4xf32>
    %19 = vector.shape_cast %18 : vector<1x1x4x4xf32> to vector<4x4xf32>
    %cst_17 = arith.constant dense<0.000000e+00> : vector<16x16x4xf32>
    %20 = tpu.matmul %17, %19, %cst_17 {dimension_numbers = #tpu.dot_dimension_numbers<[2], [0], [0, 1], [1], [0, 0, 0, 1, 1, 1], [], []>} : vector<16x16x4xf32>, vector<4x4xf32>, vector<16x16x4xf32> -> vector<16x16x4xf32>
    %21 = arith.addf %16, %20 : vector<16x16x4xf32>
    %22 = vector.extract_strided_slice %3 {offsets = [1, 0, 0], sizes = [16, 16, 4], strides = [1, 1, 1]} : vector<18x16x4xf32> to vector<16x16x4xf32>
    %c0_18 = arith.constant 0 : index
    %c3 = arith.constant 3 : index
    %c0_19 = arith.constant 0 : index
    %c0_20 = arith.constant 0 : index
    %23 = vector.load %arg3[%c0_18, %c3, %c0_19, %c0_20] : memref<4x4x4x4xf32, #tpu.memory_space<vmem>>, vector<1x1x4x4xf32>
    %24 = vector.shape_cast %23 : vector<1x1x4x4xf32> to vector<4x4xf32>
    %cst_21 = arith.constant dense<0.000000e+00> : vector<16x16x4xf32>
    %25 = tpu.matmul %22, %24, %cst_21 {dimension_numbers = #tpu.dot_dimension_numbers<[2], [0], [0, 1], [1], [0, 0, 0, 1, 1, 1], [], []>} : vector<16x16x4xf32>, vector<4x4xf32>, vector<16x16x4xf32> -> vector<16x16x4xf32>
    %26 = arith.addf %21, %25 : vector<16x16x4xf32>
    %27 = vector.broadcast %7 : vector<1x1x4xf32> to vector<16x16x4xf32>
    %28 = arith.addf %26, %27 : vector<16x16x4xf32>
    %c0_22 = arith.constant 0 : index
    %c0_23 = arith.constant 0 : index
    %c0_24 = arith.constant 0 : index
    %c0_25 = arith.constant 0 : index
    %c0_26 = arith.constant 0 : index
    %29 = vector.load %arg5[%c0_22, %c0_23, %c0_24, %c0_25, %c0_26] : memref<1x4x16x16x4xf32, #tpu.memory_space<vmem>>, vector<1x1x16x16x4xf32>
    %30 = vector.shape_cast %29 : vector<1x1x16x16x4xf32> to vector<16x16x4xf32>
    %31 = vector.shape_cast %28 : vector<16x16x4xf32> to vector<1x1x16x16x4xf32>
    tpu.vector_store %arg5[%c0_22, %c0_23, %c0_24, %c0_25, %c0_26], %31 {strides = array<i32>} : memref<1x4x16x16x4xf32, #tpu.memory_space<vmem>>, vector<1x1x16x16x4xf32>,
    %32 = vector.extract_strided_slice %3 {offsets = [0, 0, 0], sizes = [16, 16, 4], strides = [1, 1, 1]} : vector<18x16x4xf32> to vector<16x16x4xf32>
    %c1_27 = arith.constant 1 : index
    %c0_28 = arith.constant 0 : index
    %c0_29 = arith.constant 0 : index
    %c0_30 = arith.constant 0 : index
    %33 = vector.load %arg3[%c1_27, %c0_28, %c0_29, %c0_30] : memref<4x4x4x4xf32, #tpu.memory_space<vmem>>, vector<1x1x4x4xf32>
    %34 = vector.shape_cast %33 : vector<1x1x4x4xf32> to vector<4x4xf32>
    %cst_31 = arith.constant dense<0.000000e+00> : vector<16x16x4xf32>
    %35 = tpu.matmul %32, %34, %cst_31 {dimension_numbers = #tpu.dot_dimension_numbers<[2], [0], [0, 1], [1], [0, 0, 0, 1, 1, 1], [], []>} : vector<16x16x4xf32>, vector<4x4xf32>, vector<16x16x4xf32> -> vector<16x16x4xf32>
    %36 = vector.extract_strided_slice %4 {offsets = [0, 0, 0], sizes = [16, 16, 4], strides = [1, 1, 1]} : vector<18x16x4xf32> to vector<16x16x4xf32>
    %c1_32 = arith.constant 1 : index
    %c1_33 = arith.constant 1 : index
    %c0_34 = arith.constant 0 : index
    %c0_35 = arith.constant 0 : index
    %37 = vector.load %arg3[%c1_32, %c1_33, %c0_34, %c0_35] : memref<4x4x4x4xf32, #tpu.memory_space<vmem>>, vector<1x1x4x4xf32>
    %38 = vector.shape_cast %37 : vector<1x1x4x4xf32> to vector<4x4xf32>
    %cst_36 = arith.constant dense<0.000000e+00> : vector<16x16x4xf32>
    %39 = tpu.matmul %36, %38, %cst_36 {dimension_numbers = #tpu.dot_dimension_numbers<[2], [0], [0, 1], [1], [0, 0, 0, 1, 1, 1], [], []>} : vector<16x16x4xf32>, vector<4x4xf32>, vector<16x16x4xf32> -> vector<16x16x4xf32>
    %40 = arith.addf %35, %39 : vector<16x16x4xf32>
    %41 = vector.extract_strided_slice %3 {offsets = [1, 0, 0], sizes = [16, 16, 4], strides = [1, 1, 1]} : vector<18x16x4xf32> to vector<16x16x4xf32>
    %c1_37 = arith.constant 1 : index
    %c2_38 = arith.constant 2 : index
    %c0_39 = arith.constant 0 : index
    %c0_40 = arith.constant 0 : index
    %42 = vector.load %arg3[%c1_37, %c2_38, %c0_39, %c0_40] : memref<4x4x4x4xf32, #tpu.memory_space<vmem>>, vector<1x1x4x4xf32>
    %43 = vector.shape_cast %42 : vector<1x1x4x4xf32> to vector<4x4xf32>
    %cst_41 = arith.constant dense<0.000000e+00> : vector<16x16x4xf32>
    %44 = tpu.matmul %41, %43, %cst_41 {dimension_numbers = #tpu.dot_dimension_numbers<[2], [0], [0, 1], [1], [0, 0, 0, 1, 1, 1], [], []>} : vector<16x16x4xf32>, vector<4x4xf32>, vector<16x16x4xf32> -> vector<16x16x4xf32>
    %45 = arith.addf %40, %44 : vector<16x16x4xf32>
    %46 = vector.extract_strided_slice %4 {offsets = [1, 0, 0], sizes = [16, 16, 4], strides = [1, 1, 1]} : vector<18x16x4xf32> to vector<16x16x4xf32>
    %c1_42 = arith.constant 1 : index
    %c3_43 = arith.constant 3 : index
    %c0_44 = arith.constant 0 : index
    %c0_45 = arith.constant 0 : index
    %47 = vector.load %arg3[%c1_42, %c3_43, %c0_44, %c0_45] : memref<4x4x4x4xf32, #tpu.memory_space<vmem>>, vector<1x1x4x4xf32>
    %48 = vector.shape_cast %47 : vector<1x1x4x4xf32> to vector<4x4xf32>
    %cst_46 = arith.constant dense<0.000000e+00> : vector<16x16x4xf32>
    %49 = tpu.matmul %46, %48, %cst_46 {dimension_numbers = #tpu.dot_dimension_numbers<[2], [0], [0, 1], [1], [0, 0, 0, 1, 1, 1], [], []>} : vector<16x16x4xf32>, vector<4x4xf32>, vector<16x16x4xf32> -> vector<16x16x4xf32>
    %50 = arith.addf %45, %49 : vector<16x16x4xf32>
    %51 = vector.broadcast %7 : vector<1x1x4xf32> to vector<16x16x4xf32>
    %52 = arith.addf %50, %51 : vector<16x16x4xf32>
    %c0_47 = arith.constant 0 : index
    %c1_48 = arith.constant 1 : index
    %c0_49 = arith.constant 0 : index
    %c0_50 = arith.constant 0 : index
    %c0_51 = arith.constant 0 : index
    %53 = vector.load %arg5[%c0_47, %c1_48, %c0_49, %c0_50, %c0_51] : memref<1x4x16x16x4xf32, #tpu.memory_space<vmem>>, vector<1x1x16x16x4xf32>
    %54 = vector.shape_cast %53 : vector<1x1x16x16x4xf32> to vector<16x16x4xf32>
    %55 = vector.shape_cast %52 : vector<16x16x4xf32> to vector<1x1x16x16x4xf32>
    tpu.vector_store %arg5[%c0_47, %c1_48, %c0_49, %c0_50, %c0_51], %55 {strides = array<i32>} : memref<1x4x16x16x4xf32, #tpu.memory_space<vmem>>, vector<1x1x16x16x4xf32>,
    %56 = vector.extract_strided_slice %2 {offsets = [1, 0, 0], sizes = [16, 16, 4], strides = [1, 1, 1]} : vector<18x16x4xf32> to vector<16x16x4xf32>
    %c2_52 = arith.constant 2 : index
    %c0_53 = arith.constant 0 : index
    %c0_54 = arith.constant 0 : index
    %c0_55 = arith.constant 0 : index
    %57 = vector.load %arg3[%c2_52, %c0_53, %c0_54, %c0_55] : memref<4x4x4x4xf32, #tpu.memory_space<vmem>>, vector<1x1x4x4xf32>
    %58 = vector.shape_cast %57 : vector<1x1x4x4xf32> to vector<4x4xf32>
    %cst_56 = arith.constant dense<0.000000e+00> : vector<16x16x4xf32>
    %59 = tpu.matmul %56, %58, %cst_56 {dimension_numbers = #tpu.dot_dimension_numbers<[2], [0], [0, 1], [1], [0, 0, 0, 1, 1, 1], [], []>} : vector<16x16x4xf32>, vector<4x4xf32>, vector<16x16x4xf32> -> vector<16x16x4xf32>
    %60 = vector.extract_strided_slice %3 {offsets = [1, 0, 0], sizes = [16, 16, 4], strides = [1, 1, 1]} : vector<18x16x4xf32> to vector<16x16x4xf32>
    %c2_57 = arith.constant 2 : index
    %c1_58 = arith.constant 1 : index
    %c0_59 = arith.constant 0 : index
    %c0_60 = arith.constant 0 : index
    %61 = vector.load %arg3[%c2_57, %c1_58, %c0_59, %c0_60] : memref<4x4x4x4xf32, #tpu.memory_space<vmem>>, vector<1x1x4x4xf32>
    %62 = vector.shape_cast %61 : vector<1x1x4x4xf32> to vector<4x4xf32>
    %cst_61 = arith.constant dense<0.000000e+00> : vector<16x16x4xf32>
    %63 = tpu.matmul %60, %62, %cst_61 {dimension_numbers = #tpu.dot_dimension_numbers<[2], [0], [0, 1], [1], [0, 0, 0, 1, 1, 1], [], []>} : vector<16x16x4xf32>, vector<4x4xf32>, vector<16x16x4xf32> -> vector<16x16x4xf32>
    %64 = arith.addf %59, %63 : vector<16x16x4xf32>
    %65 = vector.extract_strided_slice %2 {offsets = [2, 0, 0], sizes = [16, 16, 4], strides = [1, 1, 1]} : vector<18x16x4xf32> to vector<16x16x4xf32>
    %c2_62 = arith.constant 2 : index
    %c2_63 = arith.constant 2 : index
    %c0_64 = arith.constant 0 : index
    %c0_65 = arith.constant 0 : index
    %66 = vector.load %arg3[%c2_62, %c2_63, %c0_64, %c0_65] : memref<4x4x4x4xf32, #tpu.memory_space<vmem>>, vector<1x1x4x4xf32>
    %67 = vector.shape_cast %66 : vector<1x1x4x4xf32> to vector<4x4xf32>
    %cst_66 = arith.constant dense<0.000000e+00> : vector<16x16x4xf32>
    %68 = tpu.matmul %65, %67, %cst_66 {dimension_numbers = #tpu.dot_dimension_numbers<[2], [0], [0, 1], [1], [0, 0, 0, 1, 1, 1], [], []>} : vector<16x16x4xf32>, vector<4x4xf32>, vector<16x16x4xf32> -> vector<16x16x4xf32>
    %69 = arith.addf %64, %68 : vector<16x16x4xf32>
    %70 = vector.extract_strided_slice %3 {offsets = [2, 0, 0], sizes = [16, 16, 4], strides = [1, 1, 1]} : vector<18x16x4xf32> to vector<16x16x4xf32>
    %c2_67 = arith.constant 2 : index
    %c3_68 = arith.constant 3 : index
    %c0_69 = arith.constant 0 : index
    %c0_70 = arith.constant 0 : index
    %71 = vector.load %arg3[%c2_67, %c3_68, %c0_69, %c0_70] : memref<4x4x4x4xf32, #tpu.memory_space<vmem>>, vector<1x1x4x4xf32>
    %72 = vector.shape_cast %71 : vector<1x1x4x4xf32> to vector<4x4xf32>
    %cst_71 = arith.constant dense<0.000000e+00> : vector<16x16x4xf32>
    %73 = tpu.matmul %70, %72, %cst_71 {dimension_numbers = #tpu.dot_dimension_numbers<[2], [0], [0, 1], [1], [0, 0, 0, 1, 1, 1], [], []>} : vector<16x16x4xf32>, vector<4x4xf32>, vector<16x16x4xf32> -> vector<16x16x4xf32>
    %74 = arith.addf %69, %73 : vector<16x16x4xf32>
    %75 = vector.broadcast %7 : vector<1x1x4xf32> to vector<16x16x4xf32>
    %76 = arith.addf %74, %75 : vector<16x16x4xf32>
    %c0_72 = arith.constant 0 : index
    %c2_73 = arith.constant 2 : index
    %c0_74 = arith.constant 0 : index
    %c0_75 = arith.constant 0 : index
    %c0_76 = arith.constant 0 : index
    %77 = vector.load %arg5[%c0_72, %c2_73, %c0_74, %c0_75, %c0_76] : memref<1x4x16x16x4xf32, #tpu.memory_space<vmem>>, vector<1x1x16x16x4xf32>
    %78 = vector.shape_cast %77 : vector<1x1x16x16x4xf32> to vector<16x16x4xf32>
    %79 = vector.shape_cast %76 : vector<16x16x4xf32> to vector<1x1x16x16x4xf32>
    tpu.vector_store %arg5[%c0_72, %c2_73, %c0_74, %c0_75, %c0_76], %79 {strides = array<i32>} : memref<1x4x16x16x4xf32, #tpu.memory_space<vmem>>, vector<1x1x16x16x4xf32>,
    %80 = vector.extract_strided_slice %3 {offsets = [1, 0, 0], sizes = [16, 16, 4], strides = [1, 1, 1]} : vector<18x16x4xf32> to vector<16x16x4xf32>
    %c3_77 = arith.constant 3 : index
    %c0_78 = arith.constant 0 : index
    %c0_79 = arith.constant 0 : index
    %c0_80 = arith.constant 0 : index
    %81 = vector.load %arg3[%c3_77, %c0_78, %c0_79, %c0_80] : memref<4x4x4x4xf32, #tpu.memory_space<vmem>>, vector<1x1x4x4xf32>
    %82 = vector.shape_cast %81 : vector<1x1x4x4xf32> to vector<4x4xf32>
    %cst_81 = arith.constant dense<0.000000e+00> : vector<16x16x4xf32>
    %83 = tpu.matmul %80, %82, %cst_81 {dimension_numbers = #tpu.dot_dimension_numbers<[2], [0], [0, 1], [1], [0, 0, 0, 1, 1, 1], [], []>} : vector<16x16x4xf32>, vector<4x4xf32>, vector<16x16x4xf32> -> vector<16x16x4xf32>
    %84 = vector.extract_strided_slice %4 {offsets = [1, 0, 0], sizes = [16, 16, 4], strides = [1, 1, 1]} : vector<18x16x4xf32> to vector<16x16x4xf32>
    %c3_82 = arith.constant 3 : index
    %c1_83 = arith.constant 1 : index
    %c0_84 = arith.constant 0 : index
    %c0_85 = arith.constant 0 : index
    %85 = vector.load %arg3[%c3_82, %c1_83, %c0_84, %c0_85] : memref<4x4x4x4xf32, #tpu.memory_space<vmem>>, vector<1x1x4x4xf32>
    %86 = vector.shape_cast %85 : vector<1x1x4x4xf32> to vector<4x4xf32>
    %cst_86 = arith.constant dense<0.000000e+00> : vector<16x16x4xf32>
    %87 = tpu.matmul %84, %86, %cst_86 {dimension_numbers = #tpu.dot_dimension_numbers<[2], [0], [0, 1], [1], [0, 0, 0, 1, 1, 1], [], []>} : vector<16x16x4xf32>, vector<4x4xf32>, vector<16x16x4xf32> -> vector<16x16x4xf32>
    %88 = arith.addf %83, %87 : vector<16x16x4xf32>
    %89 = vector.extract_strided_slice %3 {offsets = [2, 0, 0], sizes = [16, 16, 4], strides = [1, 1, 1]} : vector<18x16x4xf32> to vector<16x16x4xf32>
    %c3_87 = arith.constant 3 : index
    %c2_88 = arith.constant 2 : index
    %c0_89 = arith.constant 0 : index
    %c0_90 = arith.constant 0 : index
    %90 = vector.load %arg3[%c3_87, %c2_88, %c0_89, %c0_90] : memref<4x4x4x4xf32, #tpu.memory_space<vmem>>, vector<1x1x4x4xf32>
    %91 = vector.shape_cast %90 : vector<1x1x4x4xf32> to vector<4x4xf32>
    %cst_91 = arith.constant dense<0.000000e+00> : vector<16x16x4xf32>
    %92 = tpu.matmul %89, %91, %cst_91 {dimension_numbers = #tpu.dot_dimension_numbers<[2], [0], [0, 1], [1], [0, 0, 0, 1, 1, 1], [], []>} : vector<16x16x4xf32>, vector<4x4xf32>, vector<16x16x4xf32> -> vector<16x16x4xf32>
    %93 = arith.addf %88, %92 : vector<16x16x4xf32>
    %94 = vector.extract_strided_slice %4 {offsets = [2, 0, 0], sizes = [16, 16, 4], strides = [1, 1, 1]} : vector<18x16x4xf32> to vector<16x16x4xf32>
    %c3_92 = arith.constant 3 : index
    %c3_93 = arith.constant 3 : index
    %c0_94 = arith.constant 0 : index
    %c0_95 = arith.constant 0 : index
    %95 = vector.load %arg3[%c3_92, %c3_93, %c0_94, %c0_95] : memref<4x4x4x4xf32, #tpu.memory_space<vmem>>, vector<1x1x4x4xf32>
    %96 = vector.shape_cast %95 : vector<1x1x4x4xf32> to vector<4x4xf32>
    %cst_96 = arith.constant dense<0.000000e+00> : vector<16x16x4xf32>
    %97 = tpu.matmul %94, %96, %cst_96 {dimension_numbers = #tpu.dot_dimension_numbers<[2], [0], [0, 1], [1], [0, 0, 0, 1, 1, 1], [], []>} : vector<16x16x4xf32>, vector<4x4xf32>, vector<16x16x4xf32> -> vector<16x16x4xf32>
    %98 = arith.addf %93, %97 : vector<16x16x4xf32>
    %99 = vector.broadcast %7 : vector<1x1x4xf32> to vector<16x16x4xf32>
    %100 = arith.addf %98, %99 : vector<16x16x4xf32>
    %c0_97 = arith.constant 0 : index
    %c3_98 = arith.constant 3 : index
    %c0_99 = arith.constant 0 : index
    %c0_100 = arith.constant 0 : index
    %c0_101 = arith.constant 0 : index
    %101 = vector.load %arg5[%c0_97, %c3_98, %c0_99, %c0_100, %c0_101] : memref<1x4x16x16x4xf32, #tpu.memory_space<vmem>>, vector<1x1x16x16x4xf32>
    %102 = vector.shape_cast %101 : vector<1x1x16x16x4xf32> to vector<16x16x4xf32>
    %103 = vector.shape_cast %100 : vector<16x16x4xf32> to vector<1x1x16x16x4xf32>
    tpu.vector_store %arg5[%c0_97, %c3_98, %c0_99, %c0_100, %c0_101], %103 {strides = array<i32>} : memref<1x4x16x16x4xf32, #tpu.memory_space<vmem>>, vector<1x1x16x16x4xf32>,
    return
  }
  func.func @transform_0(%arg0: i32, %arg1: i32) -> (i32, i32, i32, i32, i32) {
    %c0_i32 = arith.constant 0 : i32
    %c0_i32_0 = arith.constant 0 : i32
    %c0_i32_1 = arith.constant 0 : i32
    %c0_i32_2 = arith.constant 0 : i32
    return %arg0, %arg1, %c0_i32, %c0_i32_0, %c0_i32_1 : i32, i32, i32, i32, i32
  }
  func.func @transform_1(%arg0: i32, %arg1: i32) -> (i32, i32, i32, i32) {
    %c0_i32 = arith.constant 0 : i32
    %c0_i32_0 = arith.constant 0 : i32
    %c0_i32_1 = arith.constant 0 : i32
    %c0_i32_2 = arith.constant 0 : i32
    %c0_i32_3 = arith.constant 0 : i32
    return %c0_i32, %c0_i32_0, %c0_i32_1, %c0_i32_2 : i32, i32, i32, i32
  }
  func.func @transform_2(%arg0: i32, %arg1: i32) -> (i32, i32) {
    %c0_i32 = arith.constant 0 : i32
    %c0_i32_0 = arith.constant 0 : i32
    %c0_i32_1 = arith.constant 0 : i32
    return %c0_i32, %c0_i32_0 : i32, i32
  }
  func.func @transform_3(%arg0: i32, %arg1: i32) -> (i32, i32, i32, i32, i32) {
    %c0_i32 = arith.constant 0 : i32
    %c0_i32_0 = arith.constant 0 : i32
    %c0_i32_1 = arith.constant 0 : i32
    %c0_i32_2 = arith.constant 0 : i32
    return %arg0, %c0_i32, %arg1, %c0_i32_0, %c0_i32_1 : i32, i32, i32, i32, i32
  }
}

</mosaic_0001>

<bundles_post_ra>
// kernel: tpu_custom_call.1
= control target key start
LH: loop header
LB: loop body
LE: loop exit
PB: predicated region body
PF: predicated region fallthrough
CT: control target
= control target key end

     0   :  { %s3985_s12 = smov 0   ;;  %s3987_s13 = smov 0   ;;  %s5946_s0 = inlined_call_operand.vmem [shape: f32[2,1,18,18,4], index: 0, kind: input, shape index: {}]   ;;  %s5947_s1 = inlined_call_operand.vmem [shape: f32[4,4,4,4], index: 1, kind: input, shape index: {}]   ;;  %s5948_s2 = inlined_call_operand.vmem [shape: f32[1,4], index: 2, kind: input, shape index: {}]   ;;  %s5949_s3 = inlined_call_operand.vmem [shape: f32[2,4,16,16,4], index: 3, kind: output, shape index: {}]  }
   0x1   :  { %s3989_s14 = smov 0  }
   0x2 LB: > { %s25_s15 = sadd.s32 1, %s3959_s13  ;;  %p3224_p0 = scmp.ge.s32.totalorder %s3963_s14, 1  ;;  %s3963_s14 = sphi %s3989_s14, %s13_s14   ;;  %s3959_s13 = sphi %s3987_s13, %s6113_s13   ;;  %s3955_s12 = sphi %s3985_s12, %s6112_s12  }
   0x3   : > { %p27_p1 = scmp.ge.s32.totalorder %s25_s15, 2  ;;  %p157_p2 = scmp.lt.s32.totalorder %s3963_s14, 3 }
   0x5   : > { %s6115_s15 = smov (%p27_p1, %s25_s15), 0  ;;  %p158_p3 = pnand %p3224_p0, %p157_p2 }
   0x7   : > { %161 = sbr.rel (%p158_p3) target bundleno = 1175 (0x497), region = 32 }
   0xc   : > { %vm462_vm0 = vcmask 1043456   ;;  %v3295_v0 = vld [vmem:[%s5947_s1 + $0x8] sm:$0xf]  ;;  %p190_p4 = scmp.lt.s32.totalorder %s3955_s12, 1  ;;  %v3431_v1 = vld [vmem:[%s5947_s1 + $0x18] sm:$0xf] }
   0xd   : > { %3296 = vmatpush.msk.msra.mxu2 %vm462_vm0, %v3295_v0  ;;  %v3329_v2 = vld [vmem:[%s5947_s1 + $0xc] sm:$0xf]  ;;  %v3465_v3 = vld [vmem:[%s5947_s1 + $0x1c] sm:$0xf]  ;;  %v3228_v4 = vld [vmem:[%s5947_s1 + $0x4] sm:$0xf] }
   0xe   : > { %s6117_s12 = smov (!%p190_p4, %s3955_s12), 1  ;;  %3330 = vmatpush.msk.msra.mxu3 %vm462_vm0, %v3329_v2  ;;  %v265_v5 = vld [vmem:[%s5947_s1] sm:$0xf]  ;;  %3229 = vmatpush.msk.msra.mxu0 %vm462_vm0, %v3228_v4  ;;  %v3364_v6 = vld [vmem:[%s5947_s1 + $0x14] sm:$0xf]  ;;  %vm397_vm1 = vcmask 31744  }
   0xf   : > { %3432 = vmatpush.msk.msrb.mxu2 %vm462_vm0, %v3431_v1  ;;  %v3363_v7 = vld [vmem:[%s5947_s1 + $0x10] sm:$0xf]  ;;  %s3870_s5 = smul.u32 432, %s6117_s12  ;;  %3262 = vmatpush.msk.msra.mxu1 %vm462_vm0, %v265_v5  ;;  %vm316_vm2 = vcmask 1046528   ;;  %s3869_s9 = sshll.u32 %s6117_s12, 10  ;;  %vm1146_vm3 = vcmask 1045504  }
  0x10   : > { %3466 = vmatpush.msk.msrb.mxu3 %vm462_vm0, %v3465_v3  ;;  %3365 = vmatpush.msk.msrb.mxu0 %vm462_vm0, %v3364_v6  ;;  %s4340_s18 = scalar_lea.vmem %s5949_s3, %s3869_s9 }
  0x11   : > { %3398 = vmatpush.msk.msrb.mxu1 %vm462_vm0, %v3363_v7  ;;  %s4041_s8 = scalar_lea.vmem %s5946_s0, %s3870_s5 }
  0x12   : > { %v4044_v8 = vld [vmem:[%s4041_s8 + $0x18] sm:$0xff]  ;;  %v4047_v9 = vld [vmem:[%s4041_s8 + $0x20] sm:$0xff]  ;;  %v4057_v13 = vld [vmem:[%s4041_s8 + $0x8] sm:$0xff] }
  0x13   : > { %v4050_v10 = vld [vmem:[%s4041_s8] sm:$0xff]  ;;  %v322_v11 = vrot.slane %v4044_v8, 1  ;;  %3297 = vmatmul.msk.f32.vlgmr.msra.gmra.mxu2 %vm397_vm1, %v4044_v8  ;;  %v323_v12 = vrot.slane %v4047_v9, 1  ;;  %v318_v15 = vrot.slane %v4057_v13, 1  ;;  %v4064_v16 = vld [vmem:[%s4041_s8 + $0x28] sm:$0x3] }
  0x14   : > { %v317_v14 = vrot.slane %v4050_v10, 1  ;;  %3263 = vmatmul.msk.f32.vlgmr.msra.gmra.mxu1 %vm397_vm1, %v4050_v10  ;;  %v4070_v18 = vld [vmem:[%s4041_s8 + $0x10] sm:$0x3]  ;;  %v325_v20 = vrot.slane %v4064_v16, 1  ;;  %v4095_v25 = vld [vmem:[%s4041_s8 + $0x38] sm:$0xff]  ;;  %v4126_v32 = vld [vmem:[%s4041_s8 + $0x48] sm:$0xff] }
  0x15   : > { %v4067_v17 = vsel %vm316_vm2, %v322_v11, %v323_v12  ;;  %v320_v21 = vrot.slane %v4070_v18, 1  ;;  %v4092_v24 = vld [vmem:[%s4041_s8 + $0x30] sm:$0xff]  ;;  %v328_v27 = vrot.slane %v4095_v25, 1  ;;  %v4111_v29 = vld [vmem:[%s4041_s8 + $0x40] sm:$0x3]  ;;  %v332_v34 = vrot.slane %v4126_v32, 1 }
  0x16   : > { %3331 = vmatmul.msk.f32.vlgmr.msra.gmra.mxu3 %vm397_vm1, %v4067_v17  ;;  %v4075_v19 = vsel %vm316_vm2, %v317_v14, %v318_v15  ;;  %v4084_v22 = vsel %vm316_vm2, %v323_v12, %v325_v20  ;;  %v327_v26 = vrot.slane %v4092_v24, 1  ;;  %v330_v30 = vrot.slane %v4111_v29, 1  ;;  %v4129_v33 = vld [vmem:[%s4041_s8 + $0x50] sm:$0xff]  ;;  %v4145_v37 = vld [vmem:[%s4041_s8 + $0x58] sm:$0x3]  ;;  %v4160_v40 = vld [vmem:[%s4041_s8 + $0x60] sm:$0xff] }
  0x17   : > { %3230 = vmatmul.msk.f32.vlgmr.msra.gmra.mxu0 %vm397_vm1, %v4075_v19  ;;  %v4089_v23 = vsel %vm316_vm2, %v318_v15, %v320_v21  ;;  %v333_v35 = vrot.slane %v4129_v33, 1  ;;  %v335_v38 = vrot.slane %v4145_v37, 1  ;;  %v4163_v41 = vld [vmem:[%s4041_s8 + $0x68] sm:$0xff]  ;;  %v337_v42 = vrot.slane %v4160_v40, 1  ;;  %v4179_v45 = vld [vmem:[%s4041_s8 + $0x70] sm:$0x3] }
  0x18   : > { %v4106_v28 = vsel %vm316_vm2, %v327_v26, %v328_v27  ;;  %v4121_v31 = vsel %vm316_vm2, %v328_v27, %v330_v30  ;;  %v338_v43 = vrot.slane %v4163_v41, 1  ;;  %v340_v46 = vrot.slane %v4179_v45, 1  ;;  %v4194_v48 = vld [vmem:[%s4041_s8 + $0x78] sm:$0xff]  ;;  %v4197_v49 = vld [vmem:[%s4041_s8 + $0x80] sm:$0xff]  ;;  %v4213_v53 = vld [vmem:[%s4041_s8 + $0x88] sm:$0x3] }
  0x19   : > { %v4140_v36 = vsel %vm316_vm2, %v332_v34, %v333_v35  ;;  %v4155_v39 = vsel %vm316_vm2, %v333_v35, %v335_v38  ;;  %v342_v50 = vrot.slane %v4194_v48, 1  ;;  %v343_v51 = vrot.slane %v4197_v49, 1  ;;  %v4228_v56 = vld [vmem:[%s4041_s8 + $0x90] sm:$0xff]  ;;  %v4231_v57 = vld [vmem:[%s4041_s8 + $0x98] sm:$0xff]  ;;  %v4247_v61 = vld [vmem:[%s4041_s8 + $0xa0] sm:$0x3] }
  0x1a   : > { %v4174_v44 = vsel %vm316_vm2, %v337_v42, %v338_v43  ;;  %v4189_v47 = vsel %vm316_vm2, %v338_v43, %v340_v46  ;;  %v345_v54 = vrot.slane %v4213_v53, 1  ;;  %v347_v58 = vrot.slane %v4228_v56, 1  ;;  %v4262_v0 = vld [vmem:[%s4041_s8 + $0xa8] sm:$0xff]  ;;  %v4265_v1 = vld [vmem:[%s4041_s8 + $0xb0] sm:$0xff]  ;;  %v233_v5 = vld [vmem:[%s4041_s8 + $0xb8] sm:$0x3] }
  0x1b   : > { %3298 = vmatmul.msk.f32.gmra.mxu2 %vm397_vm1, %v4047_v9  ;;  %v4208_v52 = vsel %vm316_vm2, %v342_v50, %v343_v51  ;;  %v348_v59 = vrot.slane %v4231_v57, 1  ;;  %v350_v62 = vrot.slane %v4247_v61, 1  ;;  %v352_v2 = vrot.slane %v4262_v0, 1  ;;  %v234_v11 = vld [vmem:[%s4041_s8 + $0xc0] sm:$0xff]  ;;  %v235_v12 = vld [vmem:[%s4041_s8 + $0xc8] sm:$0xff]  ;;  %v237_v30 = vld [vmem:[%s4041_s8 + $0xd8] sm:$0xff] }
  0x1c   : > { %3264 = vmatmul.msk.f32.gmra.mxu1 %vm397_vm1, %v4057_v13  ;;  %v4223_v55 = vsel %vm316_vm2, %v343_v51, %v345_v54  ;;  %v353_v3 = vrot.slane %v4265_v1, 1  ;;  %v355_v6 = vrot.slane %v233_v5, 1  ;;  %v357_v14 = vrot.slane %v234_v11, 1  ;;  %v236_v21 = vld [vmem:[%s4041_s8 + $0xd0] sm:$0x3]  ;;  %v238_v34 = vld [vmem:[%s4041_s8 + $0xe0] sm:$0xff] }
  0x1d   : > { %v4242_v60 = vsel %vm316_vm2, %v347_v58, %v348_v59  ;;  %v4257_v63 = vsel %vm316_vm2, %v348_v59, %v350_v62  ;;  %v358_v15 = vrot.slane %v235_v12, 1  ;;  %v360_v26 = vrot.slane %v236_v21, 1  ;;  %v239_v50 = vld [vmem:[%s4041_s8 + $0xe8] sm:$0x3]  ;;  %v4335_v62 = vld [vmem:[%s5948_s2] ss:$0 sm:$0xff] }
  0x1e   : > { %3332 = vmatmul.msk.f32.gmra.mxu3 %vm397_vm1, %v4084_v22  ;;  %v4276_v4 = vsel %vm316_vm2, %v352_v2, %v353_v3  ;;  %v4288_v7 = vsel %vm316_vm2, %v353_v3, %v355_v6  ;;  %v362_v35 = vrot.slane %v237_v30, 1  ;;  %v363_v38 = vrot.slane %v238_v34, 1  ;;  %v4350_v21 = vld [vmem:[%s4041_s8 + $0xf8] sm:$0xff] }
  0x1f   : > { %3231 = vmatmul.msk.f32.gmra.mxu0 %vm397_vm1, %v4089_v23  ;;  %v4300_v20 = vsel %vm316_vm2, %v357_v14, %v358_v15  ;;  %v4311_v27 = vsel %vm316_vm2, %v358_v15, %v360_v26  ;;  %v365_v59 = vrot.slane %v239_v50, 1  ;;  %v240_v15 = vld [vmem:[%s4041_s8 + $0xf0] sm:$0xff] }
  0x20   : > { %v4323_v43 = vsel %vm316_vm2, %v362_v35, %v363_v38 }
  0x21   : > { %v4344_v6 = vsel %vm316_vm2, %v363_v38, %v365_v59  ;;  %v368_v38 = vrot.slane %v4350_v21, 1 }
  0x23   : > { %3299 = vmatmul.msk.f32.gmra.mxu2 %vm397_vm1, %v4092_v24 }
  0x24   : > { %3265 = vmatmul.msk.f32.gmra.mxu1 %vm397_vm1, %v4044_v8 }
  0x26   : > { %3333 = vmatmul.msk.f32.gmra.mxu3 %vm397_vm1, %v4106_v28 }
  0x27   : > { %3232 = vmatmul.msk.f32.gmra.mxu0 %vm397_vm1, %v4067_v17 }
  0x2b   : > { %3300 = vmatmul.msk.f32.gmra.mxu2 %vm397_vm1, %v4095_v25 }
  0x2c   : > { %3266 = vmatmul.msk.f32.gmra.mxu1 %vm397_vm1, %v4047_v9 }
  0x2e   : > { %3334 = vmatmul.msk.f32.gmra.mxu3 %vm397_vm1, %v4121_v31 }
  0x2f   : > { %3233 = vmatmul.msk.f32.gmra.mxu0 %vm397_vm1, %v4084_v22 }
  0x33   : > { %3301 = vmatmul.msk.f32.gmra.mxu2 %vm397_vm1, %v4126_v32 }
  0x34   : > { %3267 = vmatmul.msk.f32.gmra.mxu1 %vm397_vm1, %v4092_v24 }
  0x36   : > { %3335 = vmatmul.msk.f32.gmra.mxu3 %vm397_vm1, %v4140_v36 }
  0x37   : > { %3234 = vmatmul.msk.f32.gmra.mxu0 %vm397_vm1, %v4106_v28 }
  0x3b   : > { %3302 = vmatmul.msk.f32.gmra.mxu2 %vm397_vm1, %v4129_v33 }
  0x3c   : > { %3268 = vmatmul.msk.f32.gmra.mxu1 %vm397_vm1, %v4095_v25 }
  0x3e   : > { %3336 = vmatmul.msk.f32.gmra.mxu3 %vm397_vm1, %v4155_v39 }
  0x3f   : > { %3235 = vmatmul.msk.f32.gmra.mxu0 %vm397_vm1, %v4121_v31 }
  0x43   : > { %3303 = vmatmul.msk.f32.gmra.mxu2 %vm397_vm1, %v4160_v40 }
  0x44   : > { %3269 = vmatmul.msk.f32.gmra.mxu1 %vm397_vm1, %v4126_v32 }
  0x46   : > { %3337 = vmatmul.msk.f32.gmra.mxu3 %vm397_vm1, %v4174_v44 }
  0x47   : > { %3236 = vmatmul.msk.f32.gmra.mxu0 %vm397_vm1, %v4140_v36 }
  0x4b   : > { %3304 = vmatmul.msk.f32.gmra.mxu2 %vm397_vm1, %v4163_v41 }
  0x4c   : > { %3270 = vmatmul.msk.f32.gmra.mxu1 %vm397_vm1, %v4129_v33 }
  0x4e   : > { %3338 = vmatmul.msk.f32.gmra.mxu3 %vm397_vm1, %v4189_v47 }
  0x4f   : > { %3237 = vmatmul.msk.f32.gmra.mxu0 %vm397_vm1, %v4155_v39 }
  0x53   : > { %3305 = vmatmul.msk.f32.gmra.mxu2 %vm397_vm1, %v4194_v48 }
  0x54   : > { %3271 = vmatmul.msk.f32.gmra.mxu1 %vm397_vm1, %v4160_v40 }
  0x56   : > { %3339 = vmatmul.msk.f32.gmra.mxu3 %vm397_vm1, %v4208_v52 }
  0x57   : > { %3238 = vmatmul.msk.f32.gmra.mxu0 %vm397_vm1, %v4174_v44 }
  0x5b   : > { %3306 = vmatmul.msk.f32.gmra.mxu2 %vm397_vm1, %v4197_v49 }
  0x5c   : > { %3272 = vmatmul.msk.f32.gmra.mxu1 %vm397_vm1, %v4163_v41 }
  0x5e   : > { %3340 = vmatmul.msk.f32.gmra.mxu3 %vm397_vm1, %v4223_v55 }
  0x5f   : > { %3239 = vmatmul.msk.f32.gmra.mxu0 %vm397_vm1, %v4189_v47 }
  0x63   : > { %3307 = vmatmul.msk.f32.gmra.mxu2 %vm397_vm1, %v4228_v56 }
  0x64   : > { %3273 = vmatmul.msk.f32.gmra.mxu1 %vm397_vm1, %v4194_v48 }
  0x66   : > { %3341 = vmatmul.msk.f32.gmra.mxu3 %vm397_vm1, %v4242_v60 }
  0x67   : > { %3240 = vmatmul.msk.f32.gmra.mxu0 %vm397_vm1, %v4208_v52 }
  0x6b   : > { %3308 = vmatmul.msk.f32.gmra.mxu2 %vm397_vm1, %v4231_v57 }
  0x6c   : > { %3274 = vmatmul.msk.f32.gmra.mxu1 %vm397_vm1, %v4197_v49 }
  0x6e   : > { %3342 = vmatmul.msk.f32.gmra.mxu3 %vm397_vm1, %v4257_v63 }
  0x6f   : > { %3241 = vmatmul.msk.f32.gmra.mxu0 %vm397_vm1, %v4223_v55 }
  0x73   : > { %3309 = vmatmul.msk.f32.gmra.mxu2 %vm397_vm1, %v4262_v0 }
  0x74   : > { %3275 = vmatmul.msk.f32.gmra.mxu1 %vm397_vm1, %v4228_v56 }
  0x76   : > { %3343 = vmatmul.msk.f32.gmra.mxu3 %vm397_vm1, %v4276_v4 }
  0x77   : > { %3242 = vmatmul.msk.f32.gmra.mxu0 %vm397_vm1, %v4242_v60 }
  0x7b   : > { %3310 = vmatmul.msk.f32.gmra.mxu2 %vm397_vm1, %v4265_v1 }
  0x7c   : > { %3276 = vmatmul.msk.f32.gmra.mxu1 %vm397_vm1, %v4231_v57 }
  0x7e   : > { %3344 = vmatmul.msk.f32.gmra.mxu3 %vm397_vm1, %v4288_v7 }
  0x7f   : > { %3243 = vmatmul.msk.f32.gmra.mxu0 %vm397_vm1, %v4257_v63 }
  0x83   : > { %3311 = vmatmul.msk.f32.gmra.mxu2 %vm397_vm1, %v234_v11 }
  0x84   : > { %3277 = vmatmul.msk.f32.gmra.mxu1 %vm397_vm1, %v4262_v0 }
  0x86   : > { %3345 = vmatmul.msk.f32.gmra.mxu3 %vm397_vm1, %v4300_v20 }
  0x87   : > { %3244 = vmatmul.msk.f32.gmra.mxu0 %vm397_vm1, %v4276_v4 }
  0x8b   : > { %3312 = vmatmul.msk.f32.gmra.mxu2 %vm397_vm1, %v235_v12 }
  0x8c   : > { %3278 = vmatmul.msk.f32.gmra.mxu1 %vm397_vm1, %v4265_v1 }
  0x8e   : > { %3346 = vmatmul.msk.f32.gmra.mxu3 %vm397_vm1, %v4311_v27 }
  0x8f   : > { %3245 = vmatmul.msk.f32.gmra.mxu0 %vm397_vm1, %v4288_v7 }
  0x91   : > { %v663_v42 = vpop.f32.mrf.mxu1 }
  0x93   : > { %3313 = vmatmul.msk.f32.gmra.mxu2 %vm397_vm1, %v237_v30 }
  0x94   : > { %3279 = vmatmul.msk.f32.gmra.mxu1 %vm397_vm1, %v234_v11  ;;  %v483_v46 = vpop.f32.mrf.mxu0 }
  0x95   : > { %v664_v51 = vadd.f32 %v663_v42, %v483_v46 }
  0x96   : > { %3347 = vmatmul.msk.f32.gmra.mxu3 %vm397_vm1, %v4323_v43  ;;  %v787_v54 = vpop.f32.mrf.mxu2 }
  0x97   : > { %v883_v58 = vadd.f32 %v787_v54, %v664_v51  ;;  %3246 = vmatmul.msk.f32.gmra.mxu0 %vm397_vm1, %v4300_v20 }
  0x99   : > { %v666_v2 = vpop.f32.mrf.mxu1  ;;  %v947_v3 = vpop.f32.mrf.mxu3 }
  0x9a   : > { %v1043_v5 = vadd.f32 %v947_v3, %v883_v58 }
  0x9b   : > { %3314 = vmatmul.msk.f32.gmra.mxu2 %vm397_vm1, %v238_v34 }
  0x9c   : > { %3280 = vmatmul.msk.f32.gmra.mxu1 %vm397_vm1, %v235_v12  ;;  %v1078_v11 = vadd.f32 %v4335_v62, %v1043_v5  ;;  %v486_v14 = vpop.f32.mrf.mxu0  ;;  %v367_v12 = vrot.slane %v240_v15, 1 }
  0x9d   : > { %v667_v26 = vadd.f32 %v666_v2, %v486_v14  ;;  %v242_v2 = vld [vmem:[%s4041_s8 + $0x100] sm:$0x3] }
  0x9e   : > { %1110 = vst.msk [vmem:[%s4340_s18] sm:$0xff] %vm397_vm1, %v1078_v11  ;;  %3348 = vmatmul.msk.f32.gmra.mxu3 %vm397_vm1, %v4344_v6  ;;  %v790_v35 = vpop.f32.mrf.mxu2  ;;  %v4361_v54 = vsel %vm316_vm2, %v367_v12, %v368_v38  ;;  %v370_v14 = vrot.slane %v242_v2, 1 }
  0x9f   : > { %v884_v42 = vadd.f32 %v790_v35, %v667_v26  ;;  %3247 = vmatmul.msk.f32.gmra.mxu0 %vm397_vm1, %v4311_v27 }
  0xa1   : > { %v669_v46 = vpop.f32.mrf.mxu1  ;;  %v950_v50 = vpop.f32.mrf.mxu3 }
  0xa2   : > { %v1044_v51 = vadd.f32 %v950_v50, %v884_v42  ;;  %v4375_v42 = vsel %vm316_vm2, %v368_v38, %v370_v14  ;;  %v243_v50 = vld [vmem:[%s4041_s8 + $0x108] sm:$0xff] }
  0xa3   : > { %3315 = vmatmul.msk.f32.gmra.mxu2 %vm397_vm1, %v240_v15  ;;  %6030 = vst [vmem:[#allocation2_spill] sm:$0xff] %v4375_v42 }
  0xa4   : > { %3281 = vmatmul.msk.f32.gmra.mxu1 %vm397_vm1, %v237_v30  ;;  %v1079_v58 = vadd.f32 %v4335_v62, %v1044_v51  ;;  %v489_v59 = vpop.f32.mrf.mxu0  ;;  %v4381_v51 = vld [vmem:[%s4041_s8 + $0x110] sm:$0xff] }
  0xa5   : > { %v670_v3 = vadd.f32 %v669_v46, %v489_v59  ;;  %v373_v38 = vrot.slane %v4381_v51, 1 }
  0xa6   : > { %1111 = vst.msk [vmem:[%s4340_s18 + $0x8] sm:$0xff] %vm397_vm1, %v1079_v58  ;;  %3349 = vmatmul.msk.f32.gmra.mxu3 %vm397_vm1, %v4361_v54  ;;  %v793_v5 = vpop.f32.mrf.mxu2 }
  0xa7   : > { %v885_v11 = vadd.f32 %v793_v5, %v670_v3  ;;  %3248 = vmatmul.msk.f32.gmra.mxu0 %vm397_vm1, %v4323_v43 }
  0xa9   : > { %v672_v30 = vpop.f32.mrf.mxu1  ;;  %v953_v26 = vpop.f32.mrf.mxu3 }
  0xaa   : > { %v1045_v35 = vadd.f32 %v953_v26, %v885_v11 }
  0xab   : > { %3316 = vmatmul.msk.f32.gmra.mxu2 %vm397_vm1, %v4350_v21 }
  0xac   : > { %3282 = vmatmul.msk.f32.gmra.mxu1 %vm397_vm1, %v238_v34  ;;  %v1080_v12 = vadd.f32 %v4335_v62, %v1045_v35  ;;  %v492_v46 = vpop.f32.mrf.mxu0  ;;  %v372_v34 = vrot.slane %v243_v50, 1  ;;  %v245_v35 = vld [vmem:[%s4041_s8 + $0x118] sm:$0x3] }
  0xad   : > { %v673_v58 = vadd.f32 %v672_v30, %v492_v46 }
  0xae   : > { %1112 = vst.msk [vmem:[%s4340_s18 + $0x10] sm:$0xff] %vm397_vm1, %v1080_v12  ;;  %3350 = vmatmul.msk.f32.gmra.mxu3 %vm397_vm1, %v4375_v42  ;;  %v796_v59 = vpop.f32.mrf.mxu2  ;;  %v4392_v14 = vsel %vm316_vm2, %v372_v34, %v373_v38 }
  0xaf   : > { %v886_v2 = vadd.f32 %v796_v59, %v673_v58  ;;  %3249 = vmatmul.msk.f32.gmra.mxu0 %vm397_vm1, %v4344_v6  ;;  %6031 = vst [vmem:[#allocation3_spill] sm:$0xff] %v4392_v14  ;;  %v375_v59 = vrot.slane %v245_v35, 1 }
  0xb1   : > { %v675_v3 = vpop.f32.mrf.mxu1  ;;  %v956_v5 = vpop.f32.mrf.mxu3 }
  0xb2   : > { %v1046_v11 = vadd.f32 %v956_v5, %v886_v2 }
  0xb3   : > { %3317 = vmatmul.msk.f32.gmra.mxu2 %vm397_vm1, %v243_v50 }
  0xb4   : > { %3283 = vmatmul.msk.f32.gmra.mxu1 %vm397_vm1, %v240_v15  ;;  %v1081_v30 = vadd.f32 %v4335_v62, %v1046_v11  ;;  %v495_v26 = vpop.f32.mrf.mxu0 }
  0xb5   : > { %v676_v12 = vadd.f32 %v675_v3, %v495_v26  ;;  %v4406_v3 = vsel %vm316_vm2, %v373_v38, %v375_v59  ;;  %v4413_v26 = vld [vmem:[%s4041_s8 + $0x128] sm:$0xff] }
  0xb6   : > { %1113 = vst.msk [vmem:[%s4340_s18 + $0x18] sm:$0xff] %vm397_vm1, %v1081_v30  ;;  %3351 = vmatmul.msk.f32.gmra.mxu3 %vm397_vm1, %v4392_v14  ;;  %v799_v46 = vpop.f32.mrf.mxu2  ;;  %v246_v30 = vld [vmem:[%s4041_s8 + $0x120] sm:$0xff] }
  0xb7   : > { %v887_v58 = vadd.f32 %v799_v46, %v676_v12  ;;  %3250 = vmatmul.msk.f32.gmra.mxu0 %vm397_vm1, %v4361_v54  ;;  %6032 = vst [vmem:[#allocation4_spill] sm:$0xff] %v4406_v3  ;;  %v378_v46 = vrot.slane %v4413_v26, 1 }
  0xb9   : > { %v678_v15 = vpop.f32.mrf.mxu1  ;;  %v959_v2 = vpop.f32.mrf.mxu3 }
  0xba   : > { %v1047_v34 = vadd.f32 %v959_v2, %v887_v58 }
  0xbb   : > { %3318 = vmatmul.msk.f32.gmra.mxu2 %vm397_vm1, %v4381_v51 }
  0xbc   : > { %3284 = vmatmul.msk.f32.gmra.mxu1 %vm397_vm1, %v4350_v21  ;;  %v1082_v5 = vadd.f32 %v4335_v62, %v1047_v34  ;;  %v498_v11 = vpop.f32.mrf.mxu0  ;;  %v377_v21 = vrot.slane %v246_v30, 1 }
  0xbd   : > { %v679_v12 = vadd.f32 %v678_v15, %v498_v11  ;;  %v248_v11 = vld [vmem:[%s4041_s8 + $0x130] sm:$0x3] }
  0xbe   : > { %1114 = vst.msk [vmem:[%s4340_s18 + $0x20] sm:$0xff] %vm397_vm1, %v1082_v5  ;;  %3352 = vmatmul.msk.f32.gmra.mxu3 %vm397_vm1, %v4406_v3  ;;  %v802_v35 = vpop.f32.mrf.mxu2  ;;  %v4424_v15 = vsel %vm316_vm2, %v377_v21, %v378_v46  ;;  %v380_v21 = vrot.slane %v248_v11, 1 }
  0xbf   : > { %v888_v38 = vadd.f32 %v802_v35, %v679_v12  ;;  %3251 = vmatmul.msk.f32.gmra.mxu0 %vm397_vm1, %v4375_v42  ;;  %6033 = vst [vmem:[#allocation5_spill] sm:$0xff] %v4424_v15 }
  0xc1   : > { %v681_v58 = vpop.f32.mrf.mxu1  ;;  %v962_v59 = vpop.f32.mrf.mxu3 }
  0xc2   : > { %v1048_v2 = vadd.f32 %v962_v59, %v888_v38 }
  0xc3   : > { %3319 = vmatmul.msk.f32.gmra.mxu2 %vm397_vm1, %v246_v30 }
  0xc4   : > { %3285 = vmatmul.msk.f32.gmra.mxu1 %vm397_vm1, %v243_v50  ;;  %v1083_v34 = vadd.f32 %v4335_v62, %v1048_v2  ;;  %v501_v5 = vpop.f32.mrf.mxu0 }
  0xc5   : > { %v682_v12 = vadd.f32 %v681_v58, %v501_v5  ;;  %v4438_v58 = vsel %vm316_vm2, %v378_v46, %v380_v21 }
  0xc6   : > { %1115 = vst.msk [vmem:[%s4340_s18 + $0x28] sm:$0xff] %vm397_vm1, %v1083_v34  ;;  %3353 = vmatmul.msk.f32.gmra.mxu3 %vm397_vm1, %v4424_v15  ;;  %v805_v35 = vpop.f32.mrf.mxu2 }
  0xc7   : > { %v889_v38 = vadd.f32 %v805_v35, %v682_v12  ;;  %3252 = vmatmul.msk.f32.gmra.mxu0 %vm397_vm1, %v4392_v14  ;;  %6034 = vst [vmem:[#allocation6_spill] sm:$0xff] %v4438_v58  ;;  %v249_v12 = vld [vmem:[%s4041_s8 + $0x138] sm:$0xff]  ;;  %v4445_v35 = vld [vmem:[%s4041_s8 + $0x140] sm:$0xff] }
  0xc9   : > { %v684_v50 = vpop.f32.mrf.mxu1  ;;  %v965_v59 = vpop.f32.mrf.mxu3 }
  0xca   : > { %v1049_v2 = vadd.f32 %v965_v59, %v889_v38  ;;  %v383_v38 = vrot.slane %v4445_v35, 1 }
  0xcb   : > { %3320 = vmatmul.msk.f32.gmra.mxu2 %vm397_vm1, %v4413_v26 }
  0xcc   : > { %3286 = vmatmul.msk.f32.gmra.mxu1 %vm397_vm1, %v4381_v51  ;;  %v1084_v34 = vadd.f32 %v4335_v62, %v1049_v2  ;;  %v504_v5 = vpop.f32.mrf.mxu0  ;;  %v382_v51 = vrot.slane %v249_v12, 1 }
  0xcd   : > { %v685_v14 = vadd.f32 %v684_v50, %v504_v5 }
  0xce   : > { %1116 = vst.msk [vmem:[%s4340_s18 + $0x30] sm:$0xff] %vm397_vm1, %v1084_v34  ;;  %3354 = vmatmul.msk.f32.gmra.mxu3 %vm397_vm1, %v4438_v58  ;;  %v808_v11 = vpop.f32.mrf.mxu2  ;;  %v4456_v50 = vsel %vm316_vm2, %v382_v51, %v383_v38 }
  0xcf   : > { %v890_v46 = vadd.f32 %v808_v11, %v685_v14  ;;  %3253 = vmatmul.msk.f32.gmra.mxu0 %vm397_vm1, %v4406_v3  ;;  %6035 = vst [vmem:[#allocation7_spill] sm:$0xff] %v4456_v50  ;;  %v251_v14 = vld [vmem:[%s4041_s8 + $0x148] sm:$0x3] }
  0xd0   : > { %v385_v51 = vrot.slane %v251_v14, 1 }
  0xd1   : > { %v687_v21 = vpop.f32.mrf.mxu1  ;;  %v968_v59 = vpop.f32.mrf.mxu3 }
  0xd2   : > { %v1050_v2 = vadd.f32 %v968_v59, %v890_v46 }
  0xd3   : > { %3321 = vmatmul.msk.f32.gmra.mxu2 %vm397_vm1, %v249_v12 }
  0xd4   : > { %3287 = vmatmul.msk.f32.gmra.mxu1 %vm397_vm1, %v246_v30  ;;  %v1085_v34 = vadd.f32 %v4335_v62, %v1050_v2  ;;  %v507_v5 = vpop.f32.mrf.mxu0 }
  0xd5   : > { %v688_v11 = vadd.f32 %v687_v21, %v507_v5  ;;  %v4470_v21 = vsel %vm316_vm2, %v383_v38, %v385_v51 }
  0xd6   : > { %1117 = vst.msk [vmem:[%s4340_s18 + $0x38] sm:$0xff] %vm397_vm1, %v1085_v34  ;;  %3355 = vmatmul.msk.f32.gmra.mxu3 %vm397_vm1, %v4456_v50  ;;  %v811_v46 = vpop.f32.mrf.mxu2 }
  0xd7   : > { %v891_v59 = vadd.f32 %v811_v46, %v688_v11  ;;  %3254 = vmatmul.msk.f32.gmra.mxu0 %vm397_vm1, %v4424_v15  ;;  %6036 = vst [vmem:[#allocation8_spill] sm:$0xff] %v4470_v21  ;;  %v252_v11 = vld [vmem:[%s4041_s8 + $0x150] sm:$0xff]  ;;  %v4477_v46 = vld [vmem:[%s4041_s8 + $0x158] sm:$0xff] }
  0xd8   : > { %v388_v14 = vrot.slane %v4477_v46, 1 }
  0xd9   : > { %v690_v30 = vpop.f32.mrf.mxu1  ;;  %v971_v3 = vpop.f32.mrf.mxu3 }
  0xda   : > { %v1051_v2 = vadd.f32 %v971_v3, %v891_v59 }
  0xdb   : > { %3322 = vmatmul.msk.f32.gmra.mxu2 %vm397_vm1, %v4445_v35 }
  0xdc   : > { %3288 = vmatmul.msk.f32.gmra.mxu1 %vm397_vm1, %v4413_v26  ;;  %v1086_v34 = vadd.f32 %v4335_v62, %v1051_v2  ;;  %v510_v5 = vpop.f32.mrf.mxu0  ;;  %v387_v26 = vrot.slane %v252_v11, 1 }
  0xdd   : > { %v691_v15 = vadd.f32 %v690_v30, %v510_v5 }
  0xde   : > { %1118 = vst.msk [vmem:[%s4340_s18 + $0x40] sm:$0xff] %vm397_vm1, %v1086_v34  ;;  %3356 = vmatmul.msk.f32.gmra.mxu3 %vm397_vm1, %v4470_v21  ;;  %v814_v3 = vpop.f32.mrf.mxu2  ;;  %v4488_v30 = vsel %vm316_vm2, %v387_v26, %v388_v14 }
  0xdf   : > { %v892_v38 = vadd.f32 %v814_v3, %v691_v15  ;;  %3255 = vmatmul.msk.f32.gmra.mxu0 %vm397_vm1, %v4438_v58  ;;  %6037 = vst [vmem:[#allocation9_spill] sm:$0xff] %v4488_v30  ;;  %v254_v15 = vld [vmem:[%s4041_s8 + $0x160] sm:$0x3] }
  0xe0   : > { %v390_v26 = vrot.slane %v254_v15, 1 }
  0xe1   : > { %v693_v59 = vpop.f32.mrf.mxu1  ;;  %v974_v51 = vpop.f32.mrf.mxu3 }
  0xe2   : > { %v1052_v2 = vadd.f32 %v974_v51, %v892_v38 }
  0xe3   : > { %3323 = vmatmul.msk.f32.gmra.mxu2 %vm397_vm1, %v252_v11 }
  0xe4   : > { %3289 = vmatmul.msk.f32.gmra.mxu1 %vm397_vm1, %v249_v12  ;;  %v1087_v34 = vadd.f32 %v4335_v62, %v1052_v2  ;;  %v513_v5 = vpop.f32.mrf.mxu0 }
  0xe5   : > { %v694_v3 = vadd.f32 %v693_v59, %v513_v5  ;;  %v4502_v59 = vsel %vm316_vm2, %v388_v14, %v390_v26 }
  0xe6   : > { %1119 = vst.msk [vmem:[%s4340_s18 + $0x48] sm:$0xff] %vm397_vm1, %v1087_v34  ;;  %3357 = vmatmul.msk.f32.gmra.mxu3 %vm397_vm1, %v4488_v30  ;;  %v817_v38 = vpop.f32.mrf.mxu2 }
  0xe7   : > { %v893_v51 = vadd.f32 %v817_v38, %v694_v3  ;;  %3256 = vmatmul.msk.f32.gmra.mxu0 %vm397_vm1, %v4456_v50  ;;  %v255_v3 = vld [vmem:[%s4041_s8 + $0x168] sm:$0xff]  ;;  %v4509_v38 = vld [vmem:[%s4041_s8 + $0x170] sm:$0xff] }
  0xe8   : > { %v393_v15 = vrot.slane %v4509_v38, 1 }
  0xe9   : > { %v696_v12 = vpop.f32.mrf.mxu1  ;;  %v977_v58 = vpop.f32.mrf.mxu3 }
  0xea   : > { %v1053_v2 = vadd.f32 %v977_v58, %v893_v51 }
  0xeb   : > { %3324 = vmatmul.msk.f32.gmra.mxu2 %vm397_vm1, %v4477_v46 }
  0xec   : > { %3290 = vmatmul.msk.f32.gmra.mxu1 %vm397_vm1, %v4445_v35  ;;  %v1088_v34 = vadd.f32 %v4335_v62, %v1053_v2  ;;  %v516_v5 = vpop.f32.mrf.mxu0  ;;  %v392_v35 = vrot.slane %v255_v3, 1 }
  0xed   : > { %v697_v50 = vadd.f32 %v696_v12, %v516_v5 }
  0xee   : > { %1120 = vst.msk [vmem:[%s4340_s18 + $0x50] sm:$0xff] %vm397_vm1, %v1088_v34  ;;  %3358 = vmatmul.msk.f32.gmra.mxu3 %vm397_vm1, %v4502_v59  ;;  %v820_v58 = vpop.f32.mrf.mxu2  ;;  %v4520_v12 = vsel %vm316_vm2, %v392_v35, %v393_v15  ;;  %v3633_v35 = vld [vmem:[%s5947_s1 + $0x2c] sm:$0xf] }
  0xef   : > { %v894_v14 = vadd.f32 %v820_v58, %v697_v50  ;;  %3257 = vmatmul.msk.f32.gmra.mxu0 %vm397_vm1, %v4470_v21  ;;  %v257_v50 = vld [vmem:[%s4041_s8 + $0x178] sm:$0x3]  ;;  %3634 = vmatpush.msk.msra.mxu3 %vm462_vm0, %v3633_v35  ;;  %v259_v35 = vld [vmem:[%s4041_s8 + $0x188] sm:$0xff] }
  0xf1   : > { %v699_v51 = vpop.f32.mrf.mxu1  ;;  %v980_v26 = vpop.f32.mrf.mxu3 }
  0xf2   : > { %v1054_v2 = vadd.f32 %v980_v26, %v894_v14  ;;  %v3599_v14 = vld [vmem:[%s5947_s1 + $0x28] sm:$0xf]  ;;  %v3532_v26 = vld [vmem:[%s5947_s1 + $0x24] sm:$0xf] }
  0xf3   : > { %3325 = vmatmul.msk.f32.gmra.mxu2 %vm397_vm1, %v255_v3  ;;  %3533 = vmatpush.msk.msra.mxu0 %vm462_vm0, %v3532_v26 }
  0xf4   : > { %3291 = vmatmul.msk.f32.gmra.mxu1 %vm397_vm1, %v252_v11  ;;  %v1089_v34 = vadd.f32 %v4335_v62, %v1054_v2  ;;  %v519_v5 = vpop.f32.mrf.mxu0  ;;  %3600 = vmatpush.msk.msra.mxu2 %vm462_vm0, %v3599_v14  ;;  %v3531_v2 = vld [vmem:[%s5947_s1 + $0x20] sm:$0xf] }
  0xf5   : > { %v700_v58 = vadd.f32 %v699_v51, %v519_v5  ;;  %v395_v51 = vrot.slane %v257_v50, 1  ;;  %3566 = vmatpush.msk.msra.mxu1 %vm462_vm0, %v3531_v2 }
  0xf6   : > { %1121 = vst.msk [vmem:[%s4340_s18 + $0x58] sm:$0xff] %vm397_vm1, %v1089_v34  ;;  %3359 = vmatmul.msk.f32.gmra.mxu3 %vm397_vm1, %v4520_v12  ;;  %v823_v21 = vpop.f32.mrf.mxu2 }
  0xf7   : > { %v895_v11 = vadd.f32 %v823_v21, %v700_v58  ;;  %3258 = vmatmul.msk.f32.gmra.mxu0 %vm397_vm1, %v4488_v30  ;;  %v4550_v50 = vsel %vm316_vm2, %v393_v15, %v395_v51  ;;  %v258_v30 = vld [vmem:[%s4041_s8 + $0x180] sm:$0xff] }
  0xf8   : > { %v918_v15 = vrot.slane %v258_v30, 1 }
  0xf9   : > { %v702_v34 = vpop.f32.mrf.mxu1  ;;  %v983_v21 = vpop.f32.mrf.mxu3 }
  0xfa   : > { %v1055_v5 = vadd.f32 %v983_v21, %v895_v11 }
  0xfb   : > { %3326 = vmatmul.msk.f32.gmra.mxu2 %vm397_vm1, %v4509_v38 }
  0xfc   : > { %3292 = vmatmul.msk.f32.gmra.mxu1 %vm397_vm1, %v4477_v46  ;;  %v1090_v58 = vadd.f32 %v4335_v62, %v1055_v5  ;;  %v522_v14 = vpop.f32.mrf.mxu0  ;;  %v919_v46 = vrot.slane %v259_v35, 1 }
  0xfd   : > { %v703_v42 = vadd.f32 %v702_v34, %v522_v14  ;;  %v260_v14 = vld [vmem:[%s4041_s8 + $0x190] sm:$0x3] }
  0xfe   : > { %1122 = vst.msk [vmem:[%s4340_s18 + $0x60] sm:$0xff] %vm397_vm1, %v1090_v58  ;;  %3360 = vmatmul.msk.f32.gmra.mxu3 %vm397_vm1, %v4550_v50  ;;  %v826_v11 = vpop.f32.mrf.mxu2  ;;  %v4565_v34 = vsel %vm316_vm2, %v918_v15, %v919_v46 }
  0xff   : > { %v896_v26 = vadd.f32 %v826_v11, %v703_v42  ;;  %3259 = vmatmul.msk.f32.gmra.mxu0 %vm397_vm1, %v4502_v59  ;;  %6038 = vst [vmem:[#allocation10_spill] sm:$0xff] %v4565_v34 }
 0x101   : > { %v705_v51 = vpop.f32.mrf.mxu1  ;;  %v986_v2 = vpop.f32.mrf.mxu3 }
 0x102   : > { %v1056_v21 = vadd.f32 %v986_v2, %v896_v26 }
 0x103   : > { %3327 = vmatmul.msk.f32.gmra.mxu2 %vm397_vm1, %v258_v30  ;;  %v921_v30 = vrot.slane %v260_v14, 1 }
 0x104   : > { %3293 = vmatmul.msk.f32.gmra.mxu1 %vm397_vm1, %v255_v3  ;;  %v1091_v5 = vadd.f32 %v4335_v62, %v1056_v21  ;;  %v525_v58 = vpop.f32.mrf.mxu0 }
 0x105   : > { %v706_v42 = vadd.f32 %v705_v51, %v525_v58  ;;  %v4578_v21 = vsel %vm316_vm2, %v919_v46, %v921_v30  ;;  %v1153_v46 = vrot.slane %v4047_v9, 2 }
 0x106   : > { %1123 = vst.msk [vmem:[%s4340_s18 + $0x68] sm:$0xff] %vm397_vm1, %v1091_v5  ;;  %3361 = vmatmul.msk.f32.gmra.mxu3 %vm397_vm1, %v4565_v34  ;;  %v829_v11 = vpop.f32.mrf.mxu2 }
 0x107   : > { %v897_v26 = vadd.f32 %v829_v11, %v706_v42  ;;  %3260 = vmatmul.msk.f32.gmra.mxu0 %vm397_vm1, %v4520_v12  ;;  %v1147_v11 = vrot.slane %v4050_v10, 2 }
 0x109   : > { %v708_v15 = vpop.f32.mrf.mxu1  ;;  %v989_v2 = vpop.f32.mrf.mxu3 }
 0x10a   : > { %v1057_v3 = vadd.f32 %v989_v2, %v897_v26  ;;  %v1148_v26 = vrot.slane %v4057_v13, 2 }
 0x10b   : > { %3328 = vmatmul.msk.f32.gmra.mxu2 %vm397_vm1, %v259_v35  ;;  %v1152_v35 = vrot.slane %v4044_v8, 2 }
 0x10c   : > { %3294 = vmatmul.msk.f32.gmra.mxu1 %vm397_vm1, %v4509_v38  ;;  %v1092_v51 = vadd.f32 %v4335_v62, %v1057_v3  ;;  %v528_v5 = vpop.f32.mrf.mxu0  ;;  %v1149_v3 = vsel %vm1146_vm3, %v1147_v11, %v1148_v26 }
 0x10d   : > { %v709_v58 = vadd.f32 %v708_v15, %v528_v5  ;;  %v4596_v2 = vsel %vm1146_vm3, %v1152_v35, %v1153_v46  ;;  %v1155_v5 = vrot.slane %v4064_v16, 2 }
 0x10e   : > { %1124 = vst.msk [vmem:[%s4340_s18 + $0x70] sm:$0xff] %vm397_vm1, %v1092_v51  ;;  %3362 = vmatmul.msk.f32.gmra.mxu3 %vm397_vm1, %v4578_v21  ;;  %v832_v14 = vpop.f32.mrf.mxu2 }
 0x10f   : > { %v898_v42 = vadd.f32 %v832_v14, %v709_v58  ;;  %3261 = vmatmul.msk.f32.gmra.mxu0 %vm397_vm1, %v4550_v50  ;;  %6039 = vst [vmem:[#allocation11_spill] sm:$0xff] %v4596_v2  ;;  %v4612_v35 = vsel %vm1146_vm3, %v1153_v46, %v1155_v5  ;;  %v1157_v46 = vrot.slane %v4092_v24, 2  ;;  %v1160_v5 = vrot.slane %v4111_v29, 2 }
 0x110   : > { %6040 = vst [vmem:[#allocation12_spill] sm:$0xff] %v4612_v35 }
 0x111   : > { %v711_v38 = vpop.f32.mrf.mxu1  ;;  %v992_v30 = vpop.f32.mrf.mxu3 }
 0x112   : > { %v1058_v15 = vadd.f32 %v992_v30, %v898_v42 }
 0x113   : > { %3433 = vmatmul.msk.f32.vlgmr.msrb.gmra.mxu2 %vm397_vm1, %v4067_v17 }
 0x114   : > { %3399 = vmatmul.msk.f32.vlgmr.msrb.gmra.mxu1 %vm397_vm1, %v4075_v19  ;;  %v1093_v8 = vadd.f32 %v4335_v62, %v1058_v15  ;;  %v531_v9 = vpop.f32.mrf.mxu0  ;;  %v1150_v19 = vrot.slane %v4070_v18, 2 }
 0x115   : > { %v712_v51 = vadd.f32 %v711_v38, %v531_v9 }
 0x116   : > { %1125 = vst.msk [vmem:[%s4340_s18 + $0x78] sm:$0xff] %vm397_vm1, %v1093_v8  ;;  %3467 = vmatmul.msk.f32.vlgmr.msrb.gmra.mxu3 %vm397_vm1, %v4596_v2  ;;  %v835_v10 = vpop.f32.mrf.mxu2  ;;  %v1151_v30 = vsel %vm1146_vm3, %v1148_v26, %v1150_v19 }
 0x117   : > { %v899_v13 = vadd.f32 %v835_v10, %v712_v51  ;;  %3366 = vmatmul.msk.f32.vlgmr.msrb.gmra.mxu0 %vm397_vm1, %v1149_v3 }
 0x119   : > { %v714_v58 = vpop.f32.mrf.mxu1  ;;  %v995_v14 = vpop.f32.mrf.mxu3 }
 0x11a   : > { %v1059_v42 = vadd.f32 %v995_v14, %v899_v13 }
 0x11b   : > { %3434 = vmatmul.msk.f32.gmra.mxu2 %vm397_vm1, %v4084_v22 }
 0x11c   : > { %3400 = vmatmul.msk.f32.gmra.mxu1 %vm397_vm1, %v4089_v23  ;;  %v1094_v38 = vadd.f32 %v4335_v62, %v1059_v42  ;;  %v534_v11 = vpop.f32.mrf.mxu0  ;;  %v1158_v23 = vrot.slane %v4095_v25, 2 }
 0x11d   : > { %v715_v16 = vadd.f32 %v714_v58, %v534_v11 }
 0x11e   : > { %1126 = vst.msk [vmem:[%s4340_s18 + $0x80] sm:$0xff] %vm397_vm1, %v1094_v38  ;;  %3468 = vmatmul.msk.f32.gmra.mxu3 %vm397_vm1, %v4612_v35  ;;  %v838_v18 = vpop.f32.mrf.mxu2  ;;  %v4628_v26 = vsel %vm1146_vm3, %v1157_v46, %v1158_v23  ;;  %v4643_v42 = vsel %vm1146_vm3, %v1158_v23, %v1160_v5 }
 0x11f   : > { %v900_v15 = vadd.f32 %v838_v18, %v715_v16  ;;  %3367 = vmatmul.msk.f32.gmra.mxu0 %vm397_vm1, %v1151_v30  ;;  %6041 = vst [vmem:[#allocation13_spill] sm:$0xff] %v4628_v26  ;;  %v1162_v18 = vrot.slane %v4126_v32, 2 }
 0x120   : > { %6042 = vst [vmem:[#allocation14_spill] sm:$0xff] %v4643_v42 }
 0x121   : > { %v717_v8 = vpop.f32.mrf.mxu1  ;;  %v998_v9 = vpop.f32.mrf.mxu3 }
 0x122   : > { %v1060_v3 = vadd.f32 %v998_v9, %v900_v15  ;;  %v1163_v15 = vrot.slane %v4129_v33, 2 }
 0x123   : > { %3435 = vmatmul.msk.f32.gmra.mxu2 %vm397_vm1, %v4106_v28 }
 0x124   : > { %3401 = vmatmul.msk.f32.gmra.mxu1 %vm397_vm1, %v4067_v17  ;;  %v1095_v51 = vadd.f32 %v4335_v62, %v1060_v3  ;;  %v537_v10 = vpop.f32.mrf.mxu0  ;;  %v4659_v9 = vsel %vm1146_vm3, %v1162_v18, %v1163_v15 }
 0x125   : > { %v718_v13 = vadd.f32 %v717_v8, %v537_v10  ;;  %6043 = vst [vmem:[#allocation15_spill] sm:$0xff] %v4659_v9 }
 0x126   : > { %1127 = vst.msk [vmem:[%s4340_s18 + $0x88] sm:$0xff] %vm397_vm1, %v1095_v51  ;;  %3469 = vmatmul.msk.f32.gmra.mxu3 %vm397_vm1, %v4628_v26  ;;  %v841_v24 = vpop.f32.mrf.mxu2 }
 0x127   : > { %v901_v25 = vadd.f32 %v841_v24, %v718_v13  ;;  %3368 = vmatmul.msk.f32.gmra.mxu0 %vm397_vm1, %v4596_v2  ;;  %v1165_v13 = vrot.slane %v4145_v37, 2 }
 0x129   : > { %v720_v58 = vpop.f32.mrf.mxu1  ;;  %v1001_v19 = vpop.f32.mrf.mxu3 }
 0x12a   : > { %v1061_v14 = vadd.f32 %v1001_v19, %v901_v25 }
 0x12b   : > { %3436 = vmatmul.msk.f32.gmra.mxu2 %vm397_vm1, %v4121_v31 }
 0x12c   : > { %3402 = vmatmul.msk.f32.gmra.mxu1 %vm397_vm1, %v4084_v22  ;;  %v1096_v38 = vadd.f32 %v4335_v62, %v1061_v14  ;;  %v540_v11 = vpop.f32.mrf.mxu0 }
 0x12d   : > { %v721_v30 = vadd.f32 %v720_v58, %v540_v11  ;;  %v4674_v58 = vsel %vm1146_vm3, %v1163_v15, %v1165_v13 }
 0x12e   : > { %1128 = vst.msk [vmem:[%s4340_s18 + $0x90] sm:$0xff] %vm397_vm1, %v1096_v38  ;;  %3470 = vmatmul.msk.f32.gmra.mxu3 %vm397_vm1, %v4643_v42  ;;  %v844_v29 = vpop.f32.mrf.mxu2 }
 0x12f   : > { %v902_v16 = vadd.f32 %v844_v29, %v721_v30  ;;  %3369 = vmatmul.msk.f32.gmra.mxu0 %vm397_vm1, %v4612_v35  ;;  %6044 = vst [vmem:[#allocation16_spill] sm:$0xff] %v4674_v58  ;;  %v1167_v30 = vrot.slane %v4160_v40, 2  ;;  %v1168_v29 = vrot.slane %v4163_v41, 2 }
 0x131   : > { %v723_v46 = vpop.f32.mrf.mxu1  ;;  %v1004_v23 = vpop.f32.mrf.mxu3 }
 0x132   : > { %v1062_v8 = vadd.f32 %v1004_v23, %v902_v16 }
 0x133   : > { %3437 = vmatmul.msk.f32.gmra.mxu2 %vm397_vm1, %v4140_v36 }
 0x134   : > { %3403 = vmatmul.msk.f32.gmra.mxu1 %vm397_vm1, %v4106_v28  ;;  %v1097_v3 = vadd.f32 %v4335_v62, %v1062_v8  ;;  %v543_v51 = vpop.f32.mrf.mxu0 }
 0x135   : > { %v724_v10 = vadd.f32 %v723_v46, %v543_v51  ;;  %v4690_v46 = vsel %vm1146_vm3, %v1167_v30, %v1168_v29  ;;  %v1170_v51 = vrot.slane %v4179_v45, 2 }
 0x136   : > { %1129 = vst.msk [vmem:[%s4340_s18 + $0x98] sm:$0xff] %vm397_vm1, %v1097_v3  ;;  %3471 = vmatmul.msk.f32.gmra.mxu3 %vm397_vm1, %v4659_v9  ;;  %v847_v32 = vpop.f32.mrf.mxu2 }
 0x137   : > { %v903_v33 = vadd.f32 %v847_v32, %v724_v10  ;;  %3370 = vmatmul.msk.f32.gmra.mxu0 %vm397_vm1, %v4628_v26  ;;  %6045 = vst [vmem:[#allocation17_spill] sm:$0xff] %v4690_v46  ;;  %v4705_v13 = vsel %vm1146_vm3, %v1168_v29, %v1170_v51 }
 0x138   : > { %6046 = vst [vmem:[#allocation18_spill] sm:$0xff] %v4705_v13 }
 0x139   : > { %v726_v24 = vpop.f32.mrf.mxu1  ;;  %v1007_v25 = vpop.f32.mrf.mxu3 }
 0x13a   : > { %v1063_v5 = vadd.f32 %v1007_v25, %v903_v33 }
 0x13b   : > { %3438 = vmatmul.msk.f32.gmra.mxu2 %vm397_vm1, %v4155_v39 }
 0x13c   : > { %3404 = vmatmul.msk.f32.gmra.mxu1 %vm397_vm1, %v4121_v31  ;;  %v1098_v19 = vadd.f32 %v4335_v62, %v1063_v5  ;;  %v546_v14 = vpop.f32.mrf.mxu0 }
 0x13d   : > { %v727_v38 = vadd.f32 %v726_v24, %v546_v14  ;;  %v1172_v14 = vrot.slane %v4194_v48, 2 }
 0x13e   : > { %1130 = vst.msk [vmem:[%s4340_s18 + $0xa0] sm:$0xff] %vm397_vm1, %v1098_v19  ;;  %3472 = vmatmul.msk.f32.gmra.mxu3 %vm397_vm1, %v4674_v58  ;;  %v850_v37 = vpop.f32.mrf.mxu2 }
 0x13f   : > { %v904_v11 = vadd.f32 %v850_v37, %v727_v38  ;;  %3371 = vmatmul.msk.f32.gmra.mxu0 %vm397_vm1, %v4643_v42  ;;  %v1173_v38 = vrot.slane %v4197_v49, 2 }
 0x141   : > { %v729_v16 = vpop.f32.mrf.mxu1  ;;  %v1010_v18 = vpop.f32.mrf.mxu3  ;;  %v4721_v29 = vsel %vm1146_vm3, %v1172_v14, %v1173_v38 }
 0x142   : > { %v1064_v15 = vadd.f32 %v1010_v18, %v904_v11  ;;  %6047 = vst [vmem:[#allocation19_spill] sm:$0xff] %v4721_v29 }
 0x143   : > { %3439 = vmatmul.msk.f32.gmra.mxu2 %vm397_vm1, %v4174_v44 }
 0x144   : > { %3405 = vmatmul.msk.f32.gmra.mxu1 %vm397_vm1, %v4140_v36  ;;  %v1099_v23 = vadd.f32 %v4335_v62, %v1064_v15  ;;  %v549_v8 = vpop.f32.mrf.mxu0 }
 0x145   : > { %v730_v3 = vadd.f32 %v729_v16, %v549_v8 }
 0x146   : > { %1131 = vst.msk [vmem:[%s4340_s18 + $0xa8] sm:$0xff] %vm397_vm1, %v1099_v23  ;;  %3473 = vmatmul.msk.f32.gmra.mxu3 %vm397_vm1, %v4690_v46  ;;  %v853_v40 = vpop.f32.mrf.mxu2  ;;  %v1175_v23 = vrot.slane %v4213_v53, 2 }
 0x147   : > { %v905_v41 = vadd.f32 %v853_v40, %v730_v3  ;;  %3372 = vmatmul.msk.f32.gmra.mxu0 %vm397_vm1, %v4659_v9 }
 0x149   : > { %v732_v10 = vpop.f32.mrf.mxu1  ;;  %v1013_v32 = vpop.f32.mrf.mxu3 }
 0x14a   : > { %v1065_v33 = vadd.f32 %v1013_v32, %v905_v41  ;;  %v4736_v41 = vsel %vm1146_vm3, %v1173_v38, %v1175_v23 }
 0x14b   : > { %3440 = vmatmul.msk.f32.gmra.mxu2 %vm397_vm1, %v4189_v47  ;;  %6048 = vst [vmem:[#allocation20_spill] sm:$0xff] %v4736_v41 }
 0x14c   : > { %3406 = vmatmul.msk.f32.gmra.mxu1 %vm397_vm1, %v4155_v39  ;;  %v1100_v24 = vadd.f32 %v4335_v62, %v1065_v33  ;;  %v552_v25 = vpop.f32.mrf.mxu0 }
 0x14d   : > { %v733_v5 = vadd.f32 %v732_v10, %v552_v25  ;;  %v1178_v25 = vrot.slane %v4231_v57, 2 }
 0x14e   : > { %1132 = vst.msk [vmem:[%s4340_s18 + $0xb0] sm:$0xff] %vm397_vm1, %v1100_v24  ;;  %3474 = vmatmul.msk.f32.gmra.mxu3 %vm397_vm1, %v4705_v13  ;;  %v856_v45 = vpop.f32.mrf.mxu2  ;;  %v1177_v24 = vrot.slane %v4228_v56, 2 }
 0x14f   : > { %v906_v19 = vadd.f32 %v856_v45, %v733_v5  ;;  %3373 = vmatmul.msk.f32.gmra.mxu0 %vm397_vm1, %v4674_v58  ;;  %v6070_v58 = vld [vmem:[#allocation8_spill] sm:$0xff] }
 0x150   : > { %v4752_v14 = vsel %vm1146_vm3, %v1177_v24, %v1178_v25 }
 0x151   : > { %v735_v37 = vpop.f32.mrf.mxu1  ;;  %v1016_v11 = vpop.f32.mrf.mxu3  ;;  %6049 = vst [vmem:[#allocation21_spill] sm:$0xff] %v4752_v14 }
 0x152   : > { %v1066_v30 = vadd.f32 %v1016_v11, %v906_v19 }
 0x153   : > { %3441 = vmatmul.msk.f32.gmra.mxu2 %vm397_vm1, %v4208_v52 }
 0x154   : > { %3407 = vmatmul.msk.f32.gmra.mxu1 %vm397_vm1, %v4174_v44  ;;  %v1101_v16 = vadd.f32 %v4335_v62, %v1066_v30  ;;  %v555_v18 = vpop.f32.mrf.mxu0  ;;  %v1180_v30 = vrot.slane %v4247_v61, 2 }
 0x155   : > { %v736_v15 = vadd.f32 %v735_v37, %v555_v18 }
 0x156   : > { %1133 = vst.msk [vmem:[%s4340_s18 + $0xb8] sm:$0xff] %vm397_vm1, %v1101_v16  ;;  %3475 = vmatmul.msk.f32.gmra.mxu3 %vm397_vm1, %v4721_v29  ;;  %v859_v48 = vpop.f32.mrf.mxu2 }
 0x157   : > { %v907_v49 = vadd.f32 %v859_v48, %v736_v15  ;;  %3374 = vmatmul.msk.f32.gmra.mxu0 %vm397_vm1, %v4690_v46  ;;  %v4767_v48 = vsel %vm1146_vm3, %v1178_v25, %v1180_v30 }
 0x158   : > { %6050 = vst [vmem:[#allocation22_spill] sm:$0xff] %v4767_v48 }
 0x159   : > { %v738_v8 = vpop.f32.mrf.mxu1  ;;  %v1019_v3 = vpop.f32.mrf.mxu3 }
 0x15a   : > { %v1067_v40 = vadd.f32 %v1019_v3, %v907_v49 }
 0x15b   : > { %3442 = vmatmul.msk.f32.gmra.mxu2 %vm397_vm1, %v4223_v55 }
 0x15c   : > { %3408 = vmatmul.msk.f32.gmra.mxu1 %vm397_vm1, %v4189_v47  ;;  %v1102_v51 = vadd.f32 %v4335_v62, %v1067_v40  ;;  %v558_v10 = vpop.f32.mrf.mxu0  ;;  %v1182_v40 = vrot.slane %v4262_v0, 2 }
 0x15d   : > { %v739_v32 = vadd.f32 %v738_v8, %v558_v10 }
 0x15e   : > { %1134 = vst.msk [vmem:[%s4340_s18 + $0xc0] sm:$0xff] %vm397_vm1, %v1102_v51  ;;  %3476 = vmatmul.msk.f32.gmra.mxu3 %vm397_vm1, %v4736_v41  ;;  %v862_v53 = vpop.f32.mrf.mxu2  ;;  %v1183_v51 = vrot.slane %v4265_v1, 2 }
 0x15f   : > { %v908_v33 = vadd.f32 %v862_v53, %v739_v32  ;;  %3375 = vmatmul.msk.f32.gmra.mxu0 %vm397_vm1, %v4705_v13 }
 0x161   : > { %v741_v5 = vpop.f32.mrf.mxu1  ;;  %v1022_v45 = vpop.f32.mrf.mxu3 }
 0x162   : > { %v1068_v19 = vadd.f32 %v1022_v45, %v908_v33  ;;  %v4783_v33 = vsel %vm1146_vm3, %v1182_v40, %v1183_v51  ;;  %v3896_v45 = vld [vmem:[%s4041_s8 + $0xb8] sm:$0x3] }
 0x163   : > { %3443 = vmatmul.msk.f32.gmra.mxu2 %vm397_vm1, %v4242_v60  ;;  %6051 = vst [vmem:[#allocation23_spill] sm:$0xff] %v4783_v33 }
 0x164   : > { %3409 = vmatmul.msk.f32.gmra.mxu1 %vm397_vm1, %v4208_v52  ;;  %v1103_v38 = vadd.f32 %v4335_v62, %v1068_v19  ;;  %v561_v37 = vpop.f32.mrf.mxu0  ;;  %v1185_v19 = vrot.slane %v3896_v45, 2 }
 0x165   : > { %v742_v11 = vadd.f32 %v741_v5, %v561_v37 }
 0x166   : > { %1135 = vst.msk [vmem:[%s4340_s18 + $0xc8] sm:$0xff] %vm397_vm1, %v1103_v38  ;;  %3477 = vmatmul.msk.f32.gmra.mxu3 %vm397_vm1, %v4752_v14  ;;  %v865_v56 = vpop.f32.mrf.mxu2 }
 0x167   : > { %v909_v57 = vadd.f32 %v865_v56, %v742_v11  ;;  %3376 = vmatmul.msk.f32.gmra.mxu0 %vm397_vm1, %v4721_v29  ;;  %v4798_v56 = vsel %vm1146_vm3, %v1183_v51, %v1185_v19 }
 0x168   : > { %6052 = vst [vmem:[#allocation24_spill] sm:$0xff] %v4798_v56 }
 0x169   : > { %v744_v16 = vpop.f32.mrf.mxu1  ;;  %v1025_v18 = vpop.f32.mrf.mxu3 }
 0x16a   : > { %v1069_v15 = vadd.f32 %v1025_v18, %v909_v57 }
 0x16b   : > { %3444 = vmatmul.msk.f32.gmra.mxu2 %vm397_vm1, %v4257_v63 }
 0x16c   : > { %3410 = vmatmul.msk.f32.gmra.mxu1 %vm397_vm1, %v4223_v55  ;;  %v1104_v49 = vadd.f32 %v4335_v62, %v1069_v15  ;;  %v564_v23 = vpop.f32.mrf.mxu0 }
 0x16d   : > { %v745_v8 = vadd.f32 %v744_v16, %v564_v23 }
 0x16e   : > { %1136 = vst.msk [vmem:[%s4340_s18 + $0xd0] sm:$0xff] %vm397_vm1, %v1104_v49  ;;  %3478 = vmatmul.msk.f32.gmra.mxu3 %vm397_vm1, %v4767_v48  ;;  %v868_v61 = vpop.f32.mrf.mxu2  ;;  %v4810_v49 = vld [vmem:[%s4041_s8 + $0xc0] sm:$0xff] }
 0x16f   : > { %v910_v3 = vadd.f32 %v868_v61, %v745_v8  ;;  %3377 = vmatmul.msk.f32.gmra.mxu0 %vm397_vm1, %v4736_v41  ;;  %v1187_v23 = vrot.slane %v4810_v49, 2  ;;  %v4814_v8 = vld [vmem:[%s4041_s8 + $0xc8] sm:$0xff]  ;;  %v6066_v41 = vld [vmem:[#allocation6_spill] sm:$0xff] }
 0x170   : > { %v1188_v61 = vrot.slane %v4814_v8, 2 }
 0x171   : > { %v747_v10 = vpop.f32.mrf.mxu1  ;;  %v1028_v32 = vpop.f32.mrf.mxu3 }
 0x172   : > { %v1070_v53 = vadd.f32 %v1028_v32, %v910_v3 }
 0x173   : > { %3445 = vmatmul.msk.f32.gmra.mxu2 %vm397_vm1, %v4276_v4 }
 0x174   : > { %3411 = vmatmul.msk.f32.gmra.mxu1 %vm397_vm1, %v4242_v60  ;;  %v1105_v24 = vadd.f32 %v4335_v62, %v1070_v53  ;;  %v567_v25 = vpop.f32.mrf.mxu0 }
 0x175   : > { %v748_v5 = vadd.f32 %v747_v10, %v567_v25  ;;  %v4820_v10 = vsel %vm1146_vm3, %v1187_v23, %v1188_v61 }
 0x176   : > { %1137 = vst.msk [vmem:[%s4340_s18 + $0xd8] sm:$0xff] %vm397_vm1, %v1105_v24  ;;  %3479 = vmatmul.msk.f32.gmra.mxu3 %vm397_vm1, %v4783_v33  ;;  %v871_v0 = vpop.f32.mrf.mxu2 }
 0x177   : > { %v911_v1 = vadd.f32 %v871_v0, %v748_v5  ;;  %3378 = vmatmul.msk.f32.gmra.mxu0 %vm397_vm1, %v4752_v14  ;;  %6053 = vst [vmem:[#allocation25_spill] sm:$0xff] %v4820_v10  ;;  %v3899_v0 = vld [vmem:[%s4041_s8 + $0xd0] sm:$0x3] }
 0x179   : > { %v750_v38 = vpop.f32.mrf.mxu1  ;;  %v1031_v37 = vpop.f32.mrf.mxu3 }
 0x17a   : > { %v1071_v11 = vadd.f32 %v1031_v37, %v911_v1  ;;  %v1190_v1 = vrot.slane %v3899_v0, 2 }
 0x17b   : > { %3446 = vmatmul.msk.f32.gmra.mxu2 %vm397_vm1, %v4288_v7 }
 0x17c   : > { %3412 = vmatmul.msk.f32.gmra.mxu1 %vm397_vm1, %v4257_v63  ;;  %v1106_v57 = vadd.f32 %v4335_v62, %v1071_v11  ;;  %v570_v30 = vpop.f32.mrf.mxu0  ;;  %v4835_v37 = vsel %vm1146_vm3, %v1188_v61, %v1190_v1  ;;  %v4851_v61 = vld [vmem:[%s4041_s8 + $0xe0] sm:$0xff] }
 0x17d   : > { %v751_v16 = vadd.f32 %v750_v38, %v570_v30  ;;  %6054 = vst [vmem:[#allocation26_spill] sm:$0xff] %v4835_v37 }
 0x17e   : > { %1138 = vst.msk [vmem:[%s4340_s18 + $0xe0] sm:$0xff] %vm397_vm1, %v1106_v57  ;;  %3480 = vmatmul.msk.f32.gmra.mxu3 %vm397_vm1, %v4798_v56  ;;  %v874_v18 = vpop.f32.mrf.mxu2 }
 0x17f   : > { %v912_v15 = vadd.f32 %v874_v18, %v751_v16  ;;  %3379 = vmatmul.msk.f32.gmra.mxu0 %vm397_vm1, %v4767_v48 }
 0x181   : > { %v753_v3 = vpop.f32.mrf.mxu1  ;;  %v1034_v40 = vpop.f32.mrf.mxu3 }
 0x182   : > { %v1072_v51 = vadd.f32 %v1034_v40, %v912_v15  ;;  %v4847_v15 = vld [vmem:[%s4041_s8 + $0xd8] sm:$0xff] }
 0x183   : > { %3447 = vmatmul.msk.f32.gmra.mxu2 %vm397_vm1, %v4300_v20  ;;  %v1192_v23 = vrot.slane %v4847_v15, 2 }
 0x184   : > { %3413 = vmatmul.msk.f32.gmra.mxu1 %vm397_vm1, %v4276_v4  ;;  %v1107_v32 = vadd.f32 %v4335_v62, %v1072_v51  ;;  %v573_v53 = vpop.f32.mrf.mxu0 }
 0x185   : > { %v754_v24 = vadd.f32 %v753_v3, %v573_v53  ;;  %v4864_v53 = vld [vmem:[%s5948_s2] ss:$0 sm:$0xff] }
 0x186   : > { %1139 = vst.msk [vmem:[%s4340_s18 + $0xe8] sm:$0xff] %vm397_vm1, %v1107_v32  ;;  %3481 = vmatmul.msk.f32.gmra.mxu3 %vm397_vm1, %v4820_v10  ;;  %v877_v25 = vpop.f32.mrf.mxu2 }
 0x187   : > { %v913_v5 = vadd.f32 %v877_v25, %v754_v24  ;;  %3380 = vmatmul.msk.f32.gmra.mxu0 %vm397_vm1, %v4783_v33 }
 0x189   : > { %v756_v45 = vpop.f32.mrf.mxu1  ;;  %v1037_v19 = vpop.f32.mrf.mxu3 }
 0x18a   : > { %v1073_v38 = vadd.f32 %v1037_v19, %v913_v5 }
 0x18b   : > { %3448 = vmatmul.msk.f32.gmra.mxu2 %vm397_vm1, %v4311_v27 }
 0x18c   : > { %3414 = vmatmul.msk.f32.gmra.mxu1 %vm397_vm1, %v4288_v7  ;;  %v1108_v11 = vadd.f32 %v4335_v62, %v1073_v38  ;;  %v576_v57 = vpop.f32.mrf.mxu0  ;;  %v1193_v62 = vrot.slane %v4851_v61, 2 }
 0x18d   : > { %v757_v30 = vadd.f32 %v756_v45, %v576_v57  ;;  %v3903_v45 = vld [vmem:[%s4041_s8 + $0xe8] sm:$0x3] }
 0x18e   : > { %1140 = vst.msk [vmem:[%s4340_s18 + $0xf0] sm:$0xff] %vm397_vm1, %v1108_v11  ;;  %3482 = vmatmul.msk.f32.gmra.mxu3 %vm397_vm1, %v4835_v37  ;;  %v880_v16 = vpop.f32.mrf.mxu2  ;;  %v4857_v32 = vsel %vm1146_vm3, %v1192_v23, %v1193_v62  ;;  %v1195_v19 = vrot.slane %v3903_v45, 2 }
 0x18f   : > { %v914_v18 = vadd.f32 %v880_v16, %v757_v30  ;;  %3381 = vmatmul.msk.f32.gmra.mxu0 %vm397_vm1, %v4798_v56  ;;  %6055 = vst [vmem:[#allocation27_spill] sm:$0xff] %v4857_v32  ;;  %v6062_v56 = vld [vmem:[#allocation4_spill] sm:$0xff] }
 0x190   : > { %v4877_v30 = vsel %vm1146_vm3, %v1193_v62, %v1195_v19  ;;  %v4889_v62 = vld [vmem:[%s4041_s8 + $0xf0] sm:$0xff] }
 0x191   : > { %v1427_v3 = vpop.f32.mrf.mxu1  ;;  %v1040_v40 = vpop.f32.mrf.mxu3  ;;  %6056 = vst [vmem:[#allocation28_spill] sm:$0xff] %v4877_v30 }
 0x192   : > { %v1074_v51 = vadd.f32 %v1040_v40, %v914_v18 }
 0x193   : > { %3449 = vmatmul.msk.f32.gmra.mxu2 %vm397_vm1, %v4323_v43 }
 0x194   : > { %3415 = vmatmul.msk.f32.gmra.mxu1 %vm397_vm1, %v4300_v20  ;;  %v1109_v24 = vadd.f32 %v4864_v53, %v1074_v51  ;;  %v1311_v25 = vpop.f32.mrf.mxu0  ;;  %v1197_v51 = vrot.slane %v4889_v62, 2 }
 0x195   : > { %v1428_v5 = vadd.f32 %v1427_v3, %v1311_v25 }
 0x196   : > { %1141 = vst.msk [vmem:[%s4340_s18 + $0xf8] sm:$0xff] %vm397_vm1, %v1109_v24  ;;  %3483 = vmatmul.msk.f32.gmra.mxu3 %vm397_vm1, %v4857_v32  ;;  %v1545_v0 = vpop.f32.mrf.mxu2  ;;  %v4893_v24 = vld [vmem:[%s4041_s8 + $0xf8] sm:$0xff] }
 0x197   : > { %v1641_v1 = vadd.f32 %v1545_v0, %v1428_v5  ;;  %3382 = vmatmul.msk.f32.gmra.mxu0 %vm397_vm1, %v4820_v10  ;;  %v1198_v25 = vrot.slane %v4893_v24, 2 }
 0x199   : > { %v1430_v38 = vpop.f32.mrf.mxu1  ;;  %v1704_v11 = vpop.f32.mrf.mxu3  ;;  %v4899_v45 = vsel %vm1146_vm3, %v1197_v51, %v1198_v25 }
 0x19a   : > { %v1800_v57 = vadd.f32 %v1704_v11, %v1641_v1  ;;  %6057 = vst [vmem:[#allocation29_spill] sm:$0xff] %v4899_v45 }
 0x19b   : > { %3450 = vmatmul.msk.f32.gmra.mxu2 %vm397_vm1, %v4344_v6 }
 0x19c   : > { %3416 = vmatmul.msk.f32.gmra.mxu1 %vm397_vm1, %v4311_v27  ;;  %v1832_v16 = vadd.f32 %v4864_v53, %v1800_v57  ;;  %v1314_v18 = vpop.f32.mrf.mxu0 }
 0x19d   : > { %v1431_v23 = vadd.f32 %v1430_v38, %v1314_v18  ;;  %v3906_v18 = vld [vmem:[%s4041_s8 + $0x100] sm:$0x3] }
 0x19e   : > { %3499 = vst.msk [vmem:[%s4340_s18 + $0x100] sm:$0xff] %vm397_vm1, %v1832_v16  ;;  %3484 = vmatmul.msk.f32.gmra.mxu3 %vm397_vm1, %v4877_v30  ;;  %v1548_v3 = vpop.f32.mrf.mxu2 }
 0x19f   : > { %v1642_v40 = vadd.f32 %v1548_v3, %v1431_v23  ;;  %3383 = vmatmul.msk.f32.gmra.mxu0 %vm397_vm1, %v4835_v37  ;;  %v1200_v23 = vrot.slane %v3906_v18, 2  ;;  %v4930_v18 = vld [vmem:[%s4041_s8 + $0x110] sm:$0xff] }
 0x1a1   : > { %v1433_v5 = vpop.f32.mrf.mxu1  ;;  %v1707_v0 = vpop.f32.mrf.mxu3 }
 0x1a2   : > { %v1801_v1 = vadd.f32 %v1707_v0, %v1642_v40  ;;  %v6058_v0 = vld [vmem:[#allocation2_spill] sm:$0xff] }
 0x1a3   : > { %3451 = vmatmul.msk.f32.gmra.mxu2 %vm397_vm1, %v4361_v54 }
 0x1a4   : > { %3417 = vmatmul.msk.f32.gmra.mxu1 %vm397_vm1, %v4323_v43  ;;  %v1833_v19 = vadd.f32 %v4864_v53, %v1801_v1  ;;  %v1317_v38 = vpop.f32.mrf.mxu0 }
 0x1a5   : > { %v1434_v11 = vadd.f32 %v1433_v5, %v1317_v38  ;;  %v4914_v5 = vsel %vm1146_vm3, %v1198_v25, %v1200_v23  ;;  %v4926_v25 = vld [vmem:[%s4041_s8 + $0x108] sm:$0xff]  ;;  %v1203_v23 = vrot.slane %v4930_v18, 2 }
 0x1a6   : > { %3500 = vst.msk [vmem:[%s4340_s18 + $0x108] sm:$0xff] %vm397_vm1, %v1833_v19  ;;  %3485 = vmatmul.msk.f32.gmra.mxu3 %vm397_vm1, %v4899_v45  ;;  %v1551_v57 = vpop.f32.mrf.mxu2 }
 0x1a7   : > { %v1643_v16 = vadd.f32 %v1551_v57, %v1434_v11  ;;  %3384 = vmatmul.msk.f32.gmra.mxu0 %vm397_vm1, %v4857_v32  ;;  %6059 = vst [vmem:[#allocation2_spill] sm:$0xff] %v4914_v5 }
 0x1a9   : > { %v1436_v3 = vpop.f32.mrf.mxu1  ;;  %v1710_v40 = vpop.f32.mrf.mxu3 }
 0x1aa   : > { %v1802_v51 = vadd.f32 %v1710_v40, %v1643_v16  ;;  %v1202_v16 = vrot.slane %v4926_v25, 2 }
 0x1ab   : > { %3452 = vmatmul.msk.f32.gmra.mxu2 %vm397_vm1, %v6058_v0 }
 0x1ac   : > { %3418 = vmatmul.msk.f32.gmra.mxu1 %vm397_vm1, %v4344_v6  ;;  %v1834_v1 = vadd.f32 %v4864_v53, %v1802_v51  ;;  %v1320_v19 = vpop.f32.mrf.mxu0 }
 0x1ad   : > { %v1437_v38 = vadd.f32 %v1436_v3, %v1320_v19  ;;  %v4936_v19 = vsel %vm1146_vm3, %v1202_v16, %v1203_v23  ;;  %v3909_v16 = vld [vmem:[%s4041_s8 + $0x118] sm:$0x3] }
 0x1ae   : > { %3501 = vst.msk [vmem:[%s4340_s18 + $0x110] sm:$0xff] %vm397_vm1, %v1834_v1  ;;  %3486 = vmatmul.msk.f32.gmra.mxu3 %vm397_vm1, %v4914_v5  ;;  %v1554_v11 = vpop.f32.mrf.mxu2  ;;  %v6060_v1 = vld [vmem:[#allocation3_spill] sm:$0xff]  ;;  %v1205_v32 = vrot.slane %v3909_v16, 2 }
 0x1af   : > { %v1644_v57 = vadd.f32 %v1554_v11, %v1437_v38  ;;  %3385 = vmatmul.msk.f32.gmra.mxu0 %vm397_vm1, %v4877_v30  ;;  %6061 = vst [vmem:[#allocation3_spill] sm:$0xff] %v4936_v19 }
 0x1b1   : > { %v1439_v3 = vpop.f32.mrf.mxu1  ;;  %v1713_v40 = vpop.f32.mrf.mxu3 }
 0x1b2   : > { %v1803_v51 = vadd.f32 %v1713_v40, %v1644_v57 }
 0x1b3   : > { %3453 = vmatmul.msk.f32.gmra.mxu2 %vm397_vm1, %v6060_v1 }
 0x1b4   : > { %3419 = vmatmul.msk.f32.gmra.mxu1 %vm397_vm1, %v4361_v54  ;;  %v1835_v38 = vadd.f32 %v4864_v53, %v1803_v51  ;;  %v1323_v11 = vpop.f32.mrf.mxu0 }
 0x1b5   : > { %v1440_v30 = vadd.f32 %v1439_v3, %v1323_v11  ;;  %v4951_v3 = vsel %vm1146_vm3, %v1203_v23, %v1205_v32  ;;  %v4963_v32 = vld [vmem:[%s4041_s8 + $0x120] sm:$0xff] }
 0x1b6   : > { %3502 = vst.msk [vmem:[%s4340_s18 + $0x118] sm:$0xff] %vm397_vm1, %v1835_v38  ;;  %3487 = vmatmul.msk.f32.gmra.mxu3 %vm397_vm1, %v4936_v19  ;;  %v1557_v57 = vpop.f32.mrf.mxu2  ;;  %v1207_v23 = vrot.slane %v4963_v32, 2 }
 0x1b7   : > { %v1645_v40 = vadd.f32 %v1557_v57, %v1440_v30  ;;  %3386 = vmatmul.msk.f32.gmra.mxu0 %vm397_vm1, %v4899_v45  ;;  %6063 = vst [vmem:[#allocation4_spill] sm:$0xff] %v4951_v3 }
 0x1b9   : > { %v1442_v37 = vpop.f32.mrf.mxu1  ;;  %v1716_v10 = vpop.f32.mrf.mxu3 }
 0x1ba   : > { %v1804_v51 = vadd.f32 %v1716_v10, %v1645_v40  ;;  %v4967_v40 = vld [vmem:[%s4041_s8 + $0x128] sm:$0xff] }
 0x1bb   : > { %3454 = vmatmul.msk.f32.gmra.mxu2 %vm397_vm1, %v6062_v56 }
 0x1bc   : > { %3420 = vmatmul.msk.f32.gmra.mxu1 %vm397_vm1, %v6058_v0  ;;  %v1836_v30 = vadd.f32 %v4864_v53, %v1804_v51  ;;  %v1326_v38 = vpop.f32.mrf.mxu0 }
 0x1bd   : > { %v1443_v11 = vadd.f32 %v1442_v37, %v1326_v38  ;;  %v1208_v37 = vrot.slane %v4967_v40, 2  ;;  %v6064_v38 = vld [vmem:[#allocation5_spill] sm:$0xff] }
 0x1be   : > { %3503 = vst.msk [vmem:[%s4340_s18 + $0x120] sm:$0xff] %vm397_vm1, %v1836_v30  ;;  %3488 = vmatmul.msk.f32.gmra.mxu3 %vm397_vm1, %v4951_v3  ;;  %v1560_v57 = vpop.f32.mrf.mxu2 }
 0x1bf   : > { %v1646_v10 = vadd.f32 %v1560_v57, %v1443_v11  ;;  %3387 = vmatmul.msk.f32.gmra.mxu0 %vm397_vm1, %v4914_v5  ;;  %v4973_v11 = vsel %vm1146_vm3, %v1207_v23, %v1208_v37  ;;  %v3912_v23 = vld [vmem:[%s4041_s8 + $0x130] sm:$0x3] }
 0x1c0   : > { %6065 = vst [vmem:[#allocation5_spill] sm:$0xff] %v4973_v11  ;;  %v1210_v33 = vrot.slane %v3912_v23, 2 }
 0x1c1   : > { %v1445_v16 = vpop.f32.mrf.mxu1  ;;  %v1719_v51 = vpop.f32.mrf.mxu3 }
 0x1c2   : > { %v1805_v30 = vadd.f32 %v1719_v51, %v1646_v10 }
 0x1c3   : > { %3455 = vmatmul.msk.f32.gmra.mxu2 %vm397_vm1, %v6064_v38 }
 0x1c4   : > { %3421 = vmatmul.msk.f32.gmra.mxu1 %vm397_vm1, %v6060_v1  ;;  %v1837_v57 = vadd.f32 %v4864_v53, %v1805_v30  ;;  %v1329_v5 = vpop.f32.mrf.mxu0 }
 0x1c5   : > { %v1446_v45 = vadd.f32 %v1445_v16, %v1329_v5  ;;  %v4988_v5 = vsel %vm1146_vm3, %v1208_v37, %v1210_v33  ;;  %v5000_v33 = vld [vmem:[%s4041_s8 + $0x138] sm:$0xff] }
 0x1c6   : > { %3504 = vst.msk [vmem:[%s4340_s18 + $0x128] sm:$0xff] %vm397_vm1, %v1837_v57  ;;  %3489 = vmatmul.msk.f32.gmra.mxu3 %vm397_vm1, %v4973_v11  ;;  %v1563_v10 = vpop.f32.mrf.mxu2  ;;  %v1212_v37 = vrot.slane %v5000_v33, 2 }
 0x1c7   : > { %v1647_v51 = vadd.f32 %v1563_v10, %v1446_v45  ;;  %3388 = vmatmul.msk.f32.gmra.mxu0 %vm397_vm1, %v4936_v19  ;;  %6067 = vst [vmem:[#allocation6_spill] sm:$0xff] %v4988_v5 }
 0x1c9   : > { %v1448_v48 = vpop.f32.mrf.mxu1  ;;  %v1722_v14 = vpop.f32.mrf.mxu3 }
 0x1ca   : > { %v1806_v30 = vadd.f32 %v1722_v14, %v1647_v51  ;;  %v5004_v51 = vld [vmem:[%s4041_s8 + $0x140] sm:$0xff] }
 0x1cb   : > { %3456 = vmatmul.msk.f32.gmra.mxu2 %vm397_vm1, %v6066_v41 }
 0x1cc   : > { %3422 = vmatmul.msk.f32.gmra.mxu1 %vm397_vm1, %v6062_v56  ;;  %v1838_v45 = vadd.f32 %v4864_v53, %v1806_v30  ;;  %v1332_v16 = vpop.f32.mrf.mxu0 }
 0x1cd   : > { %v1449_v57 = vadd.f32 %v1448_v48, %v1332_v16  ;;  %v1213_v48 = vrot.slane %v5004_v51, 2  ;;  %v6068_v16 = vld [vmem:[#allocation7_spill] sm:$0xff] }
 0x1ce   : > { %3505 = vst.msk [vmem:[%s4340_s18 + $0x130] sm:$0xff] %vm397_vm1, %v1838_v45  ;;  %3490 = vmatmul.msk.f32.gmra.mxu3 %vm397_vm1, %v4988_v5  ;;  %v1566_v10 = vpop.f32.mrf.mxu2 }
 0x1cf   : > { %v1648_v14 = vadd.f32 %v1566_v10, %v1449_v57  ;;  %3389 = vmatmul.msk.f32.gmra.mxu0 %vm397_vm1, %v4951_v3  ;;  %v5010_v57 = vsel %vm1146_vm3, %v1212_v37, %v1213_v48  ;;  %v3915_v37 = vld [vmem:[%s4041_s8 + $0x148] sm:$0x3] }
 0x1d0   : > { %6069 = vst [vmem:[#allocation7_spill] sm:$0xff] %v5010_v57  ;;  %v1215_v29 = vrot.slane %v3915_v37, 2 }
 0x1d1   : > { %v1451_v23 = vpop.f32.mrf.mxu1  ;;  %v1725_v30 = vpop.f32.mrf.mxu3 }
 0x1d2   : > { %v1807_v45 = vadd.f32 %v1725_v30, %v1648_v14 }
 0x1d3   : > { %3457 = vmatmul.msk.f32.gmra.mxu2 %vm397_vm1, %v6068_v16 }
 0x1d4   : > { %3423 = vmatmul.msk.f32.gmra.mxu1 %vm397_vm1, %v6064_v38  ;;  %v1839_v10 = vadd.f32 %v4864_v53, %v1807_v45  ;;  %v1335_v3 = vpop.f32.mrf.mxu0 }
 0x1d5   : > { %v1452_v19 = vadd.f32 %v1451_v23, %v1335_v3  ;;  %v5025_v3 = vsel %vm1146_vm3, %v1213_v48, %v1215_v29  ;;  %v5037_v29 = vld [vmem:[%s4041_s8 + $0x150] sm:$0xff] }
 0x1d6   : > { %3506 = vst.msk [vmem:[%s4340_s18 + $0x138] sm:$0xff] %vm397_vm1, %v1839_v10  ;;  %3491 = vmatmul.msk.f32.gmra.mxu3 %vm397_vm1, %v5010_v57  ;;  %v1569_v14 = vpop.f32.mrf.mxu2  ;;  %v1217_v48 = vrot.slane %v5037_v29, 2 }
 0x1d7   : > { %v1649_v30 = vadd.f32 %v1569_v14, %v1452_v19  ;;  %3390 = vmatmul.msk.f32.gmra.mxu0 %vm397_vm1, %v4973_v11  ;;  %6071 = vst [vmem:[#allocation8_spill] sm:$0xff] %v5025_v3 }
 0x1d9   : > { %v1454_v13 = vpop.f32.mrf.mxu1  ;;  %v1728_v46 = vpop.f32.mrf.mxu3 }
 0x1da   : > { %v1808_v45 = vadd.f32 %v1728_v46, %v1649_v30  ;;  %v5041_v30 = vld [vmem:[%s4041_s8 + $0x158] sm:$0xff] }
 0x1db   : > { %3458 = vmatmul.msk.f32.gmra.mxu2 %vm397_vm1, %v6070_v58 }
 0x1dc   : > { %3424 = vmatmul.msk.f32.gmra.mxu1 %vm397_vm1, %v6066_v41  ;;  %v1840_v19 = vadd.f32 %v4864_v53, %v1808_v45  ;;  %v1338_v23 = vpop.f32.mrf.mxu0 }
 0x1dd   : > { %v1455_v10 = vadd.f32 %v1454_v13, %v1338_v23  ;;  %v1218_v13 = vrot.slane %v5041_v30, 2  ;;  %v6072_v23 = vld [vmem:[#allocation9_spill] sm:$0xff] }
 0x1de   : > { %3507 = vst.msk [vmem:[%s4340_s18 + $0x140] sm:$0xff] %vm397_vm1, %v1840_v19  ;;  %3492 = vmatmul.msk.f32.gmra.mxu3 %vm397_vm1, %v5025_v3  ;;  %v1572_v14 = vpop.f32.mrf.mxu2 }
 0x1df   : > { %v1650_v46 = vadd.f32 %v1572_v14, %v1455_v10  ;;  %3391 = vmatmul.msk.f32.gmra.mxu0 %vm397_vm1, %v4988_v5  ;;  %v5047_v10 = vsel %vm1146_vm3, %v1217_v48, %v1218_v13  ;;  %v3918_v48 = vld [vmem:[%s4041_s8 + $0x160] sm:$0x3] }
 0x1e0   : > { %6073 = vst [vmem:[#allocation9_spill] sm:$0xff] %v5047_v10  ;;  %v1220_v9 = vrot.slane %v3918_v48, 2 }
 0x1e1   : > { %v1457_v37 = vpop.f32.mrf.mxu1  ;;  %v1731_v45 = vpop.f32.mrf.mxu3 }
 0x1e2   : > { %v1809_v19 = vadd.f32 %v1731_v45, %v1650_v46 }
 0x1e3   : > { %3459 = vmatmul.msk.f32.gmra.mxu2 %vm397_vm1, %v6072_v23 }
 0x1e4   : > { %3425 = vmatmul.msk.f32.gmra.mxu1 %vm397_vm1, %v6068_v16  ;;  %v1841_v14 = vadd.f32 %v4864_v53, %v1809_v19  ;;  %v1341_v5 = vpop.f32.mrf.mxu0 }
 0x1e5   : > { %v1458_v11 = vadd.f32 %v1457_v37, %v1341_v5  ;;  %v5062_v5 = vsel %vm1146_vm3, %v1218_v13, %v1220_v9  ;;  %v5074_v9 = vld [vmem:[%s4041_s8 + $0x168] sm:$0xff] }
 0x1e6   : > { %3508 = vst.msk [vmem:[%s4340_s18 + $0x148] sm:$0xff] %vm397_vm1, %v1841_v14  ;;  %3493 = vmatmul.msk.f32.gmra.mxu3 %vm397_vm1, %v5047_v10  ;;  %v1575_v46 = vpop.f32.mrf.mxu2  ;;  %v1222_v13 = vrot.slane %v5074_v9, 2 }
 0x1e7   : > { %v1651_v45 = vadd.f32 %v1575_v46, %v1458_v11  ;;  %3392 = vmatmul.msk.f32.gmra.mxu0 %vm397_vm1, %v5010_v57  ;;  %6074 = vst [vmem:[#allocation30_spill] sm:$0xff] %v5062_v5 }
 0x1e9   : > { %v1460_v35 = vpop.f32.mrf.mxu1  ;;  %v1734_v42 = vpop.f32.mrf.mxu3 }
 0x1ea   : > { %v1810_v19 = vadd.f32 %v1734_v42, %v1651_v45  ;;  %v5078_v45 = vld [vmem:[%s4041_s8 + $0x170] sm:$0xff] }
 0x1eb   : > { %3460 = vmatmul.msk.f32.gmra.mxu2 %vm397_vm1, %v4502_v59  ;;  %v1223_v48 = vrot.slane %v5078_v45, 2 }
 0x1ec   : > { %3426 = vmatmul.msk.f32.gmra.mxu1 %vm397_vm1, %v6070_v58  ;;  %v1842_v11 = vadd.f32 %v4864_v53, %v1810_v19  ;;  %v1344_v37 = vpop.f32.mrf.mxu0 }
 0x1ed   : > { %v1461_v14 = vadd.f32 %v1460_v35, %v1344_v37  ;;  %v5084_v37 = vsel %vm1146_vm3, %v1222_v13, %v1223_v48  ;;  %v3801_v13 = vld [vmem:[%s5947_s1 + $0x3c] sm:$0xf] }
 0x1ee   : > { %3509 = vst.msk [vmem:[%s4340_s18 + $0x150] sm:$0xff] %vm397_vm1, %v1842_v11  ;;  %3494 = vmatmul.msk.f32.gmra.mxu3 %vm397_vm1, %v5062_v5  ;;  %v1578_v46 = vpop.f32.mrf.mxu2 }
 0x1ef   : > { %v1652_v42 = vadd.f32 %v1578_v46, %v1461_v14  ;;  %3393 = vmatmul.msk.f32.gmra.mxu0 %vm397_vm1, %v5025_v3  ;;  %3802 = vmatpush.msk.msrb.mxu3 %vm462_vm0, %v3801_v13 }
 0x1f1   : > { %v1463_v35 = vpop.f32.mrf.mxu1  ;;  %v1737_v19 = vpop.f32.mrf.mxu3 }
 0x1f2   : > { %v1811_v11 = vadd.f32 %v1737_v19, %v1652_v42  ;;  %v3767_v42 = vld [vmem:[%s5947_s1 + $0x38] sm:$0xf] }
 0x1f3   : > { %3461 = vmatmul.msk.f32.gmra.mxu2 %vm397_vm1, %v4520_v12 }
 0x1f4   : > { %3427 = vmatmul.msk.f32.gmra.mxu1 %vm397_vm1, %v6072_v23  ;;  %v1843_v14 = vadd.f32 %v4864_v53, %v1811_v11  ;;  %v1347_v46 = vpop.f32.mrf.mxu0  ;;  %v3921_v11 = vld [vmem:[%s4041_s8 + $0x178] sm:$0x3]  ;;  %3768 = vmatpush.msk.msrb.mxu2 %vm462_vm0, %v3767_v42 }
 0x1f5   : > { %v1464_v3 = vadd.f32 %v1463_v35, %v1347_v46  ;;  %v1225_v35 = vrot.slane %v3921_v11, 2  ;;  %v3699_v46 = vld [vmem:[%s5947_s1 + $0x30] sm:$0xf] }
 0x1f6   : > { %3510 = vst.msk [vmem:[%s4340_s18 + $0x158] sm:$0xff] %vm397_vm1, %v1843_v14  ;;  %3495 = vmatmul.msk.f32.gmra.mxu3 %vm397_vm1, %v5084_v37  ;;  %v1581_v57 = vpop.f32.mrf.mxu2  ;;  %v3700_v14 = vld [vmem:[%s5947_s1 + $0x34] sm:$0xf]  ;;  %3734 = vmatpush.msk.msrb.mxu1 %vm462_vm0, %v3699_v46  ;;  %v5131_v46 = vld [vmem:[%s4041_s8 + $0x188] sm:$0xff] }
 0x1f7   : > { %v1653_v19 = vadd.f32 %v1581_v57, %v1464_v3  ;;  %3394 = vmatmul.msk.f32.gmra.mxu0 %vm397_vm1, %v5047_v10  ;;  %v5115_v42 = vsel %vm1146_vm3, %v1223_v48, %v1225_v35  ;;  %v5127_v48 = vld [vmem:[%s4041_s8 + $0x180] sm:$0xff]  ;;  %6076 = vst [vmem:[#allocation32_spill] sm:$0xff] %v5131_v46 }
 0x1f8   : > { %3701 = vmatpush.msk.msrb.mxu0 %vm462_vm0, %v3700_v14  ;;  %6075 = vst [vmem:[#allocation31_spill] sm:$0xff] %v5127_v48  ;;  %v1675_v35 = vrot.slane %v5127_v48, 2 }
 0x1f9   : > { %v1466_v2 = vpop.f32.mrf.mxu1  ;;  %v1740_v57 = vpop.f32.mrf.mxu3 }
 0x1fa   : > { %v1812_v3 = vadd.f32 %v1740_v57, %v1653_v19 }
 0x1fb   : > { %3462 = vmatmul.msk.f32.gmra.mxu2 %vm397_vm1, %v4550_v50 }
 0x1fc   : > { %3428 = vmatmul.msk.f32.gmra.mxu1 %vm397_vm1, %v4502_v59  ;;  %v1844_v11 = vadd.f32 %v4864_v53, %v1812_v3  ;;  %v1350_v13 = vpop.f32.mrf.mxu0 }
 0x1fd   : > { %v1467_v10 = vadd.f32 %v1466_v2, %v1350_v13  ;;  %v1676_v2 = vrot.slane %v5131_v46, 2 }
 0x1fe   : > { %3511 = vst.msk [vmem:[%s4340_s18 + $0x160] sm:$0xff] %vm397_vm1, %v1844_v11  ;;  %3496 = vmatmul.msk.f32.gmra.mxu3 %vm397_vm1, %v5115_v42  ;;  %v1584_v14 = vpop.f32.mrf.mxu2 }
 0x1ff   : > { %v1654_v19 = vadd.f32 %v1584_v14, %v1467_v10  ;;  %3395 = vmatmul.msk.f32.gmra.mxu0 %vm397_vm1, %v5062_v5  ;;  %v5137_v10 = vsel %vm1146_vm3, %v1675_v35, %v1676_v2  ;;  %v3924_v35 = vld [vmem:[%s4041_s8 + $0x190] sm:$0x3] }
 0x200   : > { %6077 = vst [vmem:[#allocation33_spill] sm:$0xff] %v5137_v10  ;;  %v1678_v26 = vrot.slane %v3924_v35, 2 }
 0x201   : > { %v1469_v57 = vpop.f32.mrf.mxu1  ;;  %v1743_v3 = vpop.f32.mrf.mxu3 }
 0x202   : > { %v1813_v11 = vadd.f32 %v1743_v3, %v1654_v19 }
 0x203   : > { %3463 = vmatmul.msk.f32.gmra.mxu2 %vm397_vm1, %v4565_v34 }
 0x204   : > { %3429 = vmatmul.msk.f32.gmra.mxu1 %vm397_vm1, %v4520_v12  ;;  %v1845_v13 = vadd.f32 %v4864_v53, %v1813_v11  ;;  %v1353_v14 = vpop.f32.mrf.mxu0 }
 0x205   : > { %v1470_v5 = vadd.f32 %v1469_v57, %v1353_v14  ;;  %v5152_v57 = vsel %vm1146_vm3, %v1676_v2, %v1678_v26 }
 0x206   : > { %3512 = vst.msk [vmem:[%s4340_s18 + $0x168] sm:$0xff] %vm397_vm1, %v1845_v13  ;;  %3497 = vmatmul.msk.f32.gmra.mxu3 %vm397_vm1, %v5137_v10  ;;  %v1587_v19 = vpop.f32.mrf.mxu2  ;;  %v3938_v10 = vld [vmem:[%s4041_s8 + $0xb0] sm:$0xff] }
 0x207   : > { %v1655_v3 = vadd.f32 %v1587_v19, %v1470_v5  ;;  %3396 = vmatmul.msk.f32.gmra.mxu0 %vm397_vm1, %v5084_v37  ;;  %6078 = vst [vmem:[#allocation34_spill] sm:$0xff] %v5152_v57 }
 0x209   : > { %v1472_v46 = vpop.f32.mrf.mxu1  ;;  %v1746_v34 = vpop.f32.mrf.mxu3 }
 0x20a   : > { %v1814_v48 = vadd.f32 %v1746_v34, %v1655_v3  ;;  %v3925_v3 = vld [vmem:[%s4041_s8 + $0x30] sm:$0xff] }
 0x20b   : > { %3464 = vmatmul.msk.f32.gmra.mxu2 %vm397_vm1, %v4578_v21 }
 0x20c   : > { %3430 = vmatmul.msk.f32.gmra.mxu1 %vm397_vm1, %v4550_v50  ;;  %v1846_v5 = vadd.f32 %v4864_v53, %v1814_v48  ;;  %v1356_v11 = vpop.f32.mrf.mxu0  ;;  %v3926_v48 = vld [vmem:[%s4041_s8 + $0x18] sm:$0xff] }
 0x20d   : > { %v1473_v13 = vadd.f32 %v1472_v46, %v1356_v11 }
 0x20e   : > { %3513 = vst.msk [vmem:[%s4340_s18 + $0x170] sm:$0xff] %vm397_vm1, %v1846_v5  ;;  %3498 = vmatmul.msk.f32.gmra.mxu3 %vm397_vm1, %v5152_v57  ;;  %v1590_v34 = vpop.f32.mrf.mxu2 }
 0x20f   : > { %v1656_v14 = vadd.f32 %v1590_v34, %v1473_v13  ;;  %3397 = vmatmul.msk.f32.gmra.mxu0 %vm397_vm1, %v5115_v42 }
 0x211   : > { %v1475_v26 = vpop.f32.mrf.mxu1  ;;  %v1749_v2 = vpop.f32.mrf.mxu3 }
 0x212   : > { %v1815_v19 = vadd.f32 %v1749_v2, %v1656_v14 }
 0x213   : > { %3601 = vmatmul.msk.f32.vlgmr.msra.gmra.mxu2 %vm397_vm1, %v3925_v3 }
 0x214   : > { %3567 = vmatmul.msk.f32.vlgmr.msra.gmra.mxu1 %vm397_vm1, %v3926_v48  ;;  %v1847_v46 = vadd.f32 %v4864_v53, %v1815_v19  ;;  %v1359_v35 = vpop.f32.mrf.mxu0  ;;  %v3927_v48 = vld [vmem:[%s4041_s8 + $0x38] sm:$0xff]  ;;  %v3928_v19 = vld [vmem:[%s4041_s8 + $0x20] sm:$0xff] }
 0x215   : > { %v1476_v5 = vadd.f32 %v1475_v26, %v1359_v35 }
 0x216   : > { %3514 = vst.msk [vmem:[%s4340_s18 + $0x178] sm:$0xff] %vm397_vm1, %v1847_v46  ;;  %3635 = vmatmul.msk.f32.vlgmr.msra.gmra.mxu3 %vm397_vm1, %v4106_v28  ;;  %v1593_v11 = vpop.f32.mrf.mxu2 }
 0x217   : > { %v1657_v13 = vadd.f32 %v1593_v11, %v1476_v5  ;;  %3534 = vmatmul.msk.f32.vlgmr.msra.gmra.mxu0 %vm397_vm1, %v4067_v17 }
 0x219   : > { %v1478_v34 = vpop.f32.mrf.mxu1  ;;  %v1752_v14 = vpop.f32.mrf.mxu3 }
 0x21a   : > { %v1816_v2 = vadd.f32 %v1752_v14, %v1657_v13 }
 0x21b   : > { %3602 = vmatmul.msk.f32.gmra.mxu2 %vm397_vm1, %v3927_v48 }
 0x21c   : > { %3568 = vmatmul.msk.f32.gmra.mxu1 %vm397_vm1, %v3928_v19  ;;  %v1848_v26 = vadd.f32 %v4864_v53, %v1816_v2  ;;  %v1362_v46 = vpop.f32.mrf.mxu0  ;;  %v3929_v19 = vld [vmem:[%s4041_s8 + $0x48] sm:$0xff] }
 0x21d   : > { %v1479_v35 = vadd.f32 %v1478_v34, %v1362_v46 }
 0x21e   : > { %3515 = vst.msk [vmem:[%s4340_s18 + $0x180] sm:$0xff] %vm397_vm1, %v1848_v26  ;;  %3636 = vmatmul.msk.f32.gmra.mxu3 %vm397_vm1, %v4121_v31  ;;  %v1596_v5 = vpop.f32.mrf.mxu2 }
 0x21f   : > { %v1658_v11 = vadd.f32 %v1596_v5, %v1479_v35  ;;  %3535 = vmatmul.msk.f32.gmra.mxu0 %vm397_vm1, %v4084_v22 }
 0x221   : > { %v1481_v13 = vpop.f32.mrf.mxu1  ;;  %v1755_v14 = vpop.f32.mrf.mxu3 }
 0x222   : > { %v1817_v57 = vadd.f32 %v1755_v14, %v1658_v11 }
 0x223   : > { %3603 = vmatmul.msk.f32.gmra.mxu2 %vm397_vm1, %v3929_v19 }
 0x224   : > { %3569 = vmatmul.msk.f32.gmra.mxu1 %vm397_vm1, %v3925_v3  ;;  %v1849_v34 = vadd.f32 %v4864_v53, %v1817_v57  ;;  %v1365_v2 = vpop.f32.mrf.mxu0  ;;  %v3930_v3 = vld [vmem:[%s4041_s8 + $0x50] sm:$0xff] }
 0x225   : > { %v1482_v26 = vadd.f32 %v1481_v13, %v1365_v2 }
 0x226   : > { %3516 = vst.msk [vmem:[%s4340_s18 + $0x188] sm:$0xff] %vm397_vm1, %v1849_v34  ;;  %3637 = vmatmul.msk.f32.gmra.mxu3 %vm397_vm1, %v4140_v36  ;;  %v1599_v46 = vpop.f32.mrf.mxu2 }
 0x227   : > { %v1659_v35 = vadd.f32 %v1599_v46, %v1482_v26  ;;  %3536 = vmatmul.msk.f32.gmra.mxu0 %vm397_vm1, %v4106_v28 }
 0x229   : > { %v1484_v5 = vpop.f32.mrf.mxu1  ;;  %v1758_v11 = vpop.f32.mrf.mxu3 }
 0x22a   : > { %v1818_v14 = vadd.f32 %v1758_v11, %v1659_v35 }
 0x22b   : > { %3604 = vmatmul.msk.f32.gmra.mxu2 %vm397_vm1, %v3930_v3 }
 0x22c   : > { %3570 = vmatmul.msk.f32.gmra.mxu1 %vm397_vm1, %v3927_v48  ;;  %v1850_v57 = vadd.f32 %v4864_v53, %v1818_v14  ;;  %v1368_v13 = vpop.f32.mrf.mxu0  ;;  %v3931_v48 = vld [vmem:[%s4041_s8 + $0x60] sm:$0xff] }
 0x22d   : > { %v1485_v34 = vadd.f32 %v1484_v5, %v1368_v13 }
 0x22e   : > { %3517 = vst.msk [vmem:[%s4340_s18 + $0x190] sm:$0xff] %vm397_vm1, %v1850_v57  ;;  %3638 = vmatmul.msk.f32.gmra.mxu3 %vm397_vm1, %v4155_v39  ;;  %v1602_v2 = vpop.f32.mrf.mxu2 }
 0x22f   : > { %v1660_v26 = vadd.f32 %v1602_v2, %v1485_v34  ;;  %3537 = vmatmul.msk.f32.gmra.mxu0 %vm397_vm1, %v4121_v31 }
 0x231   : > { %v1487_v46 = vpop.f32.mrf.mxu1  ;;  %v1761_v35 = vpop.f32.mrf.mxu3 }
 0x232   : > { %v1819_v11 = vadd.f32 %v1761_v35, %v1660_v26 }
 0x233   : > { %3605 = vmatmul.msk.f32.gmra.mxu2 %vm397_vm1, %v3931_v48 }
 0x234   : > { %3571 = vmatmul.msk.f32.gmra.mxu1 %vm397_vm1, %v3929_v19  ;;  %v1851_v5 = vadd.f32 %v4864_v53, %v1819_v11  ;;  %v1371_v14 = vpop.f32.mrf.mxu0  ;;  %v3932_v19 = vld [vmem:[%s4041_s8 + $0x68] sm:$0xff] }
 0x235   : > { %v1488_v57 = vadd.f32 %v1487_v46, %v1371_v14 }
 0x236   : > { %3518 = vst.msk [vmem:[%s4340_s18 + $0x198] sm:$0xff] %vm397_vm1, %v1851_v5  ;;  %3639 = vmatmul.msk.f32.gmra.mxu3 %vm397_vm1, %v4174_v44  ;;  %v1605_v13 = vpop.f32.mrf.mxu2 }
 0x237   : > { %v1661_v34 = vadd.f32 %v1605_v13, %v1488_v57  ;;  %3538 = vmatmul.msk.f32.gmra.mxu0 %vm397_vm1, %v4140_v36 }
 0x239   : > { %v1490_v2 = vpop.f32.mrf.mxu1  ;;  %v1764_v26 = vpop.f32.mrf.mxu3 }
 0x23a   : > { %v1820_v35 = vadd.f32 %v1764_v26, %v1661_v34 }
 0x23b   : > { %3606 = vmatmul.msk.f32.gmra.mxu2 %vm397_vm1, %v3932_v19 }
 0x23c   : > { %3572 = vmatmul.msk.f32.gmra.mxu1 %vm397_vm1, %v3930_v3  ;;  %v1852_v46 = vadd.f32 %v4864_v53, %v1820_v35  ;;  %v1374_v11 = vpop.f32.mrf.mxu0  ;;  %v3933_v3 = vld [vmem:[%s4041_s8 + $0x78] sm:$0xff] }
 0x23d   : > { %v1491_v5 = vadd.f32 %v1490_v2, %v1374_v11 }
 0x23e   : > { %3519 = vst.msk [vmem:[%s4340_s18 + $0x1a0] sm:$0xff] %vm397_vm1, %v1852_v46  ;;  %3640 = vmatmul.msk.f32.gmra.mxu3 %vm397_vm1, %v4189_v47  ;;  %v1608_v14 = vpop.f32.mrf.mxu2 }
 0x23f   : > { %v1662_v57 = vadd.f32 %v1608_v14, %v1491_v5  ;;  %3539 = vmatmul.msk.f32.gmra.mxu0 %vm397_vm1, %v4155_v39 }
 0x241   : > { %v1493_v13 = vpop.f32.mrf.mxu1  ;;  %v1767_v34 = vpop.f32.mrf.mxu3 }
 0x242   : > { %v1821_v26 = vadd.f32 %v1767_v34, %v1662_v57 }
 0x243   : > { %3607 = vmatmul.msk.f32.gmra.mxu2 %vm397_vm1, %v3933_v3 }
 0x244   : > { %3573 = vmatmul.msk.f32.gmra.mxu1 %vm397_vm1, %v3931_v48  ;;  %v1853_v2 = vadd.f32 %v4864_v53, %v1821_v26  ;;  %v1377_v35 = vpop.f32.mrf.mxu0  ;;  %v3934_v48 = vld [vmem:[%s4041_s8 + $0x80] sm:$0xff] }
 0x245   : > { %v1494_v46 = vadd.f32 %v1493_v13, %v1377_v35 }
 0x246   : > { %3520 = vst.msk [vmem:[%s4340_s18 + $0x1a8] sm:$0xff] %vm397_vm1, %v1853_v2  ;;  %3641 = vmatmul.msk.f32.gmra.mxu3 %vm397_vm1, %v4208_v52  ;;  %v1611_v11 = vpop.f32.mrf.mxu2 }
 0x247   : > { %v1663_v5 = vadd.f32 %v1611_v11, %v1494_v46  ;;  %3540 = vmatmul.msk.f32.gmra.mxu0 %vm397_vm1, %v4174_v44 }
 0x249   : > { %v1496_v14 = vpop.f32.mrf.mxu1  ;;  %v1770_v57 = vpop.f32.mrf.mxu3 }
 0x24a   : > { %v1822_v34 = vadd.f32 %v1770_v57, %v1663_v5 }
 0x24b   : > { %3608 = vmatmul.msk.f32.gmra.mxu2 %vm397_vm1, %v3934_v48 }
 0x24c   : > { %3574 = vmatmul.msk.f32.gmra.mxu1 %vm397_vm1, %v3932_v19  ;;  %v1854_v13 = vadd.f32 %v4864_v53, %v1822_v34  ;;  %v1380_v26 = vpop.f32.mrf.mxu0  ;;  %v3935_v19 = vld [vmem:[%s4041_s8 + $0x90] sm:$0xff] }
 0x24d   : > { %v1497_v2 = vadd.f32 %v1496_v14, %v1380_v26 }
 0x24e   : > { %3521 = vst.msk [vmem:[%s4340_s18 + $0x1b0] sm:$0xff] %vm397_vm1, %v1854_v13  ;;  %3642 = vmatmul.msk.f32.gmra.mxu3 %vm397_vm1, %v4223_v55  ;;  %v1614_v35 = vpop.f32.mrf.mxu2 }
 0x24f   : > { %v1664_v46 = vadd.f32 %v1614_v35, %v1497_v2  ;;  %3541 = vmatmul.msk.f32.gmra.mxu0 %vm397_vm1, %v4189_v47 }
 0x251   : > { %v1499_v11 = vpop.f32.mrf.mxu1  ;;  %v1773_v5 = vpop.f32.mrf.mxu3 }
 0x252   : > { %v1823_v57 = vadd.f32 %v1773_v5, %v1664_v46 }
 0x253   : > { %3609 = vmatmul.msk.f32.gmra.mxu2 %vm397_vm1, %v3935_v19 }
 0x254   : > { %3575 = vmatmul.msk.f32.gmra.mxu1 %vm397_vm1, %v3933_v3  ;;  %v1855_v14 = vadd.f32 %v4864_v53, %v1823_v57  ;;  %v1383_v34 = vpop.f32.mrf.mxu0  ;;  %v3936_v3 = vld [vmem:[%s4041_s8 + $0x98] sm:$0xff] }
 0x255   : > { %v1500_v13 = vadd.f32 %v1499_v11, %v1383_v34 }
 0x256   : > { %3522 = vst.msk [vmem:[%s4340_s18 + $0x1b8] sm:$0xff] %vm397_vm1, %v1855_v14  ;;  %3643 = vmatmul.msk.f32.gmra.mxu3 %vm397_vm1, %v4242_v60  ;;  %v1617_v26 = vpop.f32.mrf.mxu2 }
 0x257   : > { %v1665_v2 = vadd.f32 %v1617_v26, %v1500_v13  ;;  %3542 = vmatmul.msk.f32.gmra.mxu0 %vm397_vm1, %v4208_v52 }
 0x259   : > { %v1502_v35 = vpop.f32.mrf.mxu1  ;;  %v1776_v46 = vpop.f32.mrf.mxu3 }
 0x25a   : > { %v1824_v5 = vadd.f32 %v1776_v46, %v1665_v2 }
 0x25b   : > { %3610 = vmatmul.msk.f32.gmra.mxu2 %vm397_vm1, %v3936_v3 }
 0x25c   : > { %3576 = vmatmul.msk.f32.gmra.mxu1 %vm397_vm1, %v3934_v48  ;;  %v1856_v11 = vadd.f32 %v4864_v53, %v1824_v5  ;;  %v1386_v57 = vpop.f32.mrf.mxu0  ;;  %v3937_v48 = vld [vmem:[%s4041_s8 + $0xa8] sm:$0xff] }
 0x25d   : > { %v1503_v14 = vadd.f32 %v1502_v35, %v1386_v57 }
 0x25e   : > { %3523 = vst.msk [vmem:[%s4340_s18 + $0x1c0] sm:$0xff] %vm397_vm1, %v1856_v11  ;;  %3644 = vmatmul.msk.f32.gmra.mxu3 %vm397_vm1, %v4257_v63  ;;  %v1620_v34 = vpop.f32.mrf.mxu2 }
 0x25f   : > { %v1666_v13 = vadd.f32 %v1620_v34, %v1503_v14  ;;  %3543 = vmatmul.msk.f32.gmra.mxu0 %vm397_vm1, %v4223_v55 }
 0x261   : > { %v1505_v26 = vpop.f32.mrf.mxu1  ;;  %v1779_v2 = vpop.f32.mrf.mxu3 }
 0x262   : > { %v1825_v46 = vadd.f32 %v1779_v2, %v1666_v13 }
 0x263   : > { %3611 = vmatmul.msk.f32.gmra.mxu2 %vm397_vm1, %v3937_v48 }
 0x264   : > { %3577 = vmatmul.msk.f32.gmra.mxu1 %vm397_vm1, %v3935_v19  ;;  %v1857_v35 = vadd.f32 %v4864_v53, %v1825_v46  ;;  %v1389_v5 = vpop.f32.mrf.mxu0 }
 0x265   : > { %v1506_v11 = vadd.f32 %v1505_v26, %v1389_v5 }
 0x266   : > { %3524 = vst.msk [vmem:[%s4340_s18 + $0x1c8] sm:$0xff] %vm397_vm1, %v1857_v35  ;;  %3645 = vmatmul.msk.f32.gmra.mxu3 %vm397_vm1, %v4276_v4  ;;  %v1623_v57 = vpop.f32.mrf.mxu2 }
 0x267   : > { %v1667_v14 = vadd.f32 %v1623_v57, %v1506_v11  ;;  %3544 = vmatmul.msk.f32.gmra.mxu0 %vm397_vm1, %v4242_v60 }
 0x269   : > { %v1508_v34 = vpop.f32.mrf.mxu1  ;;  %v1782_v13 = vpop.f32.mrf.mxu3 }
 0x26a   : > { %v1826_v2 = vadd.f32 %v1782_v13, %v1667_v14 }
 0x26b   : > { %3612 = vmatmul.msk.f32.gmra.mxu2 %vm397_vm1, %v3938_v10 }
 0x26c   : > { %3578 = vmatmul.msk.f32.gmra.mxu1 %vm397_vm1, %v3936_v3  ;;  %v1858_v19 = vadd.f32 %v4864_v53, %v1826_v2  ;;  %v1392_v26 = vpop.f32.mrf.mxu0 }
 0x26d   : > { %v1509_v46 = vadd.f32 %v1508_v34, %v1392_v26 }
 0x26e   : > { %3525 = vst.msk [vmem:[%s4340_s18 + $0x1d0] sm:$0xff] %vm397_vm1, %v1858_v19  ;;  %3646 = vmatmul.msk.f32.gmra.mxu3 %vm397_vm1, %v4288_v7  ;;  %v1626_v35 = vpop.f32.mrf.mxu2 }
 0x26f   : > { %v1668_v5 = vadd.f32 %v1626_v35, %v1509_v46  ;;  %3545 = vmatmul.msk.f32.gmra.mxu0 %vm397_vm1, %v4257_v63 }
 0x271   : > { %v1511_v11 = vpop.f32.mrf.mxu1  ;;  %v1785_v57 = vpop.f32.mrf.mxu3 }
 0x272   : > { %v1827_v14 = vadd.f32 %v1785_v57, %v1668_v5 }
 0x273   : > { %3613 = vmatmul.msk.f32.gmra.mxu2 %vm397_vm1, %v4810_v49 }
 0x274   : > { %3579 = vmatmul.msk.f32.gmra.mxu1 %vm397_vm1, %v3937_v48  ;;  %v1859_v3 = vadd.f32 %v4864_v53, %v1827_v14  ;;  %v1395_v34 = vpop.f32.mrf.mxu0 }
 0x275   : > { %v1512_v13 = vadd.f32 %v1511_v11, %v1395_v34 }
 0x276   : > { %3526 = vst.msk [vmem:[%s4340_s18 + $0x1d8] sm:$0xff] %vm397_vm1, %v1859_v3  ;;  %3647 = vmatmul.msk.f32.gmra.mxu3 %vm397_vm1, %v4300_v20  ;;  %v1629_v2 = vpop.f32.mrf.mxu2 }
 0x277   : > { %v1669_v19 = vadd.f32 %v1629_v2, %v1512_v13  ;;  %3546 = vmatmul.msk.f32.gmra.mxu0 %vm397_vm1, %v4276_v4 }
 0x279   : > { %v1514_v26 = vpop.f32.mrf.mxu1  ;;  %v1788_v46 = vpop.f32.mrf.mxu3 }
 0x27a   : > { %v1828_v35 = vadd.f32 %v1788_v46, %v1669_v19 }
 0x27b   : > { %3614 = vmatmul.msk.f32.gmra.mxu2 %vm397_vm1, %v4814_v8 }
 0x27c   : > { %3580 = vmatmul.msk.f32.gmra.mxu1 %vm397_vm1, %v3938_v10  ;;  %v1860_v48 = vadd.f32 %v4864_v53, %v1828_v35  ;;  %v1398_v5 = vpop.f32.mrf.mxu0 }
 0x27d   : > { %v1515_v11 = vadd.f32 %v1514_v26, %v1398_v5 }
 0x27e   : > { %3527 = vst.msk [vmem:[%s4340_s18 + $0x1e0] sm:$0xff] %vm397_vm1, %v1860_v48  ;;  %3648 = vmatmul.msk.f32.gmra.mxu3 %vm397_vm1, %v4311_v27  ;;  %v1632_v57 = vpop.f32.mrf.mxu2 }
 0x27f   : > { %v1670_v14 = vadd.f32 %v1632_v57, %v1515_v11  ;;  %3547 = vmatmul.msk.f32.gmra.mxu0 %vm397_vm1, %v4288_v7 }
 0x281   : > { %v1517_v3 = vpop.f32.mrf.mxu1  ;;  %v1791_v34 = vpop.f32.mrf.mxu3 }
 0x282   : > { %v1829_v13 = vadd.f32 %v1791_v34, %v1670_v14 }
 0x283   : > { %3615 = vmatmul.msk.f32.gmra.mxu2 %vm397_vm1, %v4847_v15 }
 0x284   : > { %3581 = vmatmul.msk.f32.gmra.mxu1 %vm397_vm1, %v4810_v49  ;;  %v1861_v10 = vadd.f32 %v4864_v53, %v1829_v13  ;;  %v1401_v2 = vpop.f32.mrf.mxu0 }
 0x285   : > { %v1518_v19 = vadd.f32 %v1517_v3, %v1401_v2 }
 0x286   : > { %3528 = vst.msk [vmem:[%s4340_s18 + $0x1e8] sm:$0xff] %vm397_vm1, %v1861_v10  ;;  %3649 = vmatmul.msk.f32.gmra.mxu3 %vm397_vm1, %v4323_v43  ;;  %v1635_v26 = vpop.f32.mrf.mxu2 }
 0x287   : > { %v1671_v46 = vadd.f32 %v1635_v26, %v1518_v19  ;;  %3548 = vmatmul.msk.f32.gmra.mxu0 %vm397_vm1, %v4300_v20 }
 0x289   : > { %v1520_v35 = vpop.f32.mrf.mxu1  ;;  %v1794_v48 = vpop.f32.mrf.mxu3 }
 0x28a   : > { %v1830_v5 = vadd.f32 %v1794_v48, %v1671_v46 }
 0x28b   : > { %3616 = vmatmul.msk.f32.gmra.mxu2 %vm397_vm1, %v4851_v61 }
 0x28c   : > { %3582 = vmatmul.msk.f32.gmra.mxu1 %vm397_vm1, %v4814_v8  ;;  %v1862_v49 = vadd.f32 %v4864_v53, %v1830_v5  ;;  %v1404_v11 = vpop.f32.mrf.mxu0 }
 0x28d   : > { %v1521_v57 = vadd.f32 %v1520_v35, %v1404_v11 }
 0x28e   : > { %3529 = vst.msk [vmem:[%s4340_s18 + $0x1f0] sm:$0xff] %vm397_vm1, %v1862_v49  ;;  %3650 = vmatmul.msk.f32.gmra.mxu3 %vm397_vm1, %v4344_v6  ;;  %v1638_v14 = vpop.f32.mrf.mxu2 }
 0x28f   : > { %v1672_v3 = vadd.f32 %v1638_v14, %v1521_v57  ;;  %3549 = vmatmul.msk.f32.gmra.mxu0 %vm397_vm1, %v4311_v27 }
 0x291   : > { %v2037_v34 = vpop.f32.mrf.mxu1  ;;  %v1797_v13 = vpop.f32.mrf.mxu3 }
 0x292   : > { %v1831_v10 = vadd.f32 %v1797_v13, %v1672_v3 }
 0x293   : > { %3617 = vmatmul.msk.f32.gmra.mxu2 %vm397_vm1, %v4889_v62 }
 0x294   : > { %3583 = vmatmul.msk.f32.gmra.mxu1 %vm397_vm1, %v4847_v15  ;;  %v1863_v8 = vadd.f32 %v4864_v53, %v1831_v10  ;;  %v1921_v2 = vpop.f32.mrf.mxu0 }
 0x295   : > { %v2038_v19 = vadd.f32 %v2037_v34, %v1921_v2 }
 0x296   : > { %3530 = vst.msk [vmem:[%s4340_s18 + $0x1f8] sm:$0xff] %vm397_vm1, %v1863_v8  ;;  %3651 = vmatmul.msk.f32.gmra.mxu3 %vm397_vm1, %v4361_v54  ;;  %v2161_v26 = vpop.f32.mrf.mxu2 }
 0x297   : > { %v2257_v46 = vadd.f32 %v2161_v26, %v2038_v19  ;;  %3550 = vmatmul.msk.f32.gmra.mxu0 %vm397_vm1, %v4323_v43 }
 0x299   : > { %v2040_v35 = vpop.f32.mrf.mxu1  ;;  %v2321_v48 = vpop.f32.mrf.mxu3 }
 0x29a   : > { %v2417_v5 = vadd.f32 %v2321_v48, %v2257_v46 }
 0x29b   : > { %3618 = vmatmul.msk.f32.gmra.mxu2 %vm397_vm1, %v4893_v24 }
 0x29c   : > { %3584 = vmatmul.msk.f32.gmra.mxu1 %vm397_vm1, %v4851_v61  ;;  %v2449_v15 = vadd.f32 %v4864_v53, %v2417_v5  ;;  %v1924_v49 = vpop.f32.mrf.mxu0 }
 0x29d   : > { %v2041_v11 = vadd.f32 %v2040_v35, %v1924_v49 }
 0x29e   : > { %3667 = vst.msk [vmem:[%s4340_s18 + $0x200] sm:$0xff] %vm397_vm1, %v2449_v15  ;;  %3652 = vmatmul.msk.f32.gmra.mxu3 %vm397_vm1, %v6058_v0  ;;  %v2164_v57 = vpop.f32.mrf.mxu2 }
 0x29f   : > { %v2258_v14 = vadd.f32 %v2164_v57, %v2041_v11  ;;  %3551 = vmatmul.msk.f32.gmra.mxu0 %vm397_vm1, %v4344_v6 }
 0x2a1   : > { %v2043_v3 = vpop.f32.mrf.mxu1  ;;  %v2324_v34 = vpop.f32.mrf.mxu3 }
 0x2a2   : > { %v2418_v13 = vadd.f32 %v2324_v34, %v2258_v14 }
 0x2a3   : > { %3619 = vmatmul.msk.f32.gmra.mxu2 %vm397_vm1, %v4926_v25 }
 0x2a4   : > { %3585 = vmatmul.msk.f32.gmra.mxu1 %vm397_vm1, %v4889_v62  ;;  %v2450_v61 = vadd.f32 %v4864_v53, %v2418_v13  ;;  %v1927_v10 = vpop.f32.mrf.mxu0 }
 0x2a5   : > { %v2044_v8 = vadd.f32 %v2043_v3, %v1927_v10 }
 0x2a6   : > { %3668 = vst.msk [vmem:[%s4340_s18 + $0x208] sm:$0xff] %vm397_vm1, %v2450_v61  ;;  %3653 = vmatmul.msk.f32.gmra.mxu3 %vm397_vm1, %v6060_v1  ;;  %v2167_v2 = vpop.f32.mrf.mxu2 }
 0x2a7   : > { %v2259_v19 = vadd.f32 %v2167_v2, %v2044_v8  ;;  %3552 = vmatmul.msk.f32.gmra.mxu0 %vm397_vm1, %v4361_v54 }
 0x2a9   : > { %v2046_v26 = vpop.f32.mrf.mxu1  ;;  %v2327_v46 = vpop.f32.mrf.mxu3 }
 0x2aa   : > { %v2419_v35 = vadd.f32 %v2327_v46, %v2259_v19 }
 0x2ab   : > { %3620 = vmatmul.msk.f32.gmra.mxu2 %vm397_vm1, %v4930_v18 }
 0x2ac   : > { %3586 = vmatmul.msk.f32.gmra.mxu1 %vm397_vm1, %v4893_v24  ;;  %v2451_v62 = vadd.f32 %v4864_v53, %v2419_v35  ;;  %v1930_v48 = vpop.f32.mrf.mxu0  ;;  %v5378_v53 = vld [vmem:[%s5948_s2] ss:$0 sm:$0xff] }
 0x2ad   : > { %v2047_v5 = vadd.f32 %v2046_v26, %v1930_v48 }
 0x2ae   : > { %3669 = vst.msk [vmem:[%s4340_s18 + $0x210] sm:$0xff] %vm397_vm1, %v2451_v62  ;;  %3654 = vmatmul.msk.f32.gmra.mxu3 %vm397_vm1, %v6062_v56  ;;  %v2170_v15 = vpop.f32.mrf.mxu2 }
 0x2af   : > { %v2260_v49 = vadd.f32 %v2170_v15, %v2047_v5  ;;  %3553 = vmatmul.msk.f32.gmra.mxu0 %vm397_vm1, %v6058_v0 }
 0x2b1   : > { %v2049_v11 = vpop.f32.mrf.mxu1  ;;  %v2330_v57 = vpop.f32.mrf.mxu3 }
 0x2b2   : > { %v2420_v14 = vadd.f32 %v2330_v57, %v2260_v49 }
 0x2b3   : > { %3621 = vmatmul.msk.f32.gmra.mxu2 %vm397_vm1, %v4963_v32 }
 0x2b4   : > { %3587 = vmatmul.msk.f32.gmra.mxu1 %vm397_vm1, %v4926_v25  ;;  %v2452_v24 = vadd.f32 %v5378_v53, %v2420_v14  ;;  %v1933_v3 = vpop.f32.mrf.mxu0 }
 0x2b5   : > { %v2050_v34 = vadd.f32 %v2049_v11, %v1933_v3 }
 0x2b6   : > { %3670 = vst.msk [vmem:[%s4340_s18 + $0x218] sm:$0xff] %vm397_vm1, %v2452_v24  ;;  %3655 = vmatmul.msk.f32.gmra.mxu3 %vm397_vm1, %v6064_v38  ;;  %v2173_v13 = vpop.f32.mrf.mxu2 }
 0x2b7   : > { %v2261_v61 = vadd.f32 %v2173_v13, %v2050_v34  ;;  %3554 = vmatmul.msk.f32.gmra.mxu0 %vm397_vm1, %v6060_v1 }
 0x2b9   : > { %v2052_v25 = vpop.f32.mrf.mxu1  ;;  %v2333_v10 = vpop.f32.mrf.mxu3 }
 0x2ba   : > { %v2421_v8 = vadd.f32 %v2333_v10, %v2261_v61 }
 0x2bb   : > { %3622 = vmatmul.msk.f32.gmra.mxu2 %vm397_vm1, %v4967_v40 }
 0x2bc   : > { %3588 = vmatmul.msk.f32.gmra.mxu1 %vm397_vm1, %v4930_v18  ;;  %v2453_v2 = vadd.f32 %v5378_v53, %v2421_v8  ;;  %v1936_v19 = vpop.f32.mrf.mxu0 }
 0x2bd   : > { %v2053_v26 = vadd.f32 %v2052_v25, %v1936_v19 }
 0x2be   : > { %3671 = vst.msk [vmem:[%s4340_s18 + $0x220] sm:$0xff] %vm397_vm1, %v2453_v2  ;;  %3656 = vmatmul.msk.f32.gmra.mxu3 %vm397_vm1, %v6066_v41  ;;  %v2176_v46 = vpop.f32.mrf.mxu2 }
 0x2bf   : > { %v2262_v35 = vadd.f32 %v2176_v46, %v2053_v26  ;;  %3555 = vmatmul.msk.f32.gmra.mxu0 %vm397_vm1, %v6062_v56 }
 0x2c1   : > { %v2055_v62 = vpop.f32.mrf.mxu1  ;;  %v2336_v48 = vpop.f32.mrf.mxu3 }
 0x2c2   : > { %v2422_v5 = vadd.f32 %v2336_v48, %v2262_v35 }
 0x2c3   : > { %3623 = vmatmul.msk.f32.gmra.mxu2 %vm397_vm1, %v5000_v33 }
 0x2c4   : > { %3589 = vmatmul.msk.f32.gmra.mxu1 %vm397_vm1, %v4963_v32  ;;  %v2454_v18 = vadd.f32 %v5378_v53, %v2422_v5  ;;  %v1939_v15 = vpop.f32.mrf.mxu0 }
 0x2c5   : > { %v2056_v49 = vadd.f32 %v2055_v62, %v1939_v15 }
 0x2c6   : > { %3672 = vst.msk [vmem:[%s4340_s18 + $0x228] sm:$0xff] %vm397_vm1, %v2454_v18  ;;  %3657 = vmatmul.msk.f32.gmra.mxu3 %vm397_vm1, %v6068_v16  ;;  %v2179_v11 = vpop.f32.mrf.mxu2 }
 0x2c7   : > { %v2263_v57 = vadd.f32 %v2179_v11, %v2056_v49  ;;  %3556 = vmatmul.msk.f32.gmra.mxu0 %vm397_vm1, %v6064_v38 }
 0x2c9   : > { %v2058_v14 = vpop.f32.mrf.mxu1  ;;  %v2339_v24 = vpop.f32.mrf.mxu3 }
 0x2ca   : > { %v2423_v3 = vadd.f32 %v2339_v24, %v2263_v57 }
 0x2cb   : > { %3624 = vmatmul.msk.f32.gmra.mxu2 %vm397_vm1, %v5004_v51 }
 0x2cc   : > { %3590 = vmatmul.msk.f32.gmra.mxu1 %vm397_vm1, %v4967_v40  ;;  %v2455_v32 = vadd.f32 %v5378_v53, %v2423_v3  ;;  %v1942_v34 = vpop.f32.mrf.mxu0 }
 0x2cd   : > { %v2059_v13 = vadd.f32 %v2058_v14, %v1942_v34 }
 0x2ce   : > { %3673 = vst.msk [vmem:[%s4340_s18 + $0x230] sm:$0xff] %vm397_vm1, %v2455_v32  ;;  %3658 = vmatmul.msk.f32.gmra.mxu3 %vm397_vm1, %v6070_v58  ;;  %v2182_v61 = vpop.f32.mrf.mxu2 }
 0x2cf   : > { %v2264_v25 = vadd.f32 %v2182_v61, %v2059_v13  ;;  %3557 = vmatmul.msk.f32.gmra.mxu0 %vm397_vm1, %v6066_v41 }
 0x2d1   : > { %v2061_v10 = vpop.f32.mrf.mxu1  ;;  %v2342_v8 = vpop.f32.mrf.mxu3 }
 0x2d2   : > { %v2424_v2 = vadd.f32 %v2342_v8, %v2264_v25 }
 0x2d3   : > { %3625 = vmatmul.msk.f32.gmra.mxu2 %vm397_vm1, %v5037_v29 }
 0x2d4   : > { %3591 = vmatmul.msk.f32.gmra.mxu1 %vm397_vm1, %v5000_v33  ;;  %v2456_v40 = vadd.f32 %v5378_v53, %v2424_v2  ;;  %v1945_v19 = vpop.f32.mrf.mxu0 }
 0x2d5   : > { %v2062_v26 = vadd.f32 %v2061_v10, %v1945_v19 }
 0x2d6   : > { %3674 = vst.msk [vmem:[%s4340_s18 + $0x238] sm:$0xff] %vm397_vm1, %v2456_v40  ;;  %3659 = vmatmul.msk.f32.gmra.mxu3 %vm397_vm1, %v6072_v23  ;;  %v2185_v46 = vpop.f32.mrf.mxu2 }
 0x2d7   : > { %v2265_v35 = vadd.f32 %v2185_v46, %v2062_v26  ;;  %3558 = vmatmul.msk.f32.gmra.mxu0 %vm397_vm1, %v6068_v16 }
 0x2d9   : > { %v2064_v62 = vpop.f32.mrf.mxu1  ;;  %v2345_v48 = vpop.f32.mrf.mxu3 }
 0x2da   : > { %v2425_v5 = vadd.f32 %v2345_v48, %v2265_v35 }
 0x2db   : > { %3626 = vmatmul.msk.f32.gmra.mxu2 %vm397_vm1, %v5041_v30 }
 0x2dc   : > { %3592 = vmatmul.msk.f32.gmra.mxu1 %vm397_vm1, %v5004_v51  ;;  %v2457_v33 = vadd.f32 %v5378_v53, %v2425_v5  ;;  %v1948_v18 = vpop.f32.mrf.mxu0 }
 0x2dd   : > { %v2065_v15 = vadd.f32 %v2064_v62, %v1948_v18  ;;  %v6079_v62 = vld [vmem:[#allocation31_spill] sm:$0xff] }
 0x2de   : > { %3675 = vst.msk [vmem:[%s4340_s18 + $0x240] sm:$0xff] %vm397_vm1, %v2457_v33  ;;  %3660 = vmatmul.msk.f32.gmra.mxu3 %vm397_vm1, %v4502_v59  ;;  %v2188_v49 = vpop.f32.mrf.mxu2  ;;  %v6080_v33 = vld [vmem:[#allocation10_spill] sm:$0xff] }
 0x2df   : > { %v2266_v11 = vadd.f32 %v2188_v49, %v2065_v15  ;;  %3559 = vmatmul.msk.f32.gmra.mxu0 %vm397_vm1, %v6070_v58 }
 0x2e1   : > { %v2067_v57 = vpop.f32.mrf.mxu1  ;;  %v2348_v14 = vpop.f32.mrf.mxu3 }
 0x2e2   : > { %v2426_v24 = vadd.f32 %v2348_v14, %v2266_v11 }
 0x2e3   : > { %3627 = vmatmul.msk.f32.gmra.mxu2 %vm397_vm1, %v5074_v9 }
 0x2e4   : > { %3593 = vmatmul.msk.f32.gmra.mxu1 %vm397_vm1, %v5037_v29  ;;  %v2458_v51 = vadd.f32 %v5378_v53, %v2426_v24  ;;  %v1951_v3 = vpop.f32.mrf.mxu0 }
 0x2e5   : > { %v2068_v32 = vadd.f32 %v2067_v57, %v1951_v3  ;;  %v6081_v57 = vld [vmem:[#allocation32_spill] sm:$0xff]  ;;  %v5484_v3 = vld [vmem:[%s4041_s8 + $0x1a0] sm:$0xff] }
 0x2e6   : > { %3676 = vst.msk [vmem:[%s4340_s18 + $0x248] sm:$0xff] %vm397_vm1, %v2458_v51  ;;  %3661 = vmatmul.msk.f32.gmra.mxu3 %vm397_vm1, %v4520_v12  ;;  %v2191_v34 = vpop.f32.mrf.mxu2  ;;  %v5481_v51 = vld [vmem:[%s4041_s8 + $0x198] sm:$0xff] }
 0x2e7   : > { %v2267_v13 = vadd.f32 %v2191_v34, %v2068_v32  ;;  %3560 = vmatmul.msk.f32.gmra.mxu0 %vm397_vm1, %v6072_v23 }
 0x2e9   : > { %v2070_v61 = vpop.f32.mrf.mxu1  ;;  %v2351_v25 = vpop.f32.mrf.mxu3 }
 0x2ea   : > { %v2427_v10 = vadd.f32 %v2351_v25, %v2267_v13 }
 0x2eb   : > { %3628 = vmatmul.msk.f32.gmra.mxu2 %vm397_vm1, %v5078_v45 }
 0x2ec   : > { %3594 = vmatmul.msk.f32.gmra.mxu1 %vm397_vm1, %v5041_v30  ;;  %v2459_v29 = vadd.f32 %v5378_v53, %v2427_v10  ;;  %v1954_v8 = vpop.f32.mrf.mxu0 }
 0x2ed   : > { %v2071_v2 = vadd.f32 %v2070_v61, %v1954_v8  ;;  %v2293_v61 = vrot.slane %v5484_v3, 1 }
 0x2ee   : > { %3677 = vst.msk [vmem:[%s4340_s18 + $0x250] sm:$0xff] %vm397_vm1, %v2459_v29  ;;  %3662 = vmatmul.msk.f32.gmra.mxu3 %vm397_vm1, %v4550_v50  ;;  %v2194_v40 = vpop.f32.mrf.mxu2 }
 0x2ef   : > { %v2268_v19 = vadd.f32 %v2194_v40, %v2071_v2  ;;  %3561 = vmatmul.msk.f32.gmra.mxu0 %vm397_vm1, %v4502_v59 }
 0x2f1   : > { %v2073_v26 = vpop.f32.mrf.mxu1  ;;  %v2354_v46 = vpop.f32.mrf.mxu3 }
 0x2f2   : > { %v2428_v35 = vadd.f32 %v2354_v46, %v2268_v19  ;;  %v5503_v19 = vld [vmem:[%s4041_s8 + $0x1a8] sm:$0x3] }
 0x2f3   : > { %3629 = vmatmul.msk.f32.gmra.mxu2 %vm397_vm1, %v6079_v62 }
 0x2f4   : > { %3595 = vmatmul.msk.f32.gmra.mxu1 %vm397_vm1, %v5074_v9  ;;  %v2460_v30 = vadd.f32 %v5378_v53, %v2428_v35  ;;  %v1957_v48 = vpop.f32.mrf.mxu0 }
 0x2f5   : > { %v2074_v5 = vadd.f32 %v2073_v26, %v1957_v48 }
 0x2f6   : > { %3678 = vst.msk [vmem:[%s4340_s18 + $0x258] sm:$0xff] %vm397_vm1, %v2460_v30  ;;  %3663 = vmatmul.msk.f32.gmra.mxu3 %vm397_vm1, %v6080_v33  ;;  %v2197_v18 = vpop.f32.mrf.mxu2  ;;  %v2295_v30 = vrot.slane %v5503_v19, 1 }
 0x2f7   : > { %v2269_v15 = vadd.f32 %v2197_v18, %v2074_v5  ;;  %3562 = vmatmul.msk.f32.gmra.mxu0 %vm397_vm1, %v4520_v12 }
 0x2f8   : > { %v5515_v18 = vsel %vm316_vm2, %v2293_v61, %v2295_v30  ;;  %v6084_v30 = vld [vmem:[#allocation14_spill] sm:$0xff] }
 0x2f9   : > { %v2076_v49 = vpop.f32.mrf.mxu1  ;;  %v2357_v11 = vpop.f32.mrf.mxu3 }
 0x2fa   : > { %v2429_v9 = vadd.f32 %v2357_v11, %v2269_v15 }
 0x2fb   : > { %3630 = vmatmul.msk.f32.gmra.mxu2 %vm397_vm1, %v6081_v57 }
 0x2fc   : > { %3596 = vmatmul.msk.f32.gmra.mxu1 %vm397_vm1, %v5078_v45  ;;  %v2461_v14 = vadd.f32 %v5378_v53, %v2429_v9  ;;  %v1960_v24 = vpop.f32.mrf.mxu0  ;;  %v2292_v45 = vrot.slane %v5481_v51, 1 }
 0x2fd   : > { %v2077_v32 = vadd.f32 %v2076_v49, %v1960_v24 }
 0x2fe   : > { %3679 = vst.msk [vmem:[%s4340_s18 + $0x260] sm:$0xff] %vm397_vm1, %v2461_v14  ;;  %3664 = vmatmul.msk.f32.gmra.mxu3 %vm397_vm1, %v4578_v21  ;;  %v2200_v34 = vpop.f32.mrf.mxu2  ;;  %v5497_v8 = vsel %vm316_vm2, %v2292_v45, %v2293_v61  ;;  %v6082_v61 = vld [vmem:[#allocation13_spill] sm:$0xff] }
 0x2ff   : > { %v2270_v13 = vadd.f32 %v2200_v34, %v2077_v32  ;;  %3563 = vmatmul.msk.f32.gmra.mxu0 %vm397_vm1, %v4550_v50 }
 0x301   : > { %v2079_v25 = vpop.f32.mrf.mxu1  ;;  %v2360_v10 = vpop.f32.mrf.mxu3 }
 0x302   : > { %v2430_v29 = vadd.f32 %v2360_v10, %v2270_v13 }
 0x303   : > { %3631 = vmatmul.msk.f32.gmra.mxu2 %vm397_vm1, %v5481_v51 }
 0x304   : > { %3597 = vmatmul.msk.f32.gmra.mxu1 %vm397_vm1, %v6079_v62  ;;  %v2462_v2 = vadd.f32 %v5378_v53, %v2430_v29  ;;  %v1963_v40 = vpop.f32.mrf.mxu0  ;;  %v6083_v29 = vld [vmem:[#allocation11_spill] sm:$0xff] }
 0x305   : > { %v2080_v26 = vadd.f32 %v2079_v25, %v1963_v40 }
 0x306   : > { %3680 = vst.msk [vmem:[%s4340_s18 + $0x268] sm:$0xff] %vm397_vm1, %v2462_v2  ;;  %3665 = vmatmul.msk.f32.gmra.mxu3 %vm397_vm1, %v5497_v8  ;;  %v2203_v46 = vpop.f32.mrf.mxu2 }
 0x307   : > { %v2271_v35 = vadd.f32 %v2203_v46, %v2080_v26  ;;  %3564 = vmatmul.msk.f32.gmra.mxu0 %vm397_vm1, %v6080_v33 }
 0x309   : > { %v2082_v62 = vpop.f32.mrf.mxu1  ;;  %v2363_v48 = vpop.f32.mrf.mxu3 }
 0x30a   : > { %v2431_v5 = vadd.f32 %v2363_v48, %v2271_v35 }
 0x30b   : > { %3632 = vmatmul.msk.f32.gmra.mxu2 %vm397_vm1, %v5484_v3 }
 0x30c   : > { %3598 = vmatmul.msk.f32.gmra.mxu1 %vm397_vm1, %v6081_v57  ;;  %v2463_v15 = vadd.f32 %v5378_v53, %v2431_v5  ;;  %v1966_v49 = vpop.f32.mrf.mxu0  ;;  %v6085_v5 = vld [vmem:[#allocation12_spill] sm:$0xff] }
 0x30d   : > { %v2083_v11 = vadd.f32 %v2082_v62, %v1966_v49 }
 0x30e   : > { %3681 = vst.msk [vmem:[%s4340_s18 + $0x270] sm:$0xff] %vm397_vm1, %v2463_v15  ;;  %3666 = vmatmul.msk.f32.gmra.mxu3 %vm397_vm1, %v5515_v18  ;;  %v2206_v9 = vpop.f32.mrf.mxu2 }
 0x30f   : > { %v2272_v14 = vadd.f32 %v2206_v9, %v2083_v11  ;;  %3565 = vmatmul.msk.f32.gmra.mxu0 %vm397_vm1, %v4578_v21 }
 0x311   : > { %v2085_v24 = vpop.f32.mrf.mxu1  ;;  %v2366_v32 = vpop.f32.mrf.mxu3 }
 0x312   : > { %v2432_v34 = vadd.f32 %v2366_v32, %v2272_v14 }
 0x313   : > { %3769 = vmatmul.msk.f32.vlgmr.msrb.gmra.mxu2 %vm397_vm1, %v4106_v28 }
 0x314   : > { %3735 = vmatmul.msk.f32.vlgmr.msrb.gmra.mxu1 %vm397_vm1, %v4067_v17  ;;  %v2464_v57 = vadd.f32 %v5378_v53, %v2432_v34  ;;  %v1969_v13 = vpop.f32.mrf.mxu0 }
 0x315   : > { %v2086_v45 = vadd.f32 %v2085_v24, %v1969_v13  ;;  %v6086_v24 = vld [vmem:[#allocation15_spill] sm:$0xff] }
 0x316   : > { %3682 = vst.msk [vmem:[%s4340_s18 + $0x278] sm:$0xff] %vm397_vm1, %v2464_v57  ;;  %3803 = vmatmul.msk.f32.vlgmr.msrb.gmra.mxu3 %vm397_vm1, %v6082_v61  ;;  %v2209_v25 = vpop.f32.mrf.mxu2 }
 0x317   : > { %v2273_v10 = vadd.f32 %v2209_v25, %v2086_v45  ;;  %3702 = vmatmul.msk.f32.vlgmr.msrb.gmra.mxu0 %vm397_vm1, %v6083_v29  ;;  %v6087_v29 = vld [vmem:[#allocation16_spill] sm:$0xff] }
 0x319   : > { %v2088_v2 = vpop.f32.mrf.mxu1  ;;  %v2369_v40 = vpop.f32.mrf.mxu3 }
 0x31a   : > { %v2433_v26 = vadd.f32 %v2369_v40, %v2273_v10 }
 0x31b   : > { %3770 = vmatmul.msk.f32.gmra.mxu2 %vm397_vm1, %v4121_v31 }
 0x31c   : > { %3736 = vmatmul.msk.f32.gmra.mxu1 %vm397_vm1, %v4084_v22  ;;  %v2465_v17 = vadd.f32 %v5378_v53, %v2433_v26  ;;  %v1972_v46 = vpop.f32.mrf.mxu0 }
 0x31d   : > { %v2089_v35 = vadd.f32 %v2088_v2, %v1972_v46 }
 0x31e   : > { %3683 = vst.msk [vmem:[%s4340_s18 + $0x280] sm:$0xff] %vm397_vm1, %v2465_v17  ;;  %3804 = vmatmul.msk.f32.gmra.mxu3 %vm397_vm1, %v6084_v30  ;;  %v2212_v62 = vpop.f32.mrf.mxu2 }
 0x31f   : > { %v2274_v48 = vadd.f32 %v2212_v62, %v2089_v35  ;;  %3703 = vmatmul.msk.f32.gmra.mxu0 %vm397_vm1, %v6085_v5  ;;  %v6088_v62 = vld [vmem:[#allocation17_spill] sm:$0xff] }
 0x321   : > { %v2091_v15 = vpop.f32.mrf.mxu1  ;;  %v2372_v49 = vpop.f32.mrf.mxu3 }
 0x322   : > { %v2434_v11 = vadd.f32 %v2372_v49, %v2274_v48 }
 0x323   : > { %3771 = vmatmul.msk.f32.gmra.mxu2 %vm397_vm1, %v4140_v36 }
 0x324   : > { %3737 = vmatmul.msk.f32.gmra.mxu1 %vm397_vm1, %v4106_v28  ;;  %v2466_v22 = vadd.f32 %v5378_v53, %v2434_v11  ;;  %v1975_v9 = vpop.f32.mrf.mxu0 }
 0x325   : > { %v2092_v14 = vadd.f32 %v2091_v15, %v1975_v9  ;;  %v6089_v9 = vld [vmem:[#allocation18_spill] sm:$0xff] }
 0x326   : > { %3684 = vst.msk [vmem:[%s4340_s18 + $0x288] sm:$0xff] %vm397_vm1, %v2466_v22  ;;  %3805 = vmatmul.msk.f32.gmra.mxu3 %vm397_vm1, %v6086_v24  ;;  %v2215_v32 = vpop.f32.mrf.mxu2 }
 0x327   : > { %v2275_v34 = vadd.f32 %v2215_v32, %v2092_v14  ;;  %3704 = vmatmul.msk.f32.gmra.mxu0 %vm397_vm1, %v6082_v61 }
 0x329   : > { %v2094_v57 = vpop.f32.mrf.mxu1  ;;  %v2375_v13 = vpop.f32.mrf.mxu3 }
 0x32a   : > { %v2435_v45 = vadd.f32 %v2375_v13, %v2275_v34 }
 0x32b   : > { %3772 = vmatmul.msk.f32.gmra.mxu2 %vm397_vm1, %v4155_v39 }
 0x32c   : > { %3738 = vmatmul.msk.f32.gmra.mxu1 %vm397_vm1, %v4121_v31  ;;  %v2467_v28 = vadd.f32 %v5378_v53, %v2435_v45  ;;  %v1978_v25 = vpop.f32.mrf.mxu0 }
 0x32d   : > { %v2095_v10 = vadd.f32 %v2094_v57, %v1978_v25 }
 0x32e   : > { %3685 = vst.msk [vmem:[%s4340_s18 + $0x290] sm:$0xff] %vm397_vm1, %v2467_v28  ;;  %3806 = vmatmul.msk.f32.gmra.mxu3 %vm397_vm1, %v6087_v29  ;;  %v2218_v61 = vpop.f32.mrf.mxu2  ;;  %v6090_v28 = vld [vmem:[#allocation19_spill] sm:$0xff] }
 0x32f   : > { %v2276_v2 = vadd.f32 %v2218_v61, %v2095_v10  ;;  %3705 = vmatmul.msk.f32.gmra.mxu0 %vm397_vm1, %v6084_v30 }
 0x331   : > { %v2097_v40 = vpop.f32.mrf.mxu1  ;;  %v2378_v26 = vpop.f32.mrf.mxu3 }
 0x332   : > { %v2436_v17 = vadd.f32 %v2378_v26, %v2276_v2 }
 0x333   : > { %3773 = vmatmul.msk.f32.gmra.mxu2 %vm397_vm1, %v4174_v44 }
 0x334   : > { %3739 = vmatmul.msk.f32.gmra.mxu1 %vm397_vm1, %v4140_v36  ;;  %v2468_v31 = vadd.f32 %v5378_v53, %v2436_v17  ;;  %v1981_v46 = vpop.f32.mrf.mxu0  ;;  %v6091_v17 = vld [vmem:[#allocation20_spill] sm:$0xff] }
 0x335   : > { %v2098_v35 = vadd.f32 %v2097_v40, %v1981_v46 }
 0x336   : > { %3686 = vst.msk [vmem:[%s4340_s18 + $0x298] sm:$0xff] %vm397_vm1, %v2468_v31  ;;  %3807 = vmatmul.msk.f32.gmra.mxu3 %vm397_vm1, %v6088_v62  ;;  %v2221_v30 = vpop.f32.mrf.mxu2 }
 0x337   : > { %v2277_v48 = vadd.f32 %v2221_v30, %v2098_v35  ;;  %3706 = vmatmul.msk.f32.gmra.mxu0 %vm397_vm1, %v6086_v24 }
 0x339   : > { %v2100_v5 = vpop.f32.mrf.mxu1  ;;  %v2381_v15 = vpop.f32.mrf.mxu3 }
 0x33a   : > { %v2437_v49 = vadd.f32 %v2381_v15, %v2277_v48  ;;  %v6092_v15 = vld [vmem:[#allocation21_spill] sm:$0xff] }
 0x33b   : > { %3774 = vmatmul.msk.f32.gmra.mxu2 %vm397_vm1, %v4189_v47 }
 0x33c   : > { %3740 = vmatmul.msk.f32.gmra.mxu1 %vm397_vm1, %v4155_v39  ;;  %v2469_v36 = vadd.f32 %v5378_v53, %v2437_v49  ;;  %v1984_v11 = vpop.f32.mrf.mxu0 }
 0x33d   : > { %v2101_v22 = vadd.f32 %v2100_v5, %v1984_v11 }
 0x33e   : > { %3687 = vst.msk [vmem:[%s4340_s18 + $0x2a0] sm:$0xff] %vm397_vm1, %v2469_v36  ;;  %3808 = vmatmul.msk.f32.gmra.mxu3 %vm397_vm1, %v6089_v9  ;;  %v2224_v14 = vpop.f32.mrf.mxu2 }
 0x33f   : > { %v2278_v24 = vadd.f32 %v2224_v14, %v2101_v22  ;;  %3707 = vmatmul.msk.f32.gmra.mxu0 %vm397_vm1, %v6087_v29 }
 0x341   : > { %v2103_v32 = vpop.f32.mrf.mxu1  ;;  %v2384_v34 = vpop.f32.mrf.mxu3 }
 0x342   : > { %v2438_v57 = vadd.f32 %v2384_v34, %v2278_v24 }
 0x343   : > { %3775 = vmatmul.msk.f32.gmra.mxu2 %vm397_vm1, %v4208_v52 }
 0x344   : > { %3741 = vmatmul.msk.f32.gmra.mxu1 %vm397_vm1, %v4174_v44  ;;  %v2470_v39 = vadd.f32 %v5378_v53, %v2438_v57  ;;  %v1987_v13 = vpop.f32.mrf.mxu0 }
 0x345   : > { %v2104_v45 = vadd.f32 %v2103_v32, %v1987_v13  ;;  %v6093_v32 = vld [vmem:[#allocation22_spill] sm:$0xff] }
 0x346   : > { %3688 = vst.msk [vmem:[%s4340_s18 + $0x2a8] sm:$0xff] %vm397_vm1, %v2470_v39  ;;  %3809 = vmatmul.msk.f32.gmra.mxu3 %vm397_vm1, %v6090_v28  ;;  %v2227_v25 = vpop.f32.mrf.mxu2 }
 0x347   : > { %v2279_v10 = vadd.f32 %v2227_v25, %v2104_v45  ;;  %3708 = vmatmul.msk.f32.gmra.mxu0 %vm397_vm1, %v6088_v62 }
 0x349   : > { %v2106_v29 = vpop.f32.mrf.mxu1  ;;  %v2387_v61 = vpop.f32.mrf.mxu3 }
 0x34a   : > { %v2439_v2 = vadd.f32 %v2387_v61, %v2279_v10  ;;  %v6094_v10 = vld [vmem:[#allocation23_spill] sm:$0xff] }
 0x34b   : > { %3776 = vmatmul.msk.f32.gmra.mxu2 %vm397_vm1, %v4223_v55 }
 0x34c   : > { %3742 = vmatmul.msk.f32.gmra.mxu1 %vm397_vm1, %v4189_v47  ;;  %v2471_v44 = vadd.f32 %v5378_v53, %v2439_v2  ;;  %v1990_v40 = vpop.f32.mrf.mxu0 }
 0x34d   : > { %v2107_v26 = vadd.f32 %v2106_v29, %v1990_v40 }
 0x34e   : > { %3689 = vst.msk [vmem:[%s4340_s18 + $0x2b0] sm:$0xff] %vm397_vm1, %v2471_v44  ;;  %3810 = vmatmul.msk.f32.gmra.mxu3 %vm397_vm1, %v6091_v17  ;;  %v2230_v31 = vpop.f32.mrf.mxu2 }
 0x34f   : > { %v2280_v46 = vadd.f32 %v2230_v31, %v2107_v26  ;;  %3709 = vmatmul.msk.f32.gmra.mxu0 %vm397_vm1, %v6089_v9  ;;  %v6095_v31 = vld [vmem:[#allocation24_spill] sm:$0xff] }
 0x351   : > { %v2109_v35 = vpop.f32.mrf.mxu1  ;;  %v2390_v62 = vpop.f32.mrf.mxu3 }
 0x352   : > { %v2440_v30 = vadd.f32 %v2390_v62, %v2280_v46 }
 0x353   : > { %3777 = vmatmul.msk.f32.gmra.mxu2 %vm397_vm1, %v4242_v60 }
 0x354   : > { %3743 = vmatmul.msk.f32.gmra.mxu1 %vm397_vm1, %v4208_v52  ;;  %v2472_v47 = vadd.f32 %v5378_v53, %v2440_v30  ;;  %v1993_v48 = vpop.f32.mrf.mxu0 }
 0x355   : > { %v2110_v5 = vadd.f32 %v2109_v35, %v1993_v48 }
 0x356   : > { %3690 = vst.msk [vmem:[%s4340_s18 + $0x2b8] sm:$0xff] %vm397_vm1, %v2472_v47  ;;  %3811 = vmatmul.msk.f32.gmra.mxu3 %vm397_vm1, %v6092_v15  ;;  %v2233_v49 = vpop.f32.mrf.mxu2 }
 0x357   : > { %v2281_v36 = vadd.f32 %v2233_v49, %v2110_v5  ;;  %3710 = vmatmul.msk.f32.gmra.mxu0 %vm397_vm1, %v6090_v28 }
 0x359   : > { %v2112_v11 = vpop.f32.mrf.mxu1  ;;  %v2393_v22 = vpop.f32.mrf.mxu3 }
 0x35a   : > { %v2441_v9 = vadd.f32 %v2393_v22, %v2281_v36 }
 0x35b   : > { %3778 = vmatmul.msk.f32.gmra.mxu2 %vm397_vm1, %v4257_v63 }
 0x35c   : > { %3744 = vmatmul.msk.f32.gmra.mxu1 %vm397_vm1, %v4223_v55  ;;  %v2473_v52 = vadd.f32 %v5378_v53, %v2441_v9  ;;  %v1996_v14 = vpop.f32.mrf.mxu0 }
 0x35d   : > { %v2113_v24 = vadd.f32 %v2112_v11, %v1996_v14 }
 0x35e   : > { %3691 = vst.msk [vmem:[%s4340_s18 + $0x2c0] sm:$0xff] %vm397_vm1, %v2473_v52  ;;  %3812 = vmatmul.msk.f32.gmra.mxu3 %vm397_vm1, %v6093_v32  ;;  %v2236_v34 = vpop.f32.mrf.mxu2 }
 0x35f   : > { %v2282_v57 = vadd.f32 %v2236_v34, %v2113_v24  ;;  %3711 = vmatmul.msk.f32.gmra.mxu0 %vm397_vm1, %v6091_v17  ;;  %v6097_v24 = vld [vmem:[#allocation26_spill] sm:$0xff] }
 0x361   : > { %v2115_v39 = vpop.f32.mrf.mxu1  ;;  %v2396_v13 = vpop.f32.mrf.mxu3 }
 0x362   : > { %v2442_v45 = vadd.f32 %v2396_v13, %v2282_v57 }
 0x363   : > { %3779 = vmatmul.msk.f32.gmra.mxu2 %vm397_vm1, %v4276_v4 }
 0x364   : > { %3745 = vmatmul.msk.f32.gmra.mxu1 %vm397_vm1, %v4242_v60  ;;  %v2474_v55 = vadd.f32 %v5378_v53, %v2442_v45  ;;  %v1999_v28 = vpop.f32.mrf.mxu0 }
 0x365   : > { %v2116_v25 = vadd.f32 %v2115_v39, %v1999_v28  ;;  %v6098_v28 = vld [vmem:[#allocation27_spill] sm:$0xff] }
 0x366   : > { %3692 = vst.msk [vmem:[%s4340_s18 + $0x2c8] sm:$0xff] %vm397_vm1, %v2474_v55  ;;  %3813 = vmatmul.msk.f32.gmra.mxu3 %vm397_vm1, %v6094_v10  ;;  %v2239_v29 = vpop.f32.mrf.mxu2 }
 0x367   : > { %v2283_v61 = vadd.f32 %v2239_v29, %v2116_v25  ;;  %3712 = vmatmul.msk.f32.gmra.mxu0 %vm397_vm1, %v6092_v15  ;;  %v6096_v15 = vld [vmem:[#allocation25_spill] sm:$0xff] }
 0x369   : > { %v2118_v2 = vpop.f32.mrf.mxu1  ;;  %v2399_v44 = vpop.f32.mrf.mxu3 }
 0x36a   : > { %v2443_v40 = vadd.f32 %v2399_v44, %v2283_v61 }
 0x36b   : > { %3780 = vmatmul.msk.f32.gmra.mxu2 %vm397_vm1, %v4288_v7 }
 0x36c   : > { %3746 = vmatmul.msk.f32.gmra.mxu1 %vm397_vm1, %v4257_v63  ;;  %v2475_v60 = vadd.f32 %v5378_v53, %v2443_v40  ;;  %v2002_v26 = vpop.f32.mrf.mxu0 }
 0x36d   : > { %v2119_v17 = vadd.f32 %v2118_v2, %v2002_v26 }
 0x36e   : > { %3693 = vst.msk [vmem:[%s4340_s18 + $0x2d0] sm:$0xff] %vm397_vm1, %v2475_v60  ;;  %3814 = vmatmul.msk.f32.gmra.mxu3 %vm397_vm1, %v6095_v31  ;;  %v2242_v46 = vpop.f32.mrf.mxu2  ;;  %v6099_v60 = vld [vmem:[#allocation28_spill] sm:$0xff] }
 0x36f   : > { %v2284_v35 = vadd.f32 %v2242_v46, %v2119_v17  ;;  %3713 = vmatmul.msk.f32.gmra.mxu0 %vm397_vm1, %v6093_v32 }
 0x371   : > { %v2121_v62 = vpop.f32.mrf.mxu1  ;;  %v2402_v30 = vpop.f32.mrf.mxu3 }
 0x372   : > { %v2444_v47 = vadd.f32 %v2402_v30, %v2284_v35 }
 0x373   : > { %3781 = vmatmul.msk.f32.gmra.mxu2 %vm397_vm1, %v4300_v20 }
 0x374   : > { %3747 = vmatmul.msk.f32.gmra.mxu1 %vm397_vm1, %v4276_v4  ;;  %v2476_v63 = vadd.f32 %v5378_v53, %v2444_v47  ;;  %v2005_v48 = vpop.f32.mrf.mxu0  ;;  %v6100_v47 = vld [vmem:[#allocation29_spill] sm:$0xff] }
 0x375   : > { %v2122_v5 = vadd.f32 %v2121_v62, %v2005_v48 }
 0x376   : > { %3694 = vst.msk [vmem:[%s4340_s18 + $0x2d8] sm:$0xff] %vm397_vm1, %v2476_v63  ;;  %3815 = vmatmul.msk.f32.gmra.mxu3 %vm397_vm1, %v6096_v15  ;;  %v2245_v49 = vpop.f32.mrf.mxu2 }
 0x377   : > { %v2285_v36 = vadd.f32 %v2245_v49, %v2122_v5  ;;  %3714 = vmatmul.msk.f32.gmra.mxu0 %vm397_vm1, %v6094_v10 }
 0x379   : > { %v2124_v11 = vpop.f32.mrf.mxu1  ;;  %v2405_v22 = vpop.f32.mrf.mxu3 }
 0x37a   : > { %v2445_v9 = vadd.f32 %v2405_v22, %v2285_v36  ;;  %v6101_v22 = vld [vmem:[#allocation2_spill] sm:$0xff] }
 0x37b   : > { %3782 = vmatmul.msk.f32.gmra.mxu2 %vm397_vm1, %v4311_v27 }
 0x37c   : > { %3748 = vmatmul.msk.f32.gmra.mxu1 %vm397_vm1, %v4288_v7  ;;  %v2477_v4 = vadd.f32 %v5378_v53, %v2445_v9  ;;  %v2008_v52 = vpop.f32.mrf.mxu0 }
 0x37d   : > { %v2125_v14 = vadd.f32 %v2124_v11, %v2008_v52 }
 0x37e   : > { %3695 = vst.msk [vmem:[%s4340_s18 + $0x2e0] sm:$0xff] %vm397_vm1, %v2477_v4  ;;  %3816 = vmatmul.msk.f32.gmra.mxu3 %vm397_vm1, %v6097_v24  ;;  %v2248_v32 = vpop.f32.mrf.mxu2 }
 0x37f   : > { %v2286_v34 = vadd.f32 %v2248_v32, %v2125_v14  ;;  %3715 = vmatmul.msk.f32.gmra.mxu0 %vm397_vm1, %v6095_v31 }
 0x381   : > { %v2127_v57 = vpop.f32.mrf.mxu1  ;;  %v2408_v39 = vpop.f32.mrf.mxu3 }
 0x382   : > { %v2446_v13 = vadd.f32 %v2408_v39, %v2286_v34 }
 0x383   : > { %3783 = vmatmul.msk.f32.gmra.mxu2 %vm397_vm1, %v4323_v43 }
 0x384   : > { %3749 = vmatmul.msk.f32.gmra.mxu1 %vm397_vm1, %v4300_v20  ;;  %v2478_v7 = vadd.f32 %v5378_v53, %v2446_v13  ;;  %v2011_v45 = vpop.f32.mrf.mxu0 }
 0x385   : > { %v2128_v55 = vadd.f32 %v2127_v57, %v2011_v45  ;;  %v6102_v57 = vld [vmem:[#allocation3_spill] sm:$0xff] }
 0x386   : > { %3696 = vst.msk [vmem:[%s4340_s18 + $0x2e8] sm:$0xff] %vm397_vm1, %v2478_v7  ;;  %3817 = vmatmul.msk.f32.gmra.mxu3 %vm397_vm1, %v6098_v28  ;;  %v2251_v25 = vpop.f32.mrf.mxu2 }
 0x387   : > { %v2287_v10 = vadd.f32 %v2251_v25, %v2128_v55  ;;  %3716 = vmatmul.msk.f32.gmra.mxu0 %vm397_vm1, %v6096_v15 }
 0x389   : > { %v2130_v29 = vpop.f32.mrf.mxu1  ;;  %v2411_v61 = vpop.f32.mrf.mxu3 }
 0x38a   : > { %v2447_v2 = vadd.f32 %v2411_v61, %v2287_v10  ;;  %v6103_v10 = vld [vmem:[#allocation4_spill] sm:$0xff] }
 0x38b   : > { %3784 = vmatmul.msk.f32.gmra.mxu2 %vm397_vm1, %v4344_v6 }
 0x38c   : > { %3750 = vmatmul.msk.f32.gmra.mxu1 %vm397_vm1, %v4311_v27  ;;  %v2479_v20 = vadd.f32 %v5378_v53, %v2447_v2  ;;  %v2014_v44 = vpop.f32.mrf.mxu0 }
 0x38d   : > { %v2131_v40 = vadd.f32 %v2130_v29, %v2014_v44 }
 0x38e   : > { %3697 = vst.msk [vmem:[%s4340_s18 + $0x2f0] sm:$0xff] %vm397_vm1, %v2479_v20  ;;  %3818 = vmatmul.msk.f32.gmra.mxu3 %vm397_vm1, %v6099_v60  ;;  %v2254_v26 = vpop.f32.mrf.mxu2 }
 0x38f   : > { %v2288_v17 = vadd.f32 %v2254_v26, %v2131_v40  ;;  %3717 = vmatmul.msk.f32.gmra.mxu0 %vm397_vm1, %v6097_v24  ;;  %v6104_v26 = vld [vmem:[#allocation5_spill] sm:$0xff] }
 0x391   : > { %v2654_v31 = vpop.f32.mrf.mxu1  ;;  %v2414_v46 = vpop.f32.mrf.mxu3 }
 0x392   : > { %v2448_v35 = vadd.f32 %v2414_v46, %v2288_v17 }
 0x393   : > { %3785 = vmatmul.msk.f32.gmra.mxu2 %vm397_vm1, %v4361_v54 }
 0x394   : > { %3751 = vmatmul.msk.f32.gmra.mxu1 %vm397_vm1, %v4323_v43  ;;  %v2480_v27 = vadd.f32 %v5378_v53, %v2448_v35  ;;  %v2538_v62 = vpop.f32.mrf.mxu0 }
 0x395   : > { %v2655_v30 = vadd.f32 %v2654_v31, %v2538_v62 }
 0x396   : > { %3698 = vst.msk [vmem:[%s4340_s18 + $0x2f8] sm:$0xff] %vm397_vm1, %v2480_v27  ;;  %3819 = vmatmul.msk.f32.gmra.mxu3 %vm397_vm1, %v6100_v47  ;;  %v2772_v63 = vpop.f32.mrf.mxu2 }
 0x397   : > { %v2868_v48 = vadd.f32 %v2772_v63, %v2655_v30  ;;  %3718 = vmatmul.msk.f32.gmra.mxu0 %vm397_vm1, %v6098_v28 }
 0x399   : > { %v2657_v5 = vpop.f32.mrf.mxu1  ;;  %v2931_v15 = vpop.f32.mrf.mxu3 }
 0x39a   : > { %v3027_v49 = vadd.f32 %v2931_v15, %v2868_v48 }
 0x39b   : > { %3786 = vmatmul.msk.f32.gmra.mxu2 %vm397_vm1, %v6058_v0 }
 0x39c   : > { %3752 = vmatmul.msk.f32.gmra.mxu1 %vm397_vm1, %v4344_v6  ;;  %v3059_v43 = vadd.f32 %v5378_v53, %v3027_v49  ;;  %v2541_v36 = vpop.f32.mrf.mxu0 }
 0x39d   : > { %v2658_v11 = vadd.f32 %v2657_v5, %v2541_v36 }
 0x39e   : > { %3835 = vst.msk [vmem:[%s4340_s18 + $0x300] sm:$0xff] %vm397_vm1, %v3059_v43  ;;  %3820 = vmatmul.msk.f32.gmra.mxu3 %vm397_vm1, %v6101_v22  ;;  %v2775_v9 = vpop.f32.mrf.mxu2 }
 0x39f   : > { %v2869_v4 = vadd.f32 %v2775_v9, %v2658_v11  ;;  %3719 = vmatmul.msk.f32.gmra.mxu0 %vm397_vm1, %v6099_v60  ;;  %v6106_v11 = vld [vmem:[#allocation7_spill] sm:$0xff] }
 0x3a1   : > { %v2660_v52 = vpop.f32.mrf.mxu1  ;;  %v2934_v14 = vpop.f32.mrf.mxu3 }
 0x3a2   : > { %v3028_v24 = vadd.f32 %v2934_v14, %v2869_v4 }
 0x3a3   : > { %3787 = vmatmul.msk.f32.gmra.mxu2 %vm397_vm1, %v6060_v1 }
 0x3a4   : > { %3753 = vmatmul.msk.f32.gmra.mxu1 %vm397_vm1, %v4361_v54  ;;  %v3060_v6 = vadd.f32 %v5378_v53, %v3028_v24  ;;  %v2544_v32 = vpop.f32.mrf.mxu0 }
 0x3a5   : > { %v2661_v34 = vadd.f32 %v2660_v52, %v2544_v32  ;;  %v6107_v32 = vld [vmem:[#allocation8_spill] sm:$0xff] }
 0x3a6   : > { %3836 = vst.msk [vmem:[%s4340_s18 + $0x308] sm:$0xff] %vm397_vm1, %v3060_v6  ;;  %3821 = vmatmul.msk.f32.gmra.mxu3 %vm397_vm1, %v6102_v57  ;;  %v2778_v39 = vpop.f32.mrf.mxu2 }
 0x3a7   : > { %v2870_v13 = vadd.f32 %v2778_v39, %v2661_v34  ;;  %3720 = vmatmul.msk.f32.gmra.mxu0 %vm397_vm1, %v6100_v47  ;;  %v6105_v47 = vld [vmem:[#allocation6_spill] sm:$0xff] }
 0x3a9   : > { %v2663_v7 = vpop.f32.mrf.mxu1  ;;  %v2937_v45 = vpop.f32.mrf.mxu3 }
 0x3aa   : > { %v3029_v55 = vadd.f32 %v2937_v45, %v2870_v13 }
 0x3ab   : > { %3788 = vmatmul.msk.f32.gmra.mxu2 %vm397_vm1, %v6062_v56 }
 0x3ac   : > { %3754 = vmatmul.msk.f32.gmra.mxu1 %vm397_vm1, %v6058_v0  ;;  %v3061_v54 = vadd.f32 %v5378_v53, %v3029_v55  ;;  %v2547_v28 = vpop.f32.mrf.mxu0 }
 0x3ad   : > { %v2664_v25 = vadd.f32 %v2663_v7, %v2547_v28 }
 0x3ae   : > { %3837 = vst.msk [vmem:[%s4340_s18 + $0x310] sm:$0xff] %vm397_vm1, %v3061_v54  ;;  %3822 = vmatmul.msk.f32.gmra.mxu3 %vm397_vm1, %v6103_v10  ;;  %v2781_v29 = vpop.f32.mrf.mxu2  ;;  %v6108_v54 = vld [vmem:[#allocation9_spill] sm:$0xff] }
 0x3af   : > { %v2871_v61 = vadd.f32 %v2781_v29, %v2664_v25  ;;  %3721 = vmatmul.msk.f32.gmra.mxu0 %vm397_vm1, %v6101_v22 }
 0x3b1   : > { %v2666_v2 = vpop.f32.mrf.mxu1  ;;  %v2940_v20 = vpop.f32.mrf.mxu3 }
 0x3b2   : > { %v3030_v44 = vadd.f32 %v2940_v20, %v2871_v61 }
 0x3b3   : > { %3789 = vmatmul.msk.f32.gmra.mxu2 %vm397_vm1, %v6064_v38 }
 0x3b4   : > { %3755 = vmatmul.msk.f32.gmra.mxu1 %vm397_vm1, %v6060_v1  ;;  %v3062_v0 = vadd.f32 %v5378_v53, %v3030_v44  ;;  %v2550_v40 = vpop.f32.mrf.mxu0  ;;  %v6109_v44 = vld [vmem:[#allocation30_spill] sm:$0xff] }
 0x3b5   : > { %v2667_v60 = vadd.f32 %v2666_v2, %v2550_v40 }
 0x3b6   : > { %3838 = vst.msk [vmem:[%s4340_s18 + $0x318] sm:$0xff] %vm397_vm1, %v3062_v0  ;;  %3823 = vmatmul.msk.f32.gmra.mxu3 %vm397_vm1, %v6104_v26  ;;  %v2784_v17 = vpop.f32.mrf.mxu2 }
 0x3b7   : > { %v2872_v31 = vadd.f32 %v2784_v17, %v2667_v60  ;;  %3722 = vmatmul.msk.f32.gmra.mxu0 %vm397_vm1, %v6102_v57 }
 0x3b9   : > { %v2669_v46 = vpop.f32.mrf.mxu1  ;;  %v2943_v35 = vpop.f32.mrf.mxu3 }
 0x3ba   : > { %v3031_v27 = vadd.f32 %v2943_v35, %v2872_v31 }
 0x3bb   : > { %3790 = vmatmul.msk.f32.gmra.mxu2 %vm397_vm1, %v6066_v41 }
 0x3bc   : > { %3756 = vmatmul.msk.f32.gmra.mxu1 %vm397_vm1, %v6062_v56  ;;  %v3063_v1 = vadd.f32 %v5378_v53, %v3031_v27  ;;  %v2553_v62 = vpop.f32.mrf.mxu0 }
 0x3bd   : > { %v2670_v30 = vadd.f32 %v2669_v46, %v2553_v62 }
 0x3be   : > { %3839 = vst.msk [vmem:[%s4340_s18 + $0x320] sm:$0xff] %vm397_vm1, %v3063_v1  ;;  %3824 = vmatmul.msk.f32.gmra.mxu3 %vm397_vm1, %v6105_v47  ;;  %v2787_v63 = vpop.f32.mrf.mxu2 }
 0x3bf   : > { %v2873_v48 = vadd.f32 %v2787_v63, %v2670_v30  ;;  %3723 = vmatmul.msk.f32.gmra.mxu0 %vm397_vm1, %v6103_v10 }
 0x3c1   : > { %v2672_v5 = vpop.f32.mrf.mxu1  ;;  %v2946_v15 = vpop.f32.mrf.mxu3 }
 0x3c2   : > { %v3032_v49 = vadd.f32 %v2946_v15, %v2873_v48 }
 0x3c3   : > { %3791 = vmatmul.msk.f32.gmra.mxu2 %vm397_vm1, %v6068_v16 }
 0x3c4   : > { %3757 = vmatmul.msk.f32.gmra.mxu1 %vm397_vm1, %v6064_v38  ;;  %v3064_v56 = vadd.f32 %v5378_v53, %v3032_v49  ;;  %v2556_v43 = vpop.f32.mrf.mxu0 }
 0x3c5   : > { %v2673_v36 = vadd.f32 %v2672_v5, %v2556_v43 }
 0x3c6   : > { %3840 = vst.msk [vmem:[%s4340_s18 + $0x328] sm:$0xff] %vm397_vm1, %v3064_v56  ;;  %3825 = vmatmul.msk.f32.gmra.mxu3 %vm397_vm1, %v6106_v11  ;;  %v2790_v22 = vpop.f32.mrf.mxu2 }
 0x3c7   : > { %v2874_v9 = vadd.f32 %v2790_v22, %v2673_v36  ;;  %3724 = vmatmul.msk.f32.gmra.mxu0 %vm397_vm1, %v6104_v26 }
 0x3c9   : > { %v2675_v4 = vpop.f32.mrf.mxu1  ;;  %v2949_v52 = vpop.f32.mrf.mxu3 }
 0x3ca   : > { %v3033_v14 = vadd.f32 %v2949_v52, %v2874_v9 }
 0x3cb   : > { %3792 = vmatmul.msk.f32.gmra.mxu2 %vm397_vm1, %v6070_v58 }
 0x3cc   : > { %3758 = vmatmul.msk.f32.gmra.mxu1 %vm397_vm1, %v6066_v41  ;;  %v3065_v38 = vadd.f32 %v5378_v53, %v3033_v14  ;;  %v2559_v24 = vpop.f32.mrf.mxu0 }
 0x3cd   : > { %v2676_v6 = vadd.f32 %v2675_v4, %v2559_v24 }
 0x3ce   : > { %3841 = vst.msk [vmem:[%s4340_s18 + $0x330] sm:$0xff] %vm397_vm1, %v3065_v38  ;;  %3826 = vmatmul.msk.f32.gmra.mxu3 %vm397_vm1, %v6107_v32  ;;  %v2793_v34 = vpop.f32.mrf.mxu2 }
 0x3cf   : > { %v2875_v57 = vadd.f32 %v2793_v34, %v2676_v6  ;;  %3725 = vmatmul.msk.f32.gmra.mxu0 %vm397_vm1, %v6105_v47  ;;  %v6111_v6 = vld [vmem:[#allocation34_spill] sm:$0xff] }
 0x3d1   : > { %v2678_v39 = vpop.f32.mrf.mxu1  ;;  %v2952_v13 = vpop.f32.mrf.mxu3 }
 0x3d2   : > { %v3034_v7 = vadd.f32 %v2952_v13, %v2875_v57  ;;  %v2903_v57 = vrot.slane %v5484_v3, 2 }
 0x3d3   : > { %3793 = vmatmul.msk.f32.gmra.mxu2 %vm397_vm1, %v6072_v23 }
 0x3d4   : > { %3759 = vmatmul.msk.f32.gmra.mxu1 %vm397_vm1, %v6068_v16  ;;  %v3066_v41 = vadd.f32 %v5378_v53, %v3034_v7  ;;  %v2562_v45 = vpop.f32.mrf.mxu0 }
 0x3d5   : > { %v2679_v55 = vadd.f32 %v2678_v39, %v2562_v45 }
 0x3d6   : > { %3842 = vst.msk [vmem:[%s4340_s18 + $0x338] sm:$0xff] %vm397_vm1, %v3066_v41  ;;  %3827 = vmatmul.msk.f32.gmra.mxu3 %vm397_vm1, %v6108_v54  ;;  %v2796_v28 = vpop.f32.mrf.mxu2 }
 0x3d7   : > { %v2876_v25 = vadd.f32 %v2796_v28, %v2679_v55  ;;  %3726 = vmatmul.msk.f32.gmra.mxu0 %vm397_vm1, %v6106_v11  ;;  %v6110_v11 = vld [vmem:[#allocation33_spill] sm:$0xff] }
 0x3d9   : > { %v2681_v10 = vpop.f32.mrf.mxu1  ;;  %v2955_v29 = vpop.f32.mrf.mxu3 }
 0x3da   : > { %v3035_v61 = vadd.f32 %v2955_v29, %v2876_v25 }
 0x3db   : > { %3794 = vmatmul.msk.f32.gmra.mxu2 %vm397_vm1, %v4502_v59 }
 0x3dc   : > { %3760 = vmatmul.msk.f32.gmra.mxu1 %vm397_vm1, %v6070_v58  ;;  %v3067_v16 = vadd.f32 %v5378_v53, %v3035_v61  ;;  %v2565_v2 = vpop.f32.mrf.mxu0 }
 0x3dd   : > { %v2682_v20 = vadd.f32 %v2681_v10, %v2565_v2 }
 0x3de   : > { %3843 = vst.msk [vmem:[%s4340_s18 + $0x340] sm:$0xff] %vm397_vm1, %v3067_v16  ;;  %3828 = vmatmul.msk.f32.gmra.mxu3 %vm397_vm1, %v6109_v44  ;;  %v2799_v0 = vpop.f32.mrf.mxu2 }
 0x3df   : > { %v2877_v40 = vadd.f32 %v2799_v0, %v2682_v20  ;;  %3727 = vmatmul.msk.f32.gmra.mxu0 %vm397_vm1, %v6107_v32  ;;  %v2902_v32 = vrot.slane %v5481_v51, 2 }
 0x3e1   : > { %v2684_v60 = vpop.f32.mrf.mxu1  ;;  %v2958_v26 = vpop.f32.mrf.mxu3  ;;  %v2904_v7 = vsel %vm1146_vm3, %v2902_v32, %v2903_v57 }
 0x3e2   : > { %v3036_v17 = vadd.f32 %v2958_v26, %v2877_v40 }
 0x3e3   : > { %3795 = vmatmul.msk.f32.gmra.mxu2 %vm397_vm1, %v4520_v12 }
 0x3e4   : > { %3761 = vmatmul.msk.f32.gmra.mxu1 %vm397_vm1, %v6072_v23  ;;  %v3068_v58 = vadd.f32 %v5378_v53, %v3036_v17  ;;  %v2568_v31 = vpop.f32.mrf.mxu0  ;;  %v5830_v23 = vld [vmem:[%s5948_s2] ss:$0 sm:$0xff] }
 0x3e5   : > { %v2685_v46 = vadd.f32 %v2684_v60, %v2568_v31 }
 0x3e6   : > { %3844 = vst.msk [vmem:[%s4340_s18 + $0x348] sm:$0xff] %vm397_vm1, %v3068_v58  ;;  %3829 = vmatmul.msk.f32.gmra.mxu3 %vm397_vm1, %v5084_v37  ;;  %v2802_v35 = vpop.f32.mrf.mxu2 }
 0x3e7   : > { %v2878_v27 = vadd.f32 %v2802_v35, %v2685_v46  ;;  %3728 = vmatmul.msk.f32.gmra.mxu0 %vm397_vm1, %v6108_v54 }
 0x3e9   : > { %v2687_v1 = vpop.f32.mrf.mxu1  ;;  %v2961_v62 = vpop.f32.mrf.mxu3 }
 0x3ea   : > { %v3037_v30 = vadd.f32 %v2961_v62, %v2878_v27 }
 0x3eb   : > { %3796 = vmatmul.msk.f32.gmra.mxu2 %vm397_vm1, %v4550_v50 }
 0x3ec   : > { %3762 = vmatmul.msk.f32.gmra.mxu1 %vm397_vm1, %v4502_v59  ;;  %v3069_v53 = vadd.f32 %v5830_v23, %v3037_v30  ;;  %v2571_v47 = vpop.f32.mrf.mxu0 }
 0x3ed   : > { %v2688_v63 = vadd.f32 %v2687_v1, %v2571_v47 }
 0x3ee   : > { %3845 = vst.msk [vmem:[%s4340_s18 + $0x350] sm:$0xff] %vm397_vm1, %v3069_v53  ;;  %3830 = vmatmul.msk.f32.gmra.mxu3 %vm397_vm1, %v5115_v42  ;;  %v2805_v48 = vpop.f32.mrf.mxu2 }
 0x3ef   : > { %v2879_v5 = vadd.f32 %v2805_v48, %v2688_v63  ;;  %3729 = vmatmul.msk.f32.gmra.mxu0 %vm397_vm1, %v6109_v44 }
 0x3f1   : > { %v2690_v59 = vpop.f32.mrf.mxu1  ;;  %v2964_v15 = vpop.f32.mrf.mxu3 }
 0x3f2   : > { %v3038_v49 = vadd.f32 %v2964_v15, %v2879_v5 }
 0x3f3   : > { %3797 = vmatmul.msk.f32.gmra.mxu2 %vm397_vm1, %v6080_v33 }
 0x3f4   : > { %3763 = vmatmul.msk.f32.gmra.mxu1 %vm397_vm1, %v4520_v12  ;;  %v3070_v56 = vadd.f32 %v5830_v23, %v3038_v49  ;;  %v2574_v43 = vpop.f32.mrf.mxu0 }
 0x3f5   : > { %v2691_v36 = vadd.f32 %v2690_v59, %v2574_v43 }
 0x3f6   : > { %3846 = vst.msk [vmem:[%s4340_s18 + $0x358] sm:$0xff] %vm397_vm1, %v3070_v56  ;;  %3831 = vmatmul.msk.f32.gmra.mxu3 %vm397_vm1, %v6110_v11  ;;  %v2808_v22 = vpop.f32.mrf.mxu2 }
 0x3f7   : > { %v2880_v9 = vadd.f32 %v2808_v22, %v2691_v36  ;;  %3730 = vmatmul.msk.f32.gmra.mxu0 %vm397_vm1, %v5084_v37 }
 0x3f9   : > { %v2693_v4 = vpop.f32.mrf.mxu1  ;;  %v2967_v52 = vpop.f32.mrf.mxu3 }
 0x3fa   : > { %v3039_v14 = vadd.f32 %v2967_v52, %v2880_v9 }
 0x3fb   : > { %3798 = vmatmul.msk.f32.gmra.mxu2 %vm397_vm1, %v4578_v21 }
 0x3fc   : > { %3764 = vmatmul.msk.f32.gmra.mxu1 %vm397_vm1, %v4550_v50  ;;  %v3071_v12 = vadd.f32 %v5830_v23, %v3039_v14  ;;  %v2577_v38 = vpop.f32.mrf.mxu0 }
 0x3fd   : > { %v2694_v24 = vadd.f32 %v2693_v4, %v2577_v38 }
 0x3fe   : > { %3847 = vst.msk [vmem:[%s4340_s18 + $0x360] sm:$0xff] %vm397_vm1, %v3071_v12  ;;  %3832 = vmatmul.msk.f32.gmra.mxu3 %vm397_vm1, %v6111_v6  ;;  %v2811_v37 = vpop.f32.mrf.mxu2 }
 0x3ff   : > { %v2881_v34 = vadd.f32 %v2811_v37, %v2694_v24  ;;  %3731 = vmatmul.msk.f32.gmra.mxu0 %vm397_vm1, %v5115_v42 }
 0x401   : > { %v2696_v50 = vpop.f32.mrf.mxu1  ;;  %v2970_v39 = vpop.f32.mrf.mxu3 }
 0x402   : > { %v3040_v13 = vadd.f32 %v2970_v39, %v2881_v34 }
 0x403   : > { %3799 = vmatmul.msk.f32.gmra.mxu2 %vm397_vm1, %v5497_v8  ;;  %v2905_v8 = vrot.slane %v5503_v19, 2 }
 0x404   : > { %3765 = vmatmul.msk.f32.gmra.mxu1 %vm397_vm1, %v6080_v33  ;;  %v3072_v41 = vadd.f32 %v5830_v23, %v3040_v13  ;;  %v2580_v51 = vpop.f32.mrf.mxu0 }
 0x405   : > { %v2697_v45 = vadd.f32 %v2696_v50, %v2580_v51  ;;  %v2906_v33 = vsel %vm1146_vm3, %v2903_v57, %v2905_v8 }
 0x406   : > { %3848 = vst.msk [vmem:[%s4340_s18 + $0x368] sm:$0xff] %vm397_vm1, %v3072_v41  ;;  %3833 = vmatmul.msk.f32.gmra.mxu3 %vm397_vm1, %v2904_v7  ;;  %v2814_v42 = vpop.f32.mrf.mxu2 }
 0x407   : > { %v2882_v3 = vadd.f32 %v2814_v42, %v2697_v45  ;;  %3732 = vmatmul.msk.f32.gmra.mxu0 %vm397_vm1, %v6110_v11 }
 0x409   : > { %v2699_v55 = vpop.f32.mrf.mxu1  ;;  %v2973_v54 = vpop.f32.mrf.mxu3 }
 0x40a   : > { %v3041_v28 = vadd.f32 %v2973_v54, %v2882_v3 }
 0x40b   : > { %3800 = vmatmul.msk.f32.gmra.mxu2 %vm397_vm1, %v5515_v18 }
 0x40c   : > { %3766 = vmatmul.msk.f32.gmra.mxu1 %vm397_vm1, %v4578_v21  ;;  %v3073_v25 = vadd.f32 %v5830_v23, %v3041_v28  ;;  %v2583_v10 = vpop.f32.mrf.mxu0 }
 0x40d   : > { %v2700_v29 = vadd.f32 %v2699_v55, %v2583_v10 }
 0x40e   : > { %3849 = vst.msk [vmem:[%s4340_s18 + $0x370] sm:$0xff] %vm397_vm1, %v3073_v25  ;;  %3834 = vmatmul.msk.f32.gmra.mxu3 %vm397_vm1, %v2906_v33  ;;  %v2817_v19 = vpop.f32.mrf.mxu2 }
 0x40f   : > { %v2883_v61 = vadd.f32 %v2817_v19, %v2700_v29  ;;  %3733 = vmatmul.msk.f32.gmra.mxu0 %vm397_vm1, %v6111_v6 }
 0x411   : > { %v2702_v18 = vpop.f32.mrf.mxu1  ;;  %v2976_v16 = vpop.f32.mrf.mxu3 }
 0x412   : > { %v3042_v2 = vadd.f32 %v2976_v16, %v2883_v61 }
 0x414   : > { %v3074_v20 = vadd.f32 %v5830_v23, %v3042_v2  ;;  %v2586_v21 = vpop.f32.mrf.mxu0 }
 0x415   : > { %v2703_v44 = vadd.f32 %v2702_v18, %v2586_v21 }
 0x416   : > { %3850 = vst.msk [vmem:[%s4340_s18 + $0x378] sm:$0xff] %vm397_vm1, %v3074_v20  ;;  %v2820_v0 = vpop.f32.mrf.mxu2 }
 0x417   : > { %v2884_v40 = vadd.f32 %v2820_v0, %v2703_v44 }
 0x419   : > { %v2705_v60 = vpop.f32.mrf.mxu1  ;;  %v2979_v26 = vpop.f32.mrf.mxu3 }
 0x41a   : > { %v3043_v17 = vadd.f32 %v2979_v26, %v2884_v40 }
 0x41c   : > { %v3075_v58 = vadd.f32 %v5830_v23, %v3043_v17  ;;  %v2589_v31 = vpop.f32.mrf.mxu0 }
 0x41d   : > { %v2706_v46 = vadd.f32 %v2705_v60, %v2589_v31 }
 0x41e   : > { %3851 = vst.msk [vmem:[%s4340_s18 + $0x380] sm:$0xff] %vm397_vm1, %v3075_v58  ;;  %v2823_v35 = vpop.f32.mrf.mxu2 }
 0x41f   : > { %v2885_v27 = vadd.f32 %v2823_v35, %v2706_v46 }
 0x421   : > { %v2708_v1 = vpop.f32.mrf.mxu1  ;;  %v2982_v62 = vpop.f32.mrf.mxu3 }
 0x422   : > { %v3044_v30 = vadd.f32 %v2982_v62, %v2885_v27 }
 0x424   : > { %v3076_v53 = vadd.f32 %v5830_v23, %v3044_v30  ;;  %v2592_v47 = vpop.f32.mrf.mxu0 }
 0x425   : > { %v2709_v63 = vadd.f32 %v2708_v1, %v2592_v47 }
 0x426   : > { %3852 = vst.msk [vmem:[%s4340_s18 + $0x388] sm:$0xff] %vm397_vm1, %v3076_v53  ;;  %v2826_v48 = vpop.f32.mrf.mxu2 }
 0x427   : > { %v2886_v5 = vadd.f32 %v2826_v48, %v2709_v63 }
 0x429   : > { %v2711_v59 = vpop.f32.mrf.mxu1  ;;  %v2985_v15 = vpop.f32.mrf.mxu3 }
 0x42a   : > { %v3045_v49 = vadd.f32 %v2985_v15, %v2886_v5 }
 0x42c   : > { %v3077_v56 = vadd.f32 %v5830_v23, %v3045_v49  ;;  %v2595_v43 = vpop.f32.mrf.mxu0 }
 0x42d   : > { %v2712_v36 = vadd.f32 %v2711_v59, %v2595_v43 }
 0x42e   : > { %3853 = vst.msk [vmem:[%s4340_s18 + $0x390] sm:$0xff] %vm397_vm1, %v3077_v56  ;;  %v2829_v11 = vpop.f32.mrf.mxu2 }
 0x42f   : > { %v2887_v22 = vadd.f32 %v2829_v11, %v2712_v36 }
 0x431   : > { %v2714_v9 = vpop.f32.mrf.mxu1  ;;  %v2988_v4 = vpop.f32.mrf.mxu3 }
 0x432   : > { %v3046_v52 = vadd.f32 %v2988_v4, %v2887_v22 }
 0x434   : > { %v3078_v14 = vadd.f32 %v5830_v23, %v3046_v52  ;;  %v2598_v12 = vpop.f32.mrf.mxu0 }
 0x435   : > { %v2715_v38 = vadd.f32 %v2714_v9, %v2598_v12 }
 0x436   : > { %3854 = vst.msk [vmem:[%s4340_s18 + $0x398] sm:$0xff] %vm397_vm1, %v3078_v14  ;;  %v2832_v24 = vpop.f32.mrf.mxu2 }
 0x437   : > { %v2888_v6 = vadd.f32 %v2832_v24, %v2715_v38 }
 0x439   : > { %v2717_v37 = vpop.f32.mrf.mxu1  ;;  %v2991_v32 = vpop.f32.mrf.mxu3 }
 0x43a   : > { %v3047_v34 = vadd.f32 %v2991_v32, %v2888_v6 }
 0x43c   : > { %v3079_v57 = vadd.f32 %v5830_v23, %v3047_v34  ;;  %v2601_v50 = vpop.f32.mrf.mxu0 }
 0x43d   : > { %v2718_v39 = vadd.f32 %v2717_v37, %v2601_v50 }
 0x43e   : > { %3855 = vst.msk [vmem:[%s4340_s18 + $0x3a0] sm:$0xff] %vm397_vm1, %v3079_v57  ;;  %v2835_v13 = vpop.f32.mrf.mxu2 }
 0x43f   : > { %v2889_v7 = vadd.f32 %v2835_v13, %v2718_v39 }
 0x441   : > { %v2720_v41 = vpop.f32.mrf.mxu1  ;;  %v2994_v51 = vpop.f32.mrf.mxu3 }
 0x442   : > { %v3048_v45 = vadd.f32 %v2994_v51, %v2889_v7 }
 0x444   : > { %v3080_v42 = vadd.f32 %v5830_v23, %v3048_v45  ;;  %v2604_v3 = vpop.f32.mrf.mxu0 }
 0x445   : > { %v2721_v8 = vadd.f32 %v2720_v41, %v2604_v3 }
 0x446   : > { %3856 = vst.msk [vmem:[%s4340_s18 + $0x3a8] sm:$0xff] %vm397_vm1, %v3080_v42  ;;  %v2838_v55 = vpop.f32.mrf.mxu2 }
 0x447   : > { %v2890_v54 = vadd.f32 %v2838_v55, %v2721_v8 }
 0x449   : > { %v2723_v28 = vpop.f32.mrf.mxu1  ;;  %v2997_v33 = vpop.f32.mrf.mxu3 }
 0x44a   : > { %v3049_v25 = vadd.f32 %v2997_v33, %v2890_v54 }
 0x44c   : > { %v3081_v10 = vadd.f32 %v5830_v23, %v3049_v25  ;;  %v2607_v29 = vpop.f32.mrf.mxu0 }
 0x44d   : > { %v2724_v19 = vadd.f32 %v2723_v28, %v2607_v29 }
 0x44e   : > { %3857 = vst.msk [vmem:[%s4340_s18 + $0x3b0] sm:$0xff] %vm397_vm1, %v3081_v10  ;;  %v2841_v61 = vpop.f32.mrf.mxu2 }
 0x44f   : > { %v2891_v18 = vadd.f32 %v2841_v61, %v2724_v19 }
 0x451   : > { %v2726_v16 = vpop.f32.mrf.mxu1  ;;  %v3000_v2 = vpop.f32.mrf.mxu3 }
 0x452   : > { %v3050_v20 = vadd.f32 %v3000_v2, %v2891_v18 }
 0x454   : > { %v3082_v21 = vadd.f32 %v5830_v23, %v3050_v20  ;;  %v2610_v44 = vpop.f32.mrf.mxu0 }
 0x455   : > { %v2727_v0 = vadd.f32 %v2726_v16, %v2610_v44 }
 0x456   : > { %3858 = vst.msk [vmem:[%s4340_s18 + $0x3b8] sm:$0xff] %vm397_vm1, %v3082_v21  ;;  %v2844_v40 = vpop.f32.mrf.mxu2 }
 0x457   : > { %v2892_v60 = vadd.f32 %v2844_v40, %v2727_v0 }
 0x459   : > { %v2729_v26 = vpop.f32.mrf.mxu1  ;;  %v3003_v17 = vpop.f32.mrf.mxu3 }
 0x45a   : > { %v3051_v58 = vadd.f32 %v3003_v17, %v2892_v60 }
 0x45c   : > { %v3083_v31 = vadd.f32 %v5830_v23, %v3051_v58  ;;  %v2613_v46 = vpop.f32.mrf.mxu0 }
 0x45d   : > { %v2730_v35 = vadd.f32 %v2729_v26, %v2613_v46 }
 0x45e   : > { %3859 = vst.msk [vmem:[%s4340_s18 + $0x3c0] sm:$0xff] %vm397_vm1, %v3083_v31  ;;  %v2847_v27 = vpop.f32.mrf.mxu2 }
 0x45f   : > { %v2893_v1 = vadd.f32 %v2847_v27, %v2730_v35 }
 0x461   : > { %v2732_v62 = vpop.f32.mrf.mxu1  ;;  %v3006_v30 = vpop.f32.mrf.mxu3 }
 0x462   : > { %v3052_v53 = vadd.f32 %v3006_v30, %v2893_v1 }
 0x464   : > { %v3084_v47 = vadd.f32 %v5830_v23, %v3052_v53  ;;  %v2616_v63 = vpop.f32.mrf.mxu0 }
 0x465   : > { %v2733_v48 = vadd.f32 %v2732_v62, %v2616_v63 }
 0x466   : > { %3860 = vst.msk [vmem:[%s4340_s18 + $0x3c8] sm:$0xff] %vm397_vm1, %v3084_v47  ;;  %v2850_v5 = vpop.f32.mrf.mxu2 }
 0x467   : > { %v2894_v59 = vadd.f32 %v2850_v5, %v2733_v48 }
 0x469   : > { %v2735_v15 = vpop.f32.mrf.mxu1  ;;  %v3009_v49 = vpop.f32.mrf.mxu3 }
 0x46a   : > { %v3053_v56 = vadd.f32 %v3009_v49, %v2894_v59 }
 0x46c   : > { %v3085_v43 = vadd.f32 %v5830_v23, %v3053_v56  ;;  %v2619_v36 = vpop.f32.mrf.mxu0 }
 0x46d   : > { %v2736_v11 = vadd.f32 %v2735_v15, %v2619_v36 }
 0x46e   : > { %3861 = vst.msk [vmem:[%s4340_s18 + $0x3d0] sm:$0xff] %vm397_vm1, %v3085_v43  ;;  %v2853_v22 = vpop.f32.mrf.mxu2 }
 0x46f   : > { %v2895_v9 = vadd.f32 %v2853_v22, %v2736_v11 }
 0x471   : > { %v2738_v4 = vpop.f32.mrf.mxu1  ;;  %v3012_v52 = vpop.f32.mrf.mxu3 }
 0x472   : > { %v3054_v14 = vadd.f32 %v3012_v52, %v2895_v9 }
 0x474   : > { %v3086_v12 = vadd.f32 %v5830_v23, %v3054_v14  ;;  %v2622_v38 = vpop.f32.mrf.mxu0 }
 0x475   : > { %v2739_v24 = vadd.f32 %v2738_v4, %v2622_v38 }
 0x476   : > { %3862 = vst.msk [vmem:[%s4340_s18 + $0x3d8] sm:$0xff] %vm397_vm1, %v3086_v12  ;;  %v2856_v6 = vpop.f32.mrf.mxu2 }
 0x477   : > { %v2896_v37 = vadd.f32 %v2856_v6, %v2739_v24 }
 0x479   : > { %v2741_v32 = vpop.f32.mrf.mxu1  ;;  %v3015_v34 = vpop.f32.mrf.mxu3 }
 0x47a   : > { %v3055_v57 = vadd.f32 %v3015_v34, %v2896_v37 }
 0x47c   : > { %v3087_v50 = vadd.f32 %v5830_v23, %v3055_v57  ;;  %v2625_v39 = vpop.f32.mrf.mxu0 }
 0x47d   : > { %v2742_v13 = vadd.f32 %v2741_v32, %v2625_v39 }
 0x47e   : > { %3863 = vst.msk [vmem:[%s4340_s18 + $0x3e0] sm:$0xff] %vm397_vm1, %v3087_v50  ;;  %v2859_v7 = vpop.f32.mrf.mxu2 }
 0x47f   : > { %v2897_v41 = vadd.f32 %v2859_v7, %v2742_v13 }
 0x481   : > { %v2744_v51 = vpop.f32.mrf.mxu1  ;;  %v3018_v45 = vpop.f32.mrf.mxu3 }
 0x482   : > { %v3056_v42 = vadd.f32 %v3018_v45, %v2897_v41 }
 0x484   : > { %v3088_v3 = vadd.f32 %v5830_v23, %v3056_v42  ;;  %v2628_v8 = vpop.f32.mrf.mxu0 }
 0x485   : > { %v2745_v55 = vadd.f32 %v2744_v51, %v2628_v8 }
 0x486   : > { %3864 = vst.msk [vmem:[%s4340_s18 + $0x3e8] sm:$0xff] %vm397_vm1, %v3088_v3  ;;  %v2862_v54 = vpop.f32.mrf.mxu2 }
 0x487   : > { %v2898_v28 = vadd.f32 %v2862_v54, %v2745_v55 }
 0x489   : > { %v3021_v33 = vpop.f32.mrf.mxu3  ;;  %v2747_v10 = vpop.f32.mrf.mxu1 }
 0x48a   : > { %v3057_v25 = vadd.f32 %v3021_v33, %v2898_v28 }
 0x48c   : > { %v3089_v29 = vadd.f32 %v5830_v23, %v3057_v25  ;;  %v2631_v19 = vpop.f32.mrf.mxu0 }
 0x48d   : > { %v2748_v61 = vadd.f32 %v2747_v10, %v2631_v19 }
 0x48e   : > { %3865 = vst.msk [vmem:[%s4340_s18 + $0x3f0] sm:$0xff] %vm397_vm1, %v3089_v29  ;;  %v2865_v18 = vpop.f32.mrf.mxu2 }
 0x48f   : > { %v2899_v16 = vadd.f32 %v2865_v18, %v2748_v61 }
 0x491   : > { %v3024_v2 = vpop.f32.mrf.mxu3 }
 0x492   : > { %v3058_v20 = vadd.f32 %v3024_v2, %v2899_v16 }
 0x494   : > { %v3090_v21 = vadd.f32 %v5830_v23, %v3058_v20 }
 0x496   : > { %3866 = vst.msk [vmem:[%s4340_s18 + $0x3f8] sm:$0xff] %vm397_vm1, %v3090_v21 }
 0x497 PF: > { %s13_s14 = sadd.s32 1, %s3963_s14   ;;  %s6112_s12 = smov %s3959_s13 }
 0x498   : > { %p10_p5 = scmp.ge.s32.totalorder %s13_s14, 4   ;;  %s6113_s13 = smov %s6115_s15 }
 0x49a   :  { %12 = sbr.rel (!%p10_p5) target bundleno = 2 (0x2), region = 80 }

</bundles_post_ra>
